<compile_context>
chip_gen: v5e
topology: v5e:2x2
jax: 0.10.0
libtpu: 0.0.40
codegen_flags: <defaults>
</compile_context>

<pallas_src>
import functools

import jax
import jax.numpy as jnp
from jax.experimental import pallas as pl
from jax.experimental.pallas import tpu as pltpu


def _conv1x1_kernel(x_ref, w_ref, b_ref, o_ref):
    # x_ref: [M, K] (bf16)   w_ref: [K, Nout] (bf16)
    # b_ref: [1, Nout] (f32) o_ref: [M, Nout] (f32)
    acc = jnp.dot(x_ref[...], w_ref[...], preferred_element_type=jnp.float32)
    o_ref[...] = (acc + b_ref[...]).astype(o_ref.dtype)


def pack_conv1x1_params(weight, bias, *, compute_dtype=jnp.bfloat16):
    """One-time parameter packing (do this at load time, NOT per call).

    weight: [C_out, C_in] or [C_out, C_in, 1, 1]  (PyTorch Conv2d weight)
    bias:   [C_out]
    returns (w_packed [C_in, C_out] compute_dtype, b_packed [1, C_out] f32)
    """
    C_out, C_in = weight.shape[0], weight.shape[1]
    w2d = jnp.asarray(weight).reshape(C_out, C_in)
    w_packed = jnp.transpose(w2d, (1, 0)).astype(compute_dtype)   # [C_in, C_out]
    b_packed = jnp.asarray(bias, dtype=jnp.float32).reshape(1, C_out)
    return w_packed, b_packed


@jax.jit
def conv2d_1x1(x_nchw, w_packed, b_packed):
    """1x1 stride-1 convolution with bias, using pre-packed parameters.

    x_nchw:   [N, C_in, H, W]
    w_packed: [C_in, C_out]  (already transposed + cast, see pack_conv1x1_params)
    b_packed: [1, C_out]     (float32)
    returns:  [N, C_out, H, W]  (float32)
    """
    N, C_in, H, W = x_nchw.shape
    C_out = w_packed.shape[1]

    # Flatten to a matmul: rows are (n, h, w) positions, columns are channels.
    # Only the tiny activation is cast per call; the heavy weight is pre-packed.
    x2d = (jnp.transpose(x_nchw, (0, 2, 3, 1))
           .reshape(N * H * W, C_in)
           .astype(w_packed.dtype))
    M, K = x2d.shape

    bytes_accessed = (
        x2d.size * x2d.dtype.itemsize
        + w_packed.size * w_packed.dtype.itemsize
        + b_packed.size * b_packed.dtype.itemsize
        + M * C_out * 4
    )
    cost = pl.CostEstimate(
        flops=2 * M * K * C_out,
        transcendentals=0,
        bytes_accessed=bytes_accessed,
    )

    # Single whole-array invocation (no grid): operands total ~1.3 MB, well
    # under the default scoped-VMEM limit on every generation, so there is
    # nothing to pipeline and tiling would only add per-step overhead.
    out2d = pl.pallas_call(
        _conv1x1_kernel,
        out_shape=jax.ShapeDtypeStruct((M, C_out), jnp.float32),
        in_specs=[
            pl.BlockSpec(memory_space=pltpu.MemorySpace.VMEM),
            pl.BlockSpec(memory_space=pltpu.MemorySpace.VMEM),
            pl.BlockSpec(memory_space=pltpu.MemorySpace.VMEM),
        ],
        out_specs=pl.BlockSpec(memory_space=pltpu.MemorySpace.VMEM),
        cost_estimate=cost,
    )(x2d, w_packed, b_packed)

    # Back to NCHW (folds into the output copy under jit).
    return jnp.transpose(out2d.reshape(N, H, W, C_out), (0, 3, 1, 2))


if __name__ == "__main__":
    key = jax.random.PRNGKey(0)
    k_x, k_w, k_b = jax.random.split(key, 3)

    # Shapes implied by the module: Conv2d(3840, 160, 1x1) on [1, 3840, 1, 1].
    N, C_in, H, W = 1, 3840, 1, 1
    C_out = 160

    x = jax.random.normal(k_x, (N, C_in, H, W), dtype=jnp.float32)

    # Deterministic parameter init (mimics PyTorch's uniform(-1/sqrt(fan_in), ...)).
    fan_in = C_in * 1 * 1
    bound = 1.0 / (fan_in ** 0.5)
    weight = jax.random.uniform(k_w, (C_out, C_in, 1, 1), dtype=jnp.float32,
                                minval=-bound, maxval=bound)
    bias = jax.random.uniform(k_b, (C_out,), dtype=jnp.float32,
                              minval=-bound, maxval=bound)

    # One-time pack (parameter-load time), then the jitted forward.
    w_packed, b_packed = pack_conv1x1_params(weight, bias)

    out = conv2d_1x1(x, w_packed, b_packed)
    jax.block_until_ready(out)
    assert out.shape == (N, C_out, H, W)
    assert out.dtype == jnp.float32

    # Tight check: reference using the same bf16-quantized operands, f32 accumulate.
    w2d = weight.reshape(C_out, C_in)
    x_bf = x.reshape(N, C_in).astype(jnp.bfloat16)
    w_bf = w2d.astype(jnp.bfloat16)
    ref_bf16 = (jnp.dot(x_bf, w_bf.T, preferred_element_type=jnp.float32)
                + bias).reshape(N, C_out, H, W)
    assert jnp.allclose(out, ref_bf16, atol=2e-3, rtol=2e-3)

    # Looser check against the full-f32 module semantics (bf16 operand cast).
    ref_f32 = (x.reshape(N, C_in) @ w2d.T + bias).reshape(N, C_out, H, W)
    assert jnp.allclose(out, ref_f32, atol=5e-2, rtol=5e-2)

    print("KERNEL_OK")
</pallas_src>

<mosaic_0001>
module attributes {stable_mosaic.version = 11 : i64} {
  func.func @_conv1x1_kernel(%arg0: memref<1x3840xbf16, #tpu.memory_space<vmem>>, %arg1: memref<3840x160xbf16, #tpu.memory_space<vmem>>, %arg2: memref<1x160xf32, #tpu.memory_space<vmem>>, %arg3: memref<1x160xf32, #tpu.memory_space<vmem>>) attributes {dimension_semantics = [], scalar_prefetch = 0 : i64, scratch_operands = 0 : i64, tpu.core_type = #tpu.core_type<tc>} {
    %c0 = arith.constant 0 : index
    %c0_0 = arith.constant 0 : index
    %0 = vector.load %arg0[%c0, %c0_0] : memref<1x3840xbf16, #tpu.memory_space<vmem>>, vector<1x3840xbf16>
    %c0_1 = arith.constant 0 : index
    %c0_2 = arith.constant 0 : index
    %1 = vector.load %arg1[%c0_1, %c0_2] : memref<3840x160xbf16, #tpu.memory_space<vmem>>, vector<3840x160xbf16>
    %cst = arith.constant dense<0.000000e+00> : vector<1x160xf32>
    %2 = tpu.matmul %0, %1, %cst {dimension_numbers = #tpu.dot_dimension_numbers<[1], [0], [0], [1], [0, 0, 1, 1], [], []>} : vector<1x3840xbf16>, vector<3840x160xbf16>, vector<1x160xf32> -> vector<1x160xf32>
    %c0_3 = arith.constant 0 : index
    %c0_4 = arith.constant 0 : index
    %3 = vector.load %arg2[%c0_3, %c0_4] : memref<1x160xf32, #tpu.memory_space<vmem>>, vector<1x160xf32>
    %4 = arith.addf %2, %3 : vector<1x160xf32>
    %c0_5 = arith.constant 0 : index
    %c0_6 = arith.constant 0 : index
    %5 = vector.load %arg3[%c0_5, %c0_6] : memref<1x160xf32, #tpu.memory_space<vmem>>, vector<1x160xf32>
    tpu.vector_store %arg3[%c0_5, %c0_6], %4 {strides = array<i32>} : memref<1x160xf32, #tpu.memory_space<vmem>>, vector<1x160xf32>,
    return
  }
}

</mosaic_0001>

<bundles_post_ra>
// kernel: conv2d_1x1.1
= control target key start
LH: loop header
LB: loop body
LE: loop exit
PB: predicated region body
PF: predicated region fallthrough
CT: control target
= control target key end

     0   :  { %s9262_s0 = inlined_call_operand.vmem [shape: bf16[1,3840], index: 0, kind: input, shape index: {}]   ;;  %s9263_s1 = inlined_call_operand.vmem [shape: bf16[3840,160], index: 1, kind: input, shape index: {}]   ;;  %s9264_s2 = inlined_call_operand.vmem [shape: f32[1,160], index: 2, kind: input, shape index: {}]   ;;  %s9265_s3 = inlined_call_operand.hbm [shape: f32[1,160], index: 3, kind: output, shape index: {}]  }
   0x1   :  { %v3838_v0 = vld [vmem:[%s9263_s1 + $0x70] sm:$0xf]  ;;  %v5715_v1 = vld [vmem:[%s9263_s1 + $0x74] sm:$0xf0]  ;;  %v3830_v11 = vld [vmem:[%s9263_s1 + $0x60] sm:$0xf] }
   0x2   :  { %v3902_v2 = vld [vmem:[%s9263_s1 + $0xf0] sm:$0xf]  ;;  %v3839_v3 = vor.u32 %v5715_v1, %v3838_v0  ;;  %v5731_v4 = vld [vmem:[%s9263_s1 + $0xf4] sm:$0xf0]  ;;  %v5713_v13 = vld [vmem:[%s9263_s1 + $0x64] sm:$0xf0] }
   0x3   :  { %v3966_v5 = vld [vmem:[%s9263_s1 + $0x170] sm:$0xf]  ;;  %v5747_v6 = vld [vmem:[%s9263_s1 + $0x174] sm:$0xf0]  ;;  %v3903_v7 = vor.u32 %v5731_v4, %v3902_v2  ;;  %v3894_v14 = vld [vmem:[%s9263_s1 + $0xe0] sm:$0xf]  ;;  %v3831_v16 = vor.u32 %v5713_v13, %v3830_v11 }
   0x4   :  { %v3967_v8 = vor.u32 %v5747_v6, %v3966_v5  ;;  %v4030_v9 = vld [vmem:[%s9263_s1 + $0x1f0] sm:$0xf]  ;;  %v5763_v10 = vld [vmem:[%s9263_s1 + $0x1f4] sm:$0xf0]  ;;  %2973 = vmatpush.bf16.msra.mxu0 %v3839_v3  ;;  %v5729_v15 = vld [vmem:[%s9263_s1 + $0xe4] sm:$0xf0] }
   0x5   :  { %v4031_v12 = vor.u32 %v5763_v10, %v4030_v9  ;;  %2986 = vmatpush.bf16.msra.mxu1 %v3903_v7  ;;  %v3895_v17 = vor.u32 %v5729_v15, %v3894_v14  ;;  %v3958_v18 = vld [vmem:[%s9263_s1 + $0x160] sm:$0xf]  ;;  %v5745_v19 = vld [vmem:[%s9263_s1 + $0x164] sm:$0xf0]  ;;  %v3822_v23 = vld [vmem:[%s9263_s1 + $0x50] sm:$0xf] }
   0x6   :  { %2999 = vmatpush.bf16.msra.mxu2 %v3967_v8  ;;  %v4022_v20 = vld [vmem:[%s9263_s1 + $0x1e0] sm:$0xf]  ;;  %v3959_v21 = vor.u32 %v5745_v19, %v3958_v18  ;;  %v5761_v22 = vld [vmem:[%s9263_s1 + $0x1e4] sm:$0xf0]  ;;  %v5711_v24 = vld [vmem:[%s9263_s1 + $0x54] sm:$0xf0] }
   0x7   :  { %3012 = vmatpush.bf16.msra.mxu3 %v4031_v12  ;;  %v4023_v25 = vor.u32 %v5761_v22, %v4022_v20  ;;  %v3886_v26 = vld [vmem:[%s9263_s1 + $0xd0] sm:$0xf]  ;;  %v5727_v27 = vld [vmem:[%s9263_s1 + $0xd4] sm:$0xf0]  ;;  %v3823_v29 = vor.u32 %v5711_v24, %v3822_v23  ;;  %v3814_v35 = vld [vmem:[%s9263_s1 + $0x40] sm:$0xf] }
   0x8   :  { %v3950_v28 = vld [vmem:[%s9263_s1 + $0x150] sm:$0xf]  ;;  %2974 = vmatpush.bf16.msra.mxu0 %v3831_v16  ;;  %v5743_v30 = vld [vmem:[%s9263_s1 + $0x154] sm:$0xf0]  ;;  %v3887_v33 = vor.u32 %v5727_v27, %v3886_v26  ;;  %v5709_v36 = vld [vmem:[%s9263_s1 + $0x44] sm:$0xf0] }
   0x9   :  { %v4014_v31 = vld [vmem:[%s9263_s1 + $0x1d0] sm:$0xf]  ;;  %v5759_v32 = vld [vmem:[%s9263_s1 + $0x1d4] sm:$0xf0]  ;;  %2987 = vmatpush.bf16.msra.mxu1 %v3895_v17  ;;  %v3951_v34 = vor.u32 %v5743_v30, %v3950_v28  ;;  %v3878_v37 = vld [vmem:[%s9263_s1 + $0xc0] sm:$0xf]  ;;  %v3815_v44 = vor.u32 %v5709_v36, %v3814_v35 }
   0xa   :  { %3000 = vmatpush.bf16.msra.mxu2 %v3959_v21  ;;  %v4015_v38 = vor.u32 %v5759_v32, %v4014_v31  ;;  %v5725_v39 = vld [vmem:[%s9263_s1 + $0xc4] sm:$0xf0]  ;;  %v3942_v40 = vld [vmem:[%s9263_s1 + $0x140] sm:$0xf]  ;;  %v3806_v47 = vld [vmem:[%s9263_s1 + $0x30] sm:$0xf] }
   0xb   :  { %3013 = vmatpush.bf16.msra.mxu3 %v4023_v25  ;;  %v5741_v41 = vld [vmem:[%s9263_s1 + $0x144] sm:$0xf0]  ;;  %v4006_v42 = vld [vmem:[%s9263_s1 + $0x1c0] sm:$0xf]  ;;  %v3879_v45 = vor.u32 %v5725_v39, %v3878_v37  ;;  %v5707_v48 = vld [vmem:[%s9263_s1 + $0x34] sm:$0xf0] }
   0xc   :  { %v5757_v43 = vld [vmem:[%s9263_s1 + $0x1c4] sm:$0xf0]  ;;  %2975 = vmatpush.bf16.msra.mxu0 %v3823_v29  ;;  %v3943_v46 = vor.u32 %v5741_v41, %v3942_v40  ;;  %v3870_v49 = vld [vmem:[%s9263_s1 + $0xb0] sm:$0xf]  ;;  %v5723_v51 = vld [vmem:[%s9263_s1 + $0xb4] sm:$0xf0]  ;;  %v3807_v56 = vor.u32 %v5707_v48, %v3806_v47 }
   0xd   :  { %2988 = vmatpush.bf16.msra.mxu1 %v3887_v33  ;;  %v4007_v50 = vor.u32 %v5757_v43, %v4006_v42  ;;  %v3934_v52 = vld [vmem:[%s9263_s1 + $0x130] sm:$0xf]  ;;  %v5739_v53 = vld [vmem:[%s9263_s1 + $0x134] sm:$0xf0]  ;;  %v3871_v57 = vor.u32 %v5723_v51, %v3870_v49  ;;  %v3798_v59 = vld [vmem:[%s9263_s1 + $0x20] sm:$0xf] }
   0xe   :  { %3001 = vmatpush.bf16.msra.mxu2 %v3951_v34  ;;  %v3998_v54 = vld [vmem:[%s9263_s1 + $0x1b0] sm:$0xf]  ;;  %v5755_v55 = vld [vmem:[%s9263_s1 + $0x1b4] sm:$0xf0]  ;;  %v3935_v58 = vor.u32 %v5739_v53, %v3934_v52  ;;  %v5705_v60 = vld [vmem:[%s9263_s1 + $0x24] sm:$0xf0] }
   0xf   :  { %3014 = vmatpush.bf16.msra.mxu3 %v4015_v38  ;;  %v3862_v61 = vld [vmem:[%s9263_s1 + $0xa0] sm:$0xf]  ;;  %v3999_v62 = vor.u32 %v5755_v55, %v3998_v54  ;;  %v5721_v63 = vld [vmem:[%s9263_s1 + $0xa4] sm:$0xf0]  ;;  %v3799_v4 = vor.u32 %v5705_v60, %v3798_v59  ;;  %v3790_v7 = vld [vmem:[%s9263_s1 + $0x10] sm:$0xf] }
  0x10   :  { %2976 = vmatpush.bf16.msra.mxu0 %v3815_v44  ;;  %v3926_v0 = vld [vmem:[%s9263_s1 + $0x120] sm:$0xf]  ;;  %v5737_v1 = vld [vmem:[%s9263_s1 + $0x124] sm:$0xf0]  ;;  %v3863_v5 = vor.u32 %v5721_v63, %v3862_v61  ;;  %v5703_v8 = vld [vmem:[%s9263_s1 + $0x14] sm:$0xf0] }
  0x11   :  { %2989 = vmatpush.bf16.msra.mxu1 %v3879_v45  ;;  %v3990_v2 = vld [vmem:[%s9263_s1 + $0x1a0] sm:$0xf]  ;;  %v5753_v3 = vld [vmem:[%s9263_s1 + $0x1a4] sm:$0xf0]  ;;  %v3927_v6 = vor.u32 %v5737_v1, %v3926_v0  ;;  %v3854_v9 = vld [vmem:[%s9263_s1 + $0x90] sm:$0xf]  ;;  %v3791_v16 = vor.u32 %v5703_v8, %v3790_v7 }
  0x12   :  { %3002 = vmatpush.bf16.msra.mxu2 %v3943_v46  ;;  %v3991_v10 = vor.u32 %v5753_v3, %v3990_v2  ;;  %v5719_v11 = vld [vmem:[%s9263_s1 + $0x94] sm:$0xf0]  ;;  %v3918_v12 = vld [vmem:[%s9263_s1 + $0x110] sm:$0xf]  ;;  %v3782_v17 = vld [vmem:[%s9263_s1] sm:$0xf] }
  0x13   :  { %3015 = vmatpush.bf16.msra.mxu3 %v4007_v50  ;;  %v5735_v13 = vld [vmem:[%s9263_s1 + $0x114] sm:$0xf0]  ;;  %v3982_v14 = vld [vmem:[%s9263_s1 + $0x190] sm:$0xf]  ;;  %v5701_v18 = vld [vmem:[%s9263_s1 + $0x4] sm:$0xf0]  ;;  %v3855_v19 = vor.u32 %v5719_v11, %v3854_v9 }
  0x14   :  { %2977 = vmatpush.bf16.msra.mxu0 %v3807_v56  ;;  %v5751_v15 = vld [vmem:[%s9263_s1 + $0x194] sm:$0xf0]  ;;  %v3919_v20 = vor.u32 %v5735_v13, %v3918_v12  ;;  %v3846_v21 = vld [vmem:[%s9263_s1 + $0x80] sm:$0xf]  ;;  %v5717_v22 = vld [vmem:[%s9263_s1 + $0x84] sm:$0xf0]  ;;  %v3783_v31 = vor.u32 %v5701_v18, %v3782_v17 }
  0x15   :  { %2990 = vmatpush.bf16.msra.mxu1 %v3871_v57  ;;  %v3910_v23 = vld [vmem:[%s9263_s1 + $0x100] sm:$0xf]  ;;  %v3983_v24 = vor.u32 %v5751_v15, %v3982_v14  ;;  %v5733_v25 = vld [vmem:[%s9263_s1 + $0x104] sm:$0xf0]  ;;  %v4094_v28 = vld [vmem:[%s9263_s1 + $0x270] sm:$0xf]  ;;  %v3847_v35 = vor.u32 %v5717_v22, %v3846_v21 }
  0x16   :  { %3003 = vmatpush.bf16.msra.mxu2 %v3935_v58  ;;  %v3974_v26 = vld [vmem:[%s9263_s1 + $0x180] sm:$0xf]  ;;  %v5749_v27 = vld [vmem:[%s9263_s1 + $0x184] sm:$0xf0]  ;;  %v5779_v29 = vld [vmem:[%s9263_s1 + $0x274] sm:$0xf0]  ;;  %v3911_v36 = vor.u32 %v5733_v25, %v3910_v23 }
  0x17   :  { %3016 = vmatpush.bf16.msra.mxu3 %v3999_v62  ;;  %v4158_v30 = vld [vmem:[%s9263_s1 + $0x2f0] sm:$0xf]  ;;  %v5795_v32 = vld [vmem:[%s9263_s1 + $0x2f4] sm:$0xf0]  ;;  %v3975_v39 = vor.u32 %v5749_v27, %v3974_v26  ;;  %v4095_v40 = vor.u32 %v5779_v29, %v4094_v28  ;;  %v4086_v43 = vld [vmem:[%s9263_s1 + $0x260] sm:$0xf] }
  0x18   :  { %2978 = vmatpush.bf16.msra.mxu0 %v3799_v4  ;;  %v4222_v33 = vld [vmem:[%s9263_s1 + $0x370] sm:$0xf]  ;;  %v5811_v34 = vld [vmem:[%s9263_s1 + $0x374] sm:$0xf0]  ;;  %v4159_v41 = vor.u32 %v5795_v32, %v4158_v30  ;;  %v5777_v44 = vld [vmem:[%s9263_s1 + $0x264] sm:$0xf0] }
  0x19   :  { %2991 = vmatpush.bf16.msra.mxu1 %v3863_v5  ;;  %v4286_v37 = vld [vmem:[%s9263_s1 + $0x3f0] sm:$0xf]  ;;  %v5827_v38 = vld [vmem:[%s9263_s1 + $0x3f4] sm:$0xf0]  ;;  %v4223_v42 = vor.u32 %v5811_v34, %v4222_v33  ;;  %v4150_v45 = vld [vmem:[%s9263_s1 + $0x2e0] sm:$0xf]  ;;  %v4087_v52 = vor.u32 %v5777_v44, %v4086_v43 }
  0x1a   :  { %3004 = vmatpush.bf16.msra.mxu2 %v3927_v6  ;;  %v4287_v46 = vor.u32 %v5827_v38, %v4286_v37  ;;  %v5793_v47 = vld [vmem:[%s9263_s1 + $0x2e4] sm:$0xf0]  ;;  %v4214_v48 = vld [vmem:[%s9263_s1 + $0x360] sm:$0xf]  ;;  %v4078_v53 = vld [vmem:[%s9263_s1 + $0x250] sm:$0xf] }
  0x1b   :  { %3017 = vmatpush.bf16.msra.mxu3 %v3991_v10  ;;  %v5809_v49 = vld [vmem:[%s9263_s1 + $0x364] sm:$0xf0]  ;;  %v4278_v50 = vld [vmem:[%s9263_s1 + $0x3e0] sm:$0xf]  ;;  %v5775_v54 = vld [vmem:[%s9263_s1 + $0x254] sm:$0xf0]  ;;  %v4151_v55 = vor.u32 %v5793_v47, %v4150_v45 }
  0x1c   :  { %2979 = vmatpush.bf16.msra.mxu0 %v3791_v16  ;;  %v5825_v51 = vld [vmem:[%s9263_s1 + $0x3e4] sm:$0xf0]  ;;  %v4215_v56 = vor.u32 %v5809_v49, %v4214_v48  ;;  %v4142_v57 = vld [vmem:[%s9263_s1 + $0x2d0] sm:$0xf]  ;;  %v5791_v58 = vld [vmem:[%s9263_s1 + $0x2d4] sm:$0xf0]  ;;  %v4079_v1 = vor.u32 %v5775_v54, %v4078_v53 }
  0x1d   :  { %2992 = vmatpush.bf16.msra.mxu1 %v3855_v19  ;;  %v15_v59 = vld [vmem:[%s9262_s0] sm:$0xff]  ;;  %v4279_v60 = vor.u32 %v5825_v51, %v4278_v50  ;;  %v4206_v61 = vld [vmem:[%s9263_s1 + $0x350] sm:$0xf]  ;;  %v5807_v62 = vld [vmem:[%s9263_s1 + $0x354] sm:$0xf0]  ;;  %v4143_v2 = vor.u32 %v5791_v58, %v4142_v57 }
  0x1e   :  { %3005 = vmatpush.bf16.msra.mxu2 %v3919_v20  ;;  %501 = vst [vmem:[#allocation1] ss:$9 sm:$0xff] %v15_v59  ;;  %v4270_v63 = vld [vmem:[%s9263_s1 + $0x3d0] sm:$0xf]  ;;  %v5823_v0 = vld [vmem:[%s9263_s1 + $0x3d4] sm:$0xf0]  ;;  %v4207_v3 = vor.u32 %v5807_v62, %v4206_v61 }
  0x1f   :  { %3018 = vmatpush.bf16.msra.mxu3 %v3983_v24  ;;  %v4070_v4 = vld [vmem:[%s9263_s1 + $0x240] sm:$0xf]  ;;  %v5773_v5 = vld [vmem:[%s9263_s1 + $0x244] sm:$0xf0]  ;;  %v4271_v7 = vor.u32 %v5823_v0, %v4270_v63  ;;  %v4062_v13 = vld [vmem:[%s9263_s1 + $0x230] sm:$0xf] }
  0x20   :  { %2980 = vmatpush.bf16.msra.mxu0 %v3783_v31  ;;  %v4134_v6 = vld [vmem:[%s9263_s1 + $0x2c0] sm:$0xf]  ;;  %v5789_v8 = vld [vmem:[%s9263_s1 + $0x2c4] sm:$0xf0]  ;;  %v4071_v14 = vor.u32 %v5773_v5, %v4070_v4  ;;  %v5771_v15 = vld [vmem:[%s9263_s1 + $0x234] sm:$0xf0] }
  0x21   :  { %2993 = vmatpush.bf16.msra.mxu1 %v3847_v35  ;;  %v4198_v9 = vld [vmem:[%s9263_s1 + $0x340] sm:$0xf]  ;;  %v5805_v10 = vld [vmem:[%s9263_s1 + $0x344] sm:$0xf0]  ;;  %v4126_v16 = vld [vmem:[%s9263_s1 + $0x2b0] sm:$0xf]  ;;  %v4135_v18 = vor.u32 %v5789_v8, %v4134_v6  ;;  %v4063_v29 = vor.u32 %v5771_v15, %v4062_v13 }
  0x22   :  { %3006 = vmatpush.bf16.msra.mxu2 %v3911_v36  ;;  %v4262_v11 = vld [vmem:[%s9263_s1 + $0x3c0] sm:$0xf]  ;;  %v5821_v12 = vld [vmem:[%s9263_s1 + $0x3c4] sm:$0xf0]  ;;  %v5787_v17 = vld [vmem:[%s9263_s1 + $0x2b4] sm:$0xf0]  ;;  %v4199_v19 = vor.u32 %v5805_v10, %v4198_v9 }
  0x23   :  { %3019 = vmatpush.bf16.msra.mxu3 %v3975_v39  ;;  %v4263_v23 = vor.u32 %v5821_v12, %v4262_v11  ;;  %v4190_v24 = vld [vmem:[%s9263_s1 + $0x330] sm:$0xf]  ;;  %v5803_v25 = vld [vmem:[%s9263_s1 + $0x334] sm:$0xf0]  ;;  %v4127_v30 = vor.u32 %v5787_v17, %v4126_v16  ;;  %v4054_v32 = vld [vmem:[%s9263_s1 + $0x220] sm:$0xf] }
  0x24   :  { %3025 = vmatpush.bf16.msrb.mxu0 %v4095_v40  ;;  %v4254_v27 = vld [vmem:[%s9263_s1 + $0x3b0] sm:$0xf]  ;;  %v5819_v28 = vld [vmem:[%s9263_s1 + $0x3b4] sm:$0xf0]  ;;  %v4191_v31 = vor.u32 %v5803_v25, %v4190_v24  ;;  %v5769_v33 = vld [vmem:[%s9263_s1 + $0x224] sm:$0xf0] }
  0x25   :  { %3038 = vmatpush.bf16.msrb.mxu1 %v4159_v41  ;;  %v6538_v20 = vld [vmem:[#allocation1 + $0x12] sm:$0xff]  ;;  %v6540_v21 = vld [vmem:[#allocation1] sm:$0xff]  ;;  %v6551_v26 = vld [vmem:[#allocation1 + $0x9] sm:$0xff]  ;;  %v4255_v35 = vor.u32 %v5819_v28, %v4254_v27  ;;  %v4055_v41 = vor.u32 %v5769_v33, %v4054_v32 }
  0x26   :  { %3051 = vmatpush.bf16.msrb.mxu2 %v4223_v42  ;;  %v6542_v22 = vld [vmem:[#allocation1 + $0x1b] sm:$0xff]  ;;  %2981 = vmatmul.bf16.vlgmr.msra.gmra.mxu0 %v6540_v21  ;;  %v5785_v36 = vld [vmem:[%s9263_s1 + $0x2a4] sm:$0xf0]  ;;  %v4046_v42 = vld [vmem:[%s9263_s1 + $0x210] sm:$0xf] }
  0x27   :  { %3064 = vmatpush.bf16.msrb.mxu3 %v4287_v46  ;;  %3007 = vmatmul.bf16.vlgmr.msra.gmra.mxu2 %v6538_v20  ;;  %v4118_v34 = vld [vmem:[%s9263_s1 + $0x2a0] sm:$0xf]  ;;  %v5801_v38 = vld [vmem:[%s9263_s1 + $0x324] sm:$0xf0]  ;;  %v5767_v45 = vld [vmem:[%s9263_s1 + $0x214] sm:$0xf0] }
  0x28   :  { %3026 = vmatpush.bf16.msrb.mxu0 %v4087_v52  ;;  %3020 = vmatmul.bf16.vlgmr.msra.gmra.mxu3 %v6542_v22  ;;  %v4182_v37 = vld [vmem:[%s9263_s1 + $0x320] sm:$0xf]  ;;  %v5817_v40 = vld [vmem:[%s9263_s1 + $0x3a4] sm:$0xf0]  ;;  %v4119_v43 = vor.u32 %v5785_v36, %v4118_v34  ;;  %v4110_v46 = vld [vmem:[%s9263_s1 + $0x290] sm:$0xf] }
  0x29   :  { %3039 = vmatpush.bf16.msrb.mxu1 %v4151_v55  ;;  %v4246_v39 = vld [vmem:[%s9263_s1 + $0x3a0] sm:$0xf]  ;;  %v4183_v44 = vor.u32 %v5801_v38, %v4182_v37  ;;  %v5783_v47 = vld [vmem:[%s9263_s1 + $0x294] sm:$0xf0]  ;;  %v4174_v49 = vld [vmem:[%s9263_s1 + $0x310] sm:$0xf]  ;;  %v4047_v55 = vor.u32 %v5767_v45, %v4046_v42 }
  0x2a   :  { %3052 = vmatpush.bf16.msrb.mxu2 %v4215_v56  ;;  %2994 = vmatmul.bf16.vlgmr.msra.gmra.mxu1 %v6551_v26  ;;  %v4247_v48 = vor.u32 %v5817_v40, %v4246_v39  ;;  %v5799_v50 = vld [vmem:[%s9263_s1 + $0x314] sm:$0xf0]  ;;  %v4238_v51 = vld [vmem:[%s9263_s1 + $0x390] sm:$0xf]  ;;  %v4038_v53 = vld [vmem:[%s9263_s1 + $0x200] sm:$0xf]  ;;  %v4111_v62 = vor.u32 %v5783_v47, %v4110_v46 }
  0x2b   :  { %3065 = vmatpush.bf16.msrb.mxu3 %v4279_v60  ;;  %v5815_v52 = vld [vmem:[%s9263_s1 + $0x394] sm:$0xf0]  ;;  %v5765_v54 = vld [vmem:[%s9263_s1 + $0x204] sm:$0xf0]  ;;  %v4102_v56 = vld [vmem:[%s9263_s1 + $0x280] sm:$0xf]  ;;  %v4175_v63 = vor.u32 %v5799_v50, %v4174_v49 }
  0x2c   :  { %3027 = vmatpush.bf16.msrb.mxu0 %v4079_v1  ;;  %v5781_v57 = vld [vmem:[%s9263_s1 + $0x284] sm:$0xf0]  ;;  %v4166_v58 = vld [vmem:[%s9263_s1 + $0x300] sm:$0xf]  ;;  %v6628_v60 = vld [vmem:[#allocation1 + $0x36] sm:$0xff]  ;;  %v4039_v9 = vor.u32 %v5765_v54, %v4038_v53 }
  0x2d   :  { %3040 = vmatpush.bf16.msrb.mxu1 %v4143_v2  ;;  %v5797_v59 = vld [vmem:[%s9263_s1 + $0x304] sm:$0xf0]  ;;  %v6635_v1 = vld [vmem:[#allocation1 + $0x3f] sm:$0xff]  ;;  %v6637_v2 = vld [vmem:[#allocation1 + $0x2d] sm:$0xff]  ;;  %v4103_v13 = vor.u32 %v5781_v57, %v4102_v56 }
  0x2e   :  { %3053 = vmatpush.bf16.msrb.mxu2 %v4207_v3  ;;  %v16_v61 = vld [vmem:[%s9262_s0 + $0x8] sm:$0xff]  ;;  %v4239_v3 = vor.u32 %v5815_v52, %v4238_v51  ;;  %v4230_v4 = vld [vmem:[%s9263_s1 + $0x380] sm:$0xf]  ;;  %v4350_v6 = vld [vmem:[%s9263_s1 + $0x470] sm:$0xf] }
  0x2f   :  { %3066 = vmatpush.bf16.msrb.mxu3 %v4271_v7  ;;  %v6633_v0 = vld [vmem:[#allocation1 + $0x24] sm:$0xff]  ;;  %v5843_v7 = vld [vmem:[%s9263_s1 + $0x474] sm:$0xf0]  ;;  %v4414_v8 = vld [vmem:[%s9263_s1 + $0x4f0] sm:$0xf] }
  0x30   :  { %3028 = vmatpush.bf16.msrb.mxu0 %v4071_v14  ;;  %v5813_v5 = vld [vmem:[%s9263_s1 + $0x384] sm:$0xf0]  ;;  %511 = vst [vmem:[#allocation1] ss:$9 sm:$0xff] %v16_v61  ;;  %v5859_v10 = vld [vmem:[%s9263_s1 + $0x4f4] sm:$0xf0]  ;;  %v4167_v14 = vor.u32 %v5797_v59, %v4166_v58 }
  0x31   :  { %3041 = vmatpush.bf16.msrb.mxu1 %v4135_v18  ;;  %v4478_v11 = vld [vmem:[%s9263_s1 + $0x570] sm:$0xf]  ;;  %v5875_v12 = vld [vmem:[%s9263_s1 + $0x574] sm:$0xf0]  ;;  %v4231_v17 = vor.u32 %v5813_v5, %v4230_v4  ;;  %v4351_v18 = vor.u32 %v5843_v7, %v4350_v6  ;;  %v4342_v24 = vld [vmem:[%s9263_s1 + $0x460] sm:$0xf] }
  0x32   :  { %3054 = vmatpush.bf16.msrb.mxu2 %v4199_v19  ;;  %v4542_v15 = vld [vmem:[%s9263_s1 + $0x5f0] sm:$0xf]  ;;  %v5891_v16 = vld [vmem:[%s9263_s1 + $0x5f4] sm:$0xf0]  ;;  %v4415_v19 = vor.u32 %v5859_v10, %v4414_v8  ;;  %v5841_v25 = vld [vmem:[%s9263_s1 + $0x464] sm:$0xf0] }
  0x33   :  { %3067 = vmatpush.bf16.msrb.mxu3 %v4263_v23  ;;  %v4479_v23 = vor.u32 %v5875_v12, %v4478_v11  ;;  %v4406_v27 = vld [vmem:[%s9263_s1 + $0x4e0] sm:$0xf]  ;;  %v4543_v28 = vor.u32 %v5891_v16, %v4542_v15  ;;  %v5889_v33 = vld [vmem:[%s9263_s1 + $0x5e4] sm:$0xf0]  ;;  %v4343_v34 = vor.u32 %v5841_v25, %v4342_v24  ;;  %v4334_v37 = vld [vmem:[%s9263_s1 + $0x450] sm:$0xf] }
  0x34   :  { %3029 = vmatpush.bf16.msrb.mxu0 %v4063_v29  ;;  %v5857_v29 = vld [vmem:[%s9263_s1 + $0x4e4] sm:$0xf0]  ;;  %v4534_v32 = vld [vmem:[%s9263_s1 + $0x5e0] sm:$0xf]  ;;  %v5839_v38 = vld [vmem:[%s9263_s1 + $0x454] sm:$0xf0] }
  0x35   :  { %3042 = vmatpush.bf16.msrb.mxu1 %v4127_v30  ;;  %v4470_v30 = vld [vmem:[%s9263_s1 + $0x560] sm:$0xf]  ;;  %v4398_v39 = vld [vmem:[%s9263_s1 + $0x4d0] sm:$0xf]  ;;  %v4535_v40 = vor.u32 %v5889_v33, %v4534_v32  ;;  %v5887_v45 = vld [vmem:[%s9263_s1 + $0x5d4] sm:$0xf0]  ;;  %v4335_v46 = vor.u32 %v5839_v38, %v4334_v37 }
  0x36   :  { %3055 = vmatpush.bf16.msrb.mxu2 %v4191_v31  ;;  %v5873_v31 = vld [vmem:[%s9263_s1 + $0x564] sm:$0xf0]  ;;  %v4462_v42 = vld [vmem:[%s9263_s1 + $0x550] sm:$0xf]  ;;  %v4326_v49 = vld [vmem:[%s9263_s1 + $0x440] sm:$0xf] }
  0x37   :  { %3068 = vmatpush.bf16.msrb.mxu3 %v4255_v35  ;;  %v4407_v35 = vor.u32 %v5857_v29, %v4406_v27  ;;  %v4471_v36 = vor.u32 %v5873_v31, %v4470_v30  ;;  %v5837_v50 = vld [vmem:[%s9263_s1 + $0x444] sm:$0xf0]  ;;  %v4390_v51 = vld [vmem:[%s9263_s1 + $0x4c0] sm:$0xf]  ;;  %v5851_v5 = vld [vmem:[%s9263_s1 + $0x4b4] sm:$0xf0] }
  0x38   :  { %3030 = vmatpush.bf16.msrb.mxu0 %v4055_v41  ;;  %v5855_v41 = vld [vmem:[%s9263_s1 + $0x4d4] sm:$0xf0]  ;;  %v5853_v53 = vld [vmem:[%s9263_s1 + $0x4c4] sm:$0xf0]  ;;  %v4454_v54 = vld [vmem:[%s9263_s1 + $0x540] sm:$0xf]  ;;  %v4327_v58 = vor.u32 %v5837_v50, %v4326_v49 }
  0x39   :  { %3043 = vmatpush.bf16.msrb.mxu1 %v4119_v43  ;;  %v5871_v43 = vld [vmem:[%s9263_s1 + $0x554] sm:$0xf0]  ;;  %v4399_v47 = vor.u32 %v5855_v41, %v4398_v39  ;;  %v4518_v56 = vld [vmem:[%s9263_s1 + $0x5c0] sm:$0xf]  ;;  %v5885_v57 = vld [vmem:[%s9263_s1 + $0x5c4] sm:$0xf0]  ;;  %v4391_v59 = vor.u32 %v5853_v53, %v4390_v51 }
  0x3a   :  { %3056 = vmatpush.bf16.msrb.mxu2 %v4183_v44  ;;  %v4526_v44 = vld [vmem:[%s9263_s1 + $0x5d0] sm:$0xf]  ;;  %v4519_v4 = vor.u32 %v5885_v57, %v4518_v56  ;;  %v5867_v7 = vld [vmem:[%s9263_s1 + $0x534] sm:$0xf0]  ;;  %v4374_v15 = vld [vmem:[%s9263_s1 + $0x4a0] sm:$0xf] }
  0x3b   :  { %3069 = vmatpush.bf16.msrb.mxu3 %v4247_v48  ;;  %v4463_v48 = vor.u32 %v5871_v43, %v4462_v42  ;;  %v4527_v52 = vor.u32 %v5887_v45, %v4526_v44  ;;  %v4446_v6 = vld [vmem:[%s9263_s1 + $0x530] sm:$0xf]  ;;  %v5881_v24 = vld [vmem:[%s9263_s1 + $0x5a4] sm:$0xf0]  ;;  %v5831_v30 = vld [vmem:[%s9263_s1 + $0x414] sm:$0xf0] }
  0x3c   :  { %3031 = vmatpush.bf16.msrb.mxu0 %v4047_v55  ;;  %v5869_v55 = vld [vmem:[%s9263_s1 + $0x544] sm:$0xf0]  ;;  %v4510_v8 = vld [vmem:[%s9263_s1 + $0x5b0] sm:$0xf]  ;;  %v4447_v12 = vor.u32 %v5867_v7, %v4446_v6  ;;  %v5847_v33 = vld [vmem:[%s9263_s1 + $0x494] sm:$0xf0] }
  0x3d   :  { %3044 = vmatpush.bf16.msrb.mxu1 %v4111_v62  ;;  %v4455_v61 = vor.u32 %v5869_v55, %v4454_v54  ;;  %v4318_v62 = vld [vmem:[%s9263_s1 + $0x430] sm:$0xf]  ;;  %v5879_v37 = vld [vmem:[%s9263_s1 + $0x594] sm:$0xf0]  ;;  %v4294_v39 = vld [vmem:[%s9263_s1 + $0x400] sm:$0xf] }
  0x3e   :  { %3057 = vmatpush.bf16.msrb.mxu2 %v4175_v63  ;;  %v5835_v63 = vld [vmem:[%s9263_s1 + $0x434] sm:$0xf0]  ;;  %v4302_v29 = vld [vmem:[%s9263_s1 + $0x410] sm:$0xf]  ;;  %v4358_v43 = vld [vmem:[%s9263_s1 + $0x480] sm:$0xf] }
  0x3f   :  { %3070 = vmatpush.bf16.msrb.mxu3 %v4239_v3  ;;  %v4382_v3 = vld [vmem:[%s9263_s1 + $0x4b0] sm:$0xf]  ;;  %v4319_v10 = vor.u32 %v5835_v63, %v4318_v62  ;;  %v4303_v38 = vor.u32 %v5831_v30, %v4302_v29  ;;  %v5845_v44 = vld [vmem:[%s9263_s1 + $0x484] sm:$0xf0]  ;;  %v4422_v45 = vld [vmem:[%s9263_s1 + $0x500] sm:$0xf] }
  0x40   :  { %3032 = vmatpush.bf16.msrb.mxu0 %v4039_v9  ;;  %v5883_v9 = vld [vmem:[%s9263_s1 + $0x5b4] sm:$0xf0]  ;;  %v4383_v11 = vor.u32 %v5851_v5, %v4382_v3  ;;  %v4366_v31 = vld [vmem:[%s9263_s1 + $0x490] sm:$0xf]  ;;  %v5877_v49 = vld [vmem:[%s9263_s1 + $0x584] sm:$0xf0]  ;;  %v4359_v57 = vor.u32 %v5845_v44, %v4358_v43 }
  0x41   :  { %3045 = vmatpush.bf16.msrb.mxu1 %v4103_v13  ;;  %v4310_v13 = vld [vmem:[%s9263_s1 + $0x420] sm:$0xf]  ;;  %v4511_v16 = vor.u32 %v5883_v9, %v4510_v8  ;;  %v4367_v41 = vor.u32 %v5847_v33, %v4366_v31  ;;  %v4606_v50 = vld [vmem:[%s9263_s1 + $0x670] sm:$0xf]  ;;  %v5907_v51 = vld [vmem:[%s9263_s1 + $0x674] sm:$0xf0] }
  0x42   :  { %3058 = vmatpush.bf16.msrb.mxu2 %v4167_v14  ;;  %v5833_v14 = vld [vmem:[%s9263_s1 + $0x424] sm:$0xf0]  ;;  %v5923_v54 = vld [vmem:[%s9263_s1 + $0x6f4] sm:$0xf0]  ;;  %v4734_v55 = vld [vmem:[%s9263_s1 + $0x770] sm:$0xf]  ;;  %v4607_v63 = vor.u32 %v5907_v51, %v4606_v50 }
  0x43   :  { %3071 = vmatpush.bf16.msrb.mxu3 %v4231_v17  ;;  %3033 = vmatmul.bf16.vlgmr.msrb.gmra.mxu0 %v6633_v0  ;;  %v5849_v17 = vld [vmem:[%s9263_s1 + $0x4a4] sm:$0xf0]  ;;  %v4311_v25 = vor.u32 %v5833_v14, %v4310_v13  ;;  %v5939_v56 = vld [vmem:[%s9263_s1 + $0x774] sm:$0xf0]  ;;  %v4598_v5 = vld [vmem:[%s9263_s1 + $0x660] sm:$0xf] }
  0x44   :  { %3077 = vmatpush.bf16.msra.mxu0 %v4351_v18  ;;  %3046 = vmatmul.bf16.vlgmr.msrb.gmra.mxu1 %v6637_v2  ;;  %v4438_v18 = vld [vmem:[%s9263_s1 + $0x520] sm:$0xf]  ;;  %v4375_v27 = vor.u32 %v5849_v17, %v4374_v15  ;;  %v5905_v6 = vld [vmem:[%s9263_s1 + $0x664] sm:$0xf0]  ;;  %v6891_v15 = vld [vmem:[#allocation1 + $0x12] sm:$0xff] }
  0x45   :  { %3090 = vmatpush.bf16.msra.mxu1 %v4415_v19  ;;  %3059 = vmatmul.bf16.vlgmr.msrb.gmra.mxu2 %v6628_v60  ;;  %v5865_v19 = vld [vmem:[%s9263_s1 + $0x524] sm:$0xf0]  ;;  %v4662_v7 = vld [vmem:[%s9263_s1 + $0x6e0] sm:$0xf]  ;;  %v5919_v29 = vld [vmem:[%s9263_s1 + $0x6d4] sm:$0xf0] }
  0x46   :  { %3103 = vmatpush.bf16.msra.mxu2 %v4479_v23  ;;  %3072 = vmatmul.bf16.vlgmr.msrb.gmra.mxu3 %v6635_v1  ;;  %v4502_v23 = vld [vmem:[%s9263_s1 + $0x5a0] sm:$0xf]  ;;  %v5921_v9 = vld [vmem:[%s9263_s1 + $0x6e4] sm:$0xf0]  ;;  %v4718_v30 = vld [vmem:[%s9263_s1 + $0x750] sm:$0xf] }
  0x47   :  { %3116 = vmatpush.bf16.msra.mxu3 %v4543_v28  ;;  %v4439_v28 = vor.u32 %v5865_v19, %v4438_v18  ;;  %v4503_v32 = vor.u32 %v5881_v24, %v4502_v23  ;;  %v4790_v13 = vld [vmem:[%s9263_s1 + $0x7e0] sm:$0xf]  ;;  %v5953_v14 = vld [vmem:[%s9263_s1 + $0x7e4] sm:$0xf0]  ;;  %v4599_v18 = vor.u32 %v5905_v6, %v4598_v5  ;;  %v4663_v19 = vor.u32 %v5921_v9, %v4662_v7  ;;  %v4590_v24 = vld [vmem:[%s9263_s1 + $0x650] sm:$0xf] }
  0x48   :  { %3078 = vmatpush.bf16.msra.mxu0 %v4343_v34  ;;  %v4430_v34 = vld [vmem:[%s9263_s1 + $0x510] sm:$0xf]  ;;  %v6895_v17 = vld [vmem:[#allocation1 + $0x1b] sm:$0xff]  ;;  %v5933_v43 = vld [vmem:[%s9263_s1 + $0x744] sm:$0xf0] }
  0x49   :  { %3091 = vmatpush.bf16.msra.mxu1 %v4407_v35  ;;  %v5863_v35 = vld [vmem:[%s9263_s1 + $0x514] sm:$0xf0]  ;;  %v4774_v44 = vld [vmem:[%s9263_s1 + $0x7c0] sm:$0xf] }
  0x4a   :  { %3104 = vmatpush.bf16.msra.mxu2 %v4471_v36  ;;  %v4494_v36 = vld [vmem:[%s9263_s1 + $0x590] sm:$0xf]  ;;  %v4431_v42 = vor.u32 %v5863_v35, %v4430_v34  ;;  %v5935_v31 = vld [vmem:[%s9263_s1 + $0x754] sm:$0xf0] }
  0x4b   :  { %3117 = vmatpush.bf16.msra.mxu3 %v4535_v40  ;;  %v5829_v40 = vld [vmem:[%s9263_s1 + $0x404] sm:$0xf0]  ;;  %v5951_v33 = vld [vmem:[%s9263_s1 + $0x7d4] sm:$0xf0] }
  0x4c   :  { %3079 = vmatpush.bf16.msra.mxu0 %v4335_v46  ;;  %v4495_v46 = vor.u32 %v5879_v37, %v4494_v36  ;;  %v4295_v53 = vor.u32 %v5829_v40, %v4294_v39  ;;  %v4719_v36 = vor.u32 %v5935_v31, %v4718_v30  ;;  %v4582_v37 = vld [vmem:[%s9263_s1 + $0x640] sm:$0xf] }
  0x4d   :  { %3092 = vmatpush.bf16.msra.mxu1 %v4399_v47  ;;  %v5861_v47 = vld [vmem:[%s9263_s1 + $0x504] sm:$0xf0]  ;;  %v4646_v39 = vld [vmem:[%s9263_s1 + $0x6c0] sm:$0xf] }
  0x4e   :  { %3105 = vmatpush.bf16.msra.mxu2 %v4463_v48  ;;  %v4486_v48 = vld [vmem:[%s9263_s1 + $0x580] sm:$0xf] }
  0x4f   :  { %3118 = vmatpush.bf16.msra.mxu3 %v4527_v52  ;;  %v4670_v52 = vld [vmem:[%s9263_s1 + $0x6f0] sm:$0xf]  ;;  %v4487_v62 = vor.u32 %v5877_v49, %v4486_v48 }
  0x50   :  { %3080 = vmatpush.bf16.msra.mxu0 %v4327_v58  ;;  %v4423_v58 = vor.u32 %v5861_v47, %v4422_v45  ;;  %v4671_v3 = vor.u32 %v5923_v54, %v4670_v52  ;;  %v5949_v45 = vld [vmem:[%s9263_s1 + $0x7c4] sm:$0xf0] }
  0x51   :  { %3093 = vmatpush.bf16.msra.mxu1 %v4391_v59  ;;  %v4798_v59 = vld [vmem:[%s9263_s1 + $0x7f0] sm:$0xf] }
  0x52   :  { %3106 = vmatpush.bf16.msra.mxu2 %v4455_v61  ;;  %v5955_v61 = vld [vmem:[%s9263_s1 + $0x7f4] sm:$0xf0] }
  0x53   :  { %3119 = vmatpush.bf16.msra.mxu3 %v4519_v4  ;;  %v4735_v4 = vor.u32 %v5939_v56, %v4734_v55  ;;  %v4799_v8 = vor.u32 %v5955_v61, %v4798_v59 }
  0x54   :  { %3081 = vmatpush.bf16.msra.mxu0 %v4319_v10  ;;  %v4726_v10 = vld [vmem:[%s9263_s1 + $0x760] sm:$0xf] }
  0x55   :  { %3094 = vmatpush.bf16.msra.mxu1 %v4383_v11  ;;  %v5937_v11 = vld [vmem:[%s9263_s1 + $0x764] sm:$0xf0] }
  0x56   :  { %3107 = vmatpush.bf16.msra.mxu2 %v4447_v12  ;;  %v6883_v12 = vld [vmem:[#allocation1] sm:$0xff]  ;;  %v4727_v23 = vor.u32 %v5937_v11, %v4726_v10 }
  0x57   :  { %3120 = vmatpush.bf16.msra.mxu3 %v4511_v16  ;;  %v6893_v16 = vld [vmem:[#allocation1 + $0x9] sm:$0xff] }
  0x58   :  { %3082 = vmatpush.bf16.msra.mxu0 %v4311_v25  ;;  %v5903_v25 = vld [vmem:[%s9263_s1 + $0x654] sm:$0xf0] }
  0x59   :  { %3095 = vmatpush.bf16.msra.mxu1 %v4375_v27  ;;  %v4654_v27 = vld [vmem:[%s9263_s1 + $0x6d0] sm:$0xf]  ;;  %v4591_v34 = vor.u32 %v5903_v25, %v4590_v24 }
  0x5a   :  { %3108 = vmatpush.bf16.msra.mxu2 %v4439_v28  ;;  %v4791_v28 = vor.u32 %v5953_v14, %v4790_v13  ;;  %v4655_v35 = vor.u32 %v5919_v29, %v4654_v27 }
  0x5b   :  { %3121 = vmatpush.bf16.msra.mxu3 %v4503_v32  ;;  %v4782_v32 = vld [vmem:[%s9263_s1 + $0x7d0] sm:$0xf] }
  0x5c   :  { %3083 = vmatpush.bf16.msra.mxu0 %v4303_v38  ;;  %v5901_v38 = vld [vmem:[%s9263_s1 + $0x644] sm:$0xf0]  ;;  %v4783_v40 = vor.u32 %v5951_v33, %v4782_v32 }
  0x5d   :  { %3096 = vmatpush.bf16.msra.mxu1 %v4367_v41  ;;  %v5917_v41 = vld [vmem:[%s9263_s1 + $0x6c4] sm:$0xf0] }
  0x5e   :  { %3109 = vmatpush.bf16.msra.mxu2 %v4431_v42  ;;  %v4710_v42 = vld [vmem:[%s9263_s1 + $0x740] sm:$0xf] }
  0x5f   :  { %3122 = vmatpush.bf16.msra.mxu3 %v4495_v46 }
  0x60   :  { %3084 = vmatpush.bf16.msra.mxu0 %v4295_v53 }
  0x61   :  { %3097 = vmatpush.bf16.msra.mxu1 %v4359_v57 }
  0x62   :  { %3110 = vmatpush.bf16.msra.mxu2 %v4423_v58 }
  0x63   :  { %3123 = vmatpush.bf16.msra.mxu3 %v4487_v62  ;;  %3085 = vmatmul.bf16.vlgmr.msra.gmra.mxu0 %v6883_v12 }
  0x64   :  { %3129 = vmatpush.bf16.msrb.mxu0 %v4607_v63  ;;  %3098 = vmatmul.bf16.vlgmr.msra.gmra.mxu1 %v6893_v16 }
  0x65   :  { %3142 = vmatpush.bf16.msrb.mxu1 %v4671_v3  ;;  %3111 = vmatmul.bf16.vlgmr.msra.gmra.mxu2 %v6891_v15 }
  0x66   :  { %3155 = vmatpush.bf16.msrb.mxu2 %v4735_v4  ;;  %3124 = vmatmul.bf16.vlgmr.msra.gmra.mxu3 %v6895_v17 }
  0x67   :  { %3168 = vmatpush.bf16.msrb.mxu3 %v4799_v8 }
  0x68   :  { %3130 = vmatpush.bf16.msrb.mxu0 %v4599_v18 }
  0x69   :  { %3143 = vmatpush.bf16.msrb.mxu1 %v4663_v19 }
  0x6a   :  { %3156 = vmatpush.bf16.msrb.mxu2 %v4727_v23 }
  0x6b   :  { %3169 = vmatpush.bf16.msrb.mxu3 %v4791_v28 }
  0x6c   :  { %8 = vsyncpa [#allocation3], 0  ;;  %3131 = vmatpush.bf16.msrb.mxu0 %v4591_v34  ;;  %v4583_v46 = vor.u32 %v5901_v38, %v4582_v37  ;;  %v4647_v47 = vor.u32 %v5917_v41, %v4646_v39  ;;  %v4711_v48 = vor.u32 %v5933_v43, %v4710_v42  ;;  %v4574_v49 = vld [vmem:[%s9263_s1 + $0x630] sm:$0xf]  ;;  %v5899_v50 = vld [vmem:[%s9263_s1 + $0x634] sm:$0xf0]  ;;  %v4775_v52 = vor.u32 %v5949_v45, %v4774_v44 }
  0x6d   :  { %3144 = vmatpush.bf16.msrb.mxu1 %v4655_v35  ;;  %v4638_v51 = vld [vmem:[%s9263_s1 + $0x6b0] sm:$0xf]  ;;  %v5915_v53 = vld [vmem:[%s9263_s1 + $0x6b4] sm:$0xf0]  ;;  %v4575_v58 = vor.u32 %v5899_v50, %v4574_v49  ;;  %v4566_v62 = vld [vmem:[%s9263_s1 + $0x620] sm:$0xf] }
  0x6e   :  { %3157 = vmatpush.bf16.msrb.mxu2 %v4719_v36  ;;  %v4702_v54 = vld [vmem:[%s9263_s1 + $0x730] sm:$0xf]  ;;  %v5931_v55 = vld [vmem:[%s9263_s1 + $0x734] sm:$0xf0]  ;;  %v4639_v59 = vor.u32 %v5915_v53, %v4638_v51  ;;  %v5897_v63 = vld [vmem:[%s9263_s1 + $0x624] sm:$0xf0] }
  0x6f   :  { %3170 = vmatpush.bf16.msrb.mxu3 %v4783_v40  ;;  %v4766_v56 = vld [vmem:[%s9263_s1 + $0x7b0] sm:$0xf]  ;;  %v5947_v57 = vld [vmem:[%s9263_s1 + $0x7b4] sm:$0xf0]  ;;  %v4703_v61 = vor.u32 %v5931_v55, %v4702_v54  ;;  %v4630_v3 = vld [vmem:[%s9263_s1 + $0x6a0] sm:$0xf]  ;;  %v4567_v10 = vor.u32 %v5897_v63, %v4566_v62 }
  0x70   :  { %3132 = vmatpush.bf16.msrb.mxu0 %v4583_v46  ;;  %v4767_v4 = vor.u32 %v5947_v57, %v4766_v56  ;;  %v5913_v5 = vld [vmem:[%s9263_s1 + $0x6a4] sm:$0xf0]  ;;  %v4694_v6 = vld [vmem:[%s9263_s1 + $0x720] sm:$0xf]  ;;  %v4558_v11 = vld [vmem:[%s9263_s1 + $0x610] sm:$0xf] }
  0x71   :  { %3145 = vmatpush.bf16.msrb.mxu1 %v4647_v47  ;;  %v5929_v7 = vld [vmem:[%s9263_s1 + $0x724] sm:$0xf0]  ;;  %v4758_v8 = vld [vmem:[%s9263_s1 + $0x7a0] sm:$0xf]  ;;  %v4631_v13 = vor.u32 %v5913_v5, %v4630_v3  ;;  %v5895_v18 = vld [vmem:[%s9263_s1 + $0x614] sm:$0xf0] }
  0x72   :  { %3158 = vmatpush.bf16.msrb.mxu2 %v4711_v48  ;;  %v5945_v9 = vld [vmem:[%s9263_s1 + $0x7a4] sm:$0xf0]  ;;  %v4695_v14 = vor.u32 %v5929_v7, %v4694_v6  ;;  %v4622_v19 = vld [vmem:[%s9263_s1 + $0x690] sm:$0xf]  ;;  %v5911_v23 = vld [vmem:[%s9263_s1 + $0x694] sm:$0xf0]  ;;  %v4559_v32 = vor.u32 %v5895_v18, %v4558_v11 }
  0x73   :  { %3171 = vmatpush.bf16.msrb.mxu3 %v4775_v52  ;;  %v4759_v24 = vor.u32 %v5945_v9, %v4758_v8  ;;  %v4686_v25 = vld [vmem:[%s9263_s1 + $0x710] sm:$0xf]  ;;  %v5927_v27 = vld [vmem:[%s9263_s1 + $0x714] sm:$0xf0]  ;;  %v4550_v30 = vld [vmem:[%s9263_s1 + $0x600] sm:$0xf]  ;;  %v4623_v37 = vor.u32 %v5911_v23, %v4622_v19 }
  0x74   :  { %3133 = vmatpush.bf16.msrb.mxu0 %v4575_v58  ;;  %v4750_v28 = vld [vmem:[%s9263_s1 + $0x790] sm:$0xf]  ;;  %v5943_v29 = vld [vmem:[%s9263_s1 + $0x794] sm:$0xf0]  ;;  %v5893_v31 = vld [vmem:[%s9263_s1 + $0x604] sm:$0xf0]  ;;  %v4687_v38 = vor.u32 %v5927_v27, %v4686_v25 }
  0x75   :  { %3146 = vmatpush.bf16.msrb.mxu1 %v4639_v59  ;;  %v4614_v33 = vld [vmem:[%s9263_s1 + $0x680] sm:$0xf]  ;;  %v5909_v34 = vld [vmem:[%s9263_s1 + $0x684] sm:$0xf0]  ;;  %v4862_v41 = vld [vmem:[%s9263_s1 + $0x870] sm:$0xf]  ;;  %v4751_v43 = vor.u32 %v5943_v29, %v4750_v28  ;;  %v4551_v51 = vor.u32 %v5893_v31, %v4550_v30 }
  0x76   :  { %3159 = vmatpush.bf16.msrb.mxu2 %v4703_v61  ;;  %v4678_v35 = vld [vmem:[%s9263_s1 + $0x700] sm:$0xf]  ;;  %v5925_v36 = vld [vmem:[%s9263_s1 + $0x704] sm:$0xf0]  ;;  %v5971_v42 = vld [vmem:[%s9263_s1 + $0x874] sm:$0xf0]  ;;  %v4615_v54 = vor.u32 %v5909_v34, %v4614_v33 }
  0x77   :  { %3172 = vmatpush.bf16.msrb.mxu3 %v4767_v4  ;;  %v4742_v39 = vld [vmem:[%s9263_s1 + $0x780] sm:$0xf]  ;;  %v5941_v40 = vld [vmem:[%s9263_s1 + $0x784] sm:$0xf0]  ;;  %v4926_v44 = vld [vmem:[%s9263_s1 + $0x8f0] sm:$0xf]  ;;  %v4679_v55 = vor.u32 %v5925_v36, %v4678_v35  ;;  %v4863_v59 = vor.u32 %v5971_v42, %v4862_v41 }
  0x78   :  { %3134 = vmatpush.bf16.msrb.mxu0 %v4567_v10  ;;  %v5987_v45 = vld [vmem:[%s9263_s1 + $0x8f4] sm:$0xf0]  ;;  %v7057_v46 = vld [vmem:[#allocation1 + $0x24] sm:$0xff]  ;;  %v7061_v48 = vld [vmem:[#allocation1 + $0x2d] sm:$0xff]  ;;  %v4743_v58 = vor.u32 %v5941_v40, %v4742_v39  ;;  %s3771_s5 = sshll.u32 %s9265_s3, 4  ;;  %vm3756_vm0 = vcmask 1040384   ;;  %s3772_s5 = int_to_ptr.hbm [resolvable:$true] %s3771_s5 }
  0x79   :  { %3147 = vmatpush.bf16.msrb.mxu1 %v4631_v13  ;;  %v7059_v47 = vld [vmem:[#allocation1 + $0x36] sm:$0xff]  ;;  %v7063_v49 = vld [vmem:[#allocation1 + $0x3f] sm:$0xff]  ;;  %v4990_v52 = vld [vmem:[%s9263_s1 + $0x970] sm:$0xf]  ;;  %v4927_v61 = vor.u32 %v5987_v45, %v4926_v44 }
  0x7a   :  { %3160 = vmatpush.bf16.msrb.mxu2 %v4695_v14  ;;  %v17_v50 = vld [vmem:[%s9262_s0 + $0x10] sm:$0xff]  ;;  %v6003_v53 = vld [vmem:[%s9263_s1 + $0x974] sm:$0xf0]  ;;  %v4854_v63 = vld [vmem:[%s9263_s1 + $0x860] sm:$0xf] }
  0x7b   :  { %3173 = vmatpush.bf16.msrb.mxu3 %v4759_v24  ;;  %521 = vst [vmem:[#allocation1] ss:$9 sm:$0xff] %v17_v50  ;;  %v5054_v56 = vld [vmem:[%s9263_s1 + $0x9f0] sm:$0xf]  ;;  %v6019_v57 = vld [vmem:[%s9263_s1 + $0x9f4] sm:$0xf0]  ;;  %v4991_v62 = vor.u32 %v6003_v53, %v4990_v52 }
  0x7c   :  { %3135 = vmatpush.bf16.msrb.mxu0 %v4559_v32  ;;  %v5969_v3 = vld [vmem:[%s9263_s1 + $0x864] sm:$0xf0]  ;;  %v4918_v4 = vld [vmem:[%s9263_s1 + $0x8e0] sm:$0xf]  ;;  %v5055_v5 = vor.u32 %v6019_v57, %v5054_v56  ;;  %v4846_v18 = vld [vmem:[%s9263_s1 + $0x850] sm:$0xf] }
  0x7d   :  { %3148 = vmatpush.bf16.msrb.mxu1 %v4623_v37  ;;  %v5985_v6 = vld [vmem:[%s9263_s1 + $0x8e4] sm:$0xf0]  ;;  %v4982_v7 = vld [vmem:[%s9263_s1 + $0x960] sm:$0xf]  ;;  %v4855_v11 = vor.u32 %v5969_v3, %v4854_v63  ;;  %v5967_v19 = vld [vmem:[%s9263_s1 + $0x854] sm:$0xf0] }
  0x7e   :  { %3161 = vmatpush.bf16.msrb.mxu2 %v4687_v38  ;;  %v6001_v8 = vld [vmem:[%s9263_s1 + $0x964] sm:$0xf0]  ;;  %v5046_v9 = vld [vmem:[%s9263_s1 + $0x9e0] sm:$0xf]  ;;  %v4919_v13 = vor.u32 %v5985_v6, %v4918_v4  ;;  %v4910_v23 = vld [vmem:[%s9263_s1 + $0x8d0] sm:$0xf]  ;;  %v4847_v31 = vor.u32 %v5967_v19, %v4846_v18 }
  0x7f   :  { %3174 = vmatpush.bf16.msrb.mxu3 %v4751_v43  ;;  %v6017_v10 = vld [vmem:[%s9263_s1 + $0x9e4] sm:$0xf0]  ;;  %v4983_v14 = vor.u32 %v6001_v8, %v4982_v7  ;;  %v5983_v25 = vld [vmem:[%s9263_s1 + $0x8d4] sm:$0xf0]  ;;  %v4974_v27 = vld [vmem:[%s9263_s1 + $0x950] sm:$0xf] }
  0x80   :  { %3136 = vmatpush.bf16.msrb.mxu0 %v4551_v51  ;;  %v5047_v24 = vor.u32 %v6017_v10, %v5046_v9  ;;  %v5999_v28 = vld [vmem:[%s9263_s1 + $0x954] sm:$0xf0]  ;;  %v5038_v29 = vld [vmem:[%s9263_s1 + $0x9d0] sm:$0xf]  ;;  %v4911_v32 = vor.u32 %v5983_v25, %v4910_v23  ;;  %v4838_v34 = vld [vmem:[%s9263_s1 + $0x840] sm:$0xf] }
  0x81   :  { %3149 = vmatpush.bf16.msrb.mxu1 %v4615_v54  ;;  %v6015_v30 = vld [vmem:[%s9263_s1 + $0x9d4] sm:$0xf0]  ;;  %v4975_v33 = vor.u32 %v5999_v28, %v4974_v27  ;;  %v5965_v35 = vld [vmem:[%s9263_s1 + $0x844] sm:$0xf0]  ;;  %v4902_v36 = vld [vmem:[%s9263_s1 + $0x8c0] sm:$0xf] }
  0x82   :  { %3162 = vmatpush.bf16.msrb.mxu2 %v4679_v55  ;;  %v5039_v37 = vor.u32 %v6015_v30, %v5038_v29  ;;  %v5981_v38 = vld [vmem:[%s9263_s1 + $0x8c4] sm:$0xf0]  ;;  %v4966_v39 = vld [vmem:[%s9263_s1 + $0x940] sm:$0xf]  ;;  %v4839_v43 = vor.u32 %v5965_v35, %v4838_v34  ;;  %v4830_v50 = vld [vmem:[%s9263_s1 + $0x830] sm:$0xf] }
  0x83   :  { %3175 = vmatpush.bf16.msrb.mxu3 %v4743_v58  ;;  %3137 = vmatmul.bf16.vlgmr.msrb.gmra.mxu0 %v7057_v46  ;;  %v5997_v40 = vld [vmem:[%s9263_s1 + $0x944] sm:$0xf0]  ;;  %v5030_v41 = vld [vmem:[%s9263_s1 + $0x9c0] sm:$0xf]  ;;  %v4903_v44 = vor.u32 %v5981_v38, %v4902_v36  ;;  %v5963_v51 = vld [vmem:[%s9263_s1 + $0x834] sm:$0xf0] }
  0x84   :  { %3181 = vmatpush.bf16.msra.mxu0 %v4863_v59  ;;  %3150 = vmatmul.bf16.vlgmr.msrb.gmra.mxu1 %v7061_v48  ;;  %v6013_v42 = vld [vmem:[%s9263_s1 + $0x9c4] sm:$0xf0]  ;;  %v4967_v45 = vor.u32 %v5997_v40, %v4966_v39  ;;  %v4894_v52 = vld [vmem:[%s9263_s1 + $0x8b0] sm:$0xf]  ;;  %v5979_v54 = vld [vmem:[%s9263_s1 + $0x8b4] sm:$0xf0]  ;;  %v4831_v59 = vor.u32 %v5963_v51, %v4830_v50 }
  0x85   :  { %3194 = vmatpush.bf16.msra.mxu1 %v4927_v61  ;;  %3163 = vmatmul.bf16.vlgmr.msrb.gmra.mxu2 %v7059_v47  ;;  %v5031_v53 = vor.u32 %v6013_v42, %v5030_v41  ;;  %v4958_v55 = vld [vmem:[%s9263_s1 + $0x930] sm:$0xf]  ;;  %v5995_v56 = vld [vmem:[%s9263_s1 + $0x934] sm:$0xf0]  ;;  %v4895_v61 = vor.u32 %v5979_v54, %v4894_v52  ;;  %v4822_v63 = vld [vmem:[%s9263_s1 + $0x820] sm:$0xf] }
  0x86   :  { %3207 = vmatpush.bf16.msra.mxu2 %v4991_v62  ;;  %3176 = vmatmul.bf16.vlgmr.msrb.gmra.mxu3 %v7063_v49  ;;  %v5022_v57 = vld [vmem:[%s9263_s1 + $0x9b0] sm:$0xf]  ;;  %v6011_v58 = vld [vmem:[%s9263_s1 + $0x9b4] sm:$0xf0]  ;;  %v4959_v62 = vor.u32 %v5995_v56, %v4958_v55  ;;  %v5961_v3 = vld [vmem:[%s9263_s1 + $0x824] sm:$0xf0] }
  0x87   :  { %3220 = vmatpush.bf16.msra.mxu3 %v5055_v5  ;;  %v4886_v4 = vld [vmem:[%s9263_s1 + $0x8a0] sm:$0xf]  ;;  %v5023_v5 = vor.u32 %v6011_v58, %v5022_v57  ;;  %v5977_v6 = vld [vmem:[%s9263_s1 + $0x8a4] sm:$0xf0]  ;;  %v4814_v18 = vld [vmem:[%s9263_s1 + $0x810] sm:$0xf] }
  0x88   :  { %3182 = vmatpush.bf16.msra.mxu0 %v4855_v11  ;;  %v4950_v7 = vld [vmem:[%s9263_s1 + $0x920] sm:$0xf]  ;;  %v5993_v8 = vld [vmem:[%s9263_s1 + $0x924] sm:$0xf0]  ;;  %v4823_v11 = vor.u32 %v5961_v3, %v4822_v63  ;;  %v5959_v19 = vld [vmem:[%s9263_s1 + $0x814] sm:$0xf0] }
  0x89   :  { %3195 = vmatpush.bf16.msra.mxu1 %v4919_v13  ;;  %v5014_v9 = vld [vmem:[%s9263_s1 + $0x9a0] sm:$0xf]  ;;  %v6009_v10 = vld [vmem:[%s9263_s1 + $0x9a4] sm:$0xf0]  ;;  %v4887_v13 = vor.u32 %v5977_v6, %v4886_v4  ;;  %v4878_v23 = vld [vmem:[%s9263_s1 + $0x890] sm:$0xf] }
  0x8a   :  { %3208 = vmatpush.bf16.msra.mxu2 %v4983_v14  ;;  %v4951_v14 = vor.u32 %v5993_v8, %v4950_v7  ;;  %v5975_v25 = vld [vmem:[%s9263_s1 + $0x894] sm:$0xf0]  ;;  %v4942_v27 = vld [vmem:[%s9263_s1 + $0x910] sm:$0xf]  ;;  %v4870_v36 = vld [vmem:[%s9263_s1 + $0x880] sm:$0xf] }
  0x8b   :  { %3221 = vmatpush.bf16.msra.mxu3 %v5047_v24  ;;  %v5015_v24 = vor.u32 %v6009_v10, %v5014_v9  ;;  %v5991_v28 = vld [vmem:[%s9263_s1 + $0x914] sm:$0xf0]  ;;  %v5006_v29 = vld [vmem:[%s9263_s1 + $0x990] sm:$0xf]  ;;  %v4879_v34 = vor.u32 %v5975_v25, %v4878_v23  ;;  %v4934_v38 = vld [vmem:[%s9263_s1 + $0x900] sm:$0xf] }
  0x8c   :  { %3183 = vmatpush.bf16.msra.mxu0 %v4847_v31  ;;  %v6007_v30 = vld [vmem:[%s9263_s1 + $0x994] sm:$0xf0]  ;;  %v4815_v31 = vor.u32 %v5959_v19, %v4814_v18  ;;  %v4943_v35 = vor.u32 %v5991_v28, %v4942_v27  ;;  %v5989_v40 = vld [vmem:[%s9263_s1 + $0x904] sm:$0xf0]  ;;  %v4998_v41 = vld [vmem:[%s9263_s1 + $0x980] sm:$0xf] }
  0x8d   :  { %3196 = vmatpush.bf16.msra.mxu1 %v4911_v32  ;;  %v4806_v32 = vld [vmem:[%s9263_s1 + $0x800] sm:$0xf]  ;;  %v5007_v39 = vor.u32 %v6007_v30, %v5006_v29  ;;  %v6005_v42 = vld [vmem:[%s9263_s1 + $0x984] sm:$0xf0]  ;;  %v6051_v51 = vld [vmem:[%s9263_s1 + $0xaf4] sm:$0xf0]  ;;  %v4935_v55 = vor.u32 %v5989_v40, %v4934_v38 }
  0x8e   :  { %3209 = vmatpush.bf16.msra.mxu2 %v4975_v33  ;;  %v5957_v33 = vld [vmem:[%s9263_s1 + $0x804] sm:$0xf0]  ;;  %v5246_v52 = vld [vmem:[%s9263_s1 + $0xb70] sm:$0xf]  ;;  %v6083_v57 = vld [vmem:[%s9263_s1 + $0xbf4] sm:$0xf0]  ;;  %v4999_v58 = vor.u32 %v6005_v42, %v4998_v41 }
  0x8f   :  { %3222 = vmatpush.bf16.msra.mxu3 %v5039_v37  ;;  %v5973_v37 = vld [vmem:[%s9263_s1 + $0x884] sm:$0xf0]  ;;  %v4807_v50 = vor.u32 %v5957_v33, %v4806_v32  ;;  %v5310_v56 = vld [vmem:[%s9263_s1 + $0xbf0] sm:$0xf]  ;;  %v5110_v63 = vld [vmem:[%s9263_s1 + $0xa60] sm:$0xf] }
  0x90   :  { %3184 = vmatpush.bf16.msra.mxu0 %v4839_v43  ;;  %v5118_v43 = vld [vmem:[%s9263_s1 + $0xa70] sm:$0xf]  ;;  %v4871_v54 = vor.u32 %v5973_v37, %v4870_v36  ;;  %v6033_v3 = vld [vmem:[%s9263_s1 + $0xa64] sm:$0xf0]  ;;  %v5174_v4 = vld [vmem:[%s9263_s1 + $0xae0] sm:$0xf] }
  0x91   :  { %3197 = vmatpush.bf16.msra.mxu1 %v4903_v44  ;;  %v6035_v44 = vld [vmem:[%s9263_s1 + $0xa74] sm:$0xf0]  ;;  %v6049_v6 = vld [vmem:[%s9263_s1 + $0xae4] sm:$0xf0]  ;;  %v5238_v7 = vld [vmem:[%s9263_s1 + $0xb60] sm:$0xf]  ;;  %v5111_v19 = vor.u32 %v6033_v3, %v5110_v63 }
  0x92   :  { %3210 = vmatpush.bf16.msra.mxu2 %v4967_v45  ;;  %v5182_v45 = vld [vmem:[%s9263_s1 + $0xaf0] sm:$0xf]  ;;  %v6065_v8 = vld [vmem:[%s9263_s1 + $0xb64] sm:$0xf0]  ;;  %v7294_v9 = vld [vmem:[#allocation1] sm:$0xff]  ;;  %v5175_v23 = vor.u32 %v6049_v6, %v5174_v4 }
  0x93   :  { %3223 = vmatpush.bf16.msra.mxu3 %v5031_v53  ;;  %v6067_v53 = vld [vmem:[%s9263_s1 + $0xb74] sm:$0xf0]  ;;  %v5302_v10 = vld [vmem:[%s9263_s1 + $0xbe0] sm:$0xf]  ;;  %v5102_v25 = vld [vmem:[%s9263_s1 + $0xa50] sm:$0xf] }
  0x94   :  { %3185 = vmatpush.bf16.msra.mxu0 %v4831_v59  ;;  %v5119_v59 = vor.u32 %v6035_v44, %v5118_v43  ;;  %v7306_v18 = vld [vmem:[#allocation1 + $0x1b] sm:$0xff]  ;;  %v5166_v28 = vld [vmem:[%s9263_s1 + $0xad0] sm:$0xf]  ;;  %v6045_v42 = vld [vmem:[%s9263_s1 + $0xac4] sm:$0xf0] }
  0x95   :  { %3198 = vmatpush.bf16.msra.mxu1 %v4895_v61  ;;  %v5183_v61 = vor.u32 %v6051_v51, %v5182_v45  ;;  %v6031_v27 = vld [vmem:[%s9263_s1 + $0xa54] sm:$0xf0]  ;;  %v5294_v33 = vld [vmem:[%s9263_s1 + $0xbd0] sm:$0xf]  ;;  %v5094_v38 = vld [vmem:[%s9263_s1 + $0xa40] sm:$0xf] }
  0x96   :  { %3211 = vmatpush.bf16.msra.mxu2 %v4959_v62  ;;  %v5247_v62 = vor.u32 %v6067_v53, %v5246_v52  ;;  %v6047_v30 = vld [vmem:[%s9263_s1 + $0xad4] sm:$0xf0]  ;;  %v5158_v40 = vld [vmem:[%s9263_s1 + $0xac0] sm:$0xf]  ;;  %v6061_v44 = vld [vmem:[%s9263_s1 + $0xb44] sm:$0xf0] }
  0x97   :  { %3224 = vmatpush.bf16.msra.mxu3 %v5023_v5  ;;  %v5311_v5 = vor.u32 %v6083_v57, %v5310_v56  ;;  %v6063_v32 = vld [vmem:[%s9263_s1 + $0xb54] sm:$0xf0]  ;;  %v5167_v36 = vor.u32 %v6047_v30, %v5166_v28  ;;  %v5222_v43 = vld [vmem:[%s9263_s1 + $0xb40] sm:$0xf]  ;;  %v5086_v52 = vld [vmem:[%s9263_s1 + $0xa30] sm:$0xf]  ;;  %v5159_v53 = vor.u32 %v6045_v42, %v5158_v40 }
  0x98   :  { %3186 = vmatpush.bf16.msra.mxu0 %v4823_v11  ;;  %v6081_v11 = vld [vmem:[%s9263_s1 + $0xbe4] sm:$0xf0]  ;;  %v5286_v45 = vld [vmem:[%s9263_s1 + $0xbc0] sm:$0xf]  ;;  %v5150_v56 = vld [vmem:[%s9263_s1 + $0xab0] sm:$0xf] }
  0x99   :  { %3199 = vmatpush.bf16.msra.mxu1 %v4887_v13  ;;  %v7302_v13 = vld [vmem:[#allocation1 + $0x12] sm:$0xff]  ;;  %v5303_v29 = vor.u32 %v6081_v11, %v5302_v10  ;;  %v5142_v10 = vld [vmem:[%s9263_s1 + $0xaa0] sm:$0xf]  ;;  %v6073_v28 = vld [vmem:[%s9263_s1 + $0xba4] sm:$0xf0] }
  0x9a   :  { %3212 = vmatpush.bf16.msra.mxu2 %v4951_v14  ;;  %v7304_v14 = vld [vmem:[#allocation1 + $0x9] sm:$0xff]  ;;  %v6043_v57 = vld [vmem:[%s9263_s1 + $0xab4] sm:$0xf0] }
  0x9b   :  { %3225 = vmatpush.bf16.msra.mxu3 %v5015_v24  ;;  %v5239_v24 = vor.u32 %v6065_v8, %v5238_v7  ;;  %v5278_v63 = vld [vmem:[%s9263_s1 + $0xbb0] sm:$0xf]  ;;  %v6075_v3 = vld [vmem:[%s9263_s1 + $0xbb4] sm:$0xf0]  ;;  %v5151_v6 = vor.u32 %v6043_v57, %v5150_v56  ;;  %v6025_v8 = vld [vmem:[%s9263_s1 + $0xa24] sm:$0xf0] }
  0x9c   :  { %3187 = vmatpush.bf16.msra.mxu0 %v4815_v31  ;;  %v5230_v31 = vld [vmem:[%s9263_s1 + $0xb50] sm:$0xf] }
  0x9d   :  { %3200 = vmatpush.bf16.msra.mxu1 %v4879_v34  ;;  %v6079_v34 = vld [vmem:[%s9263_s1 + $0xbd4] sm:$0xf0]  ;;  %v5231_v37 = vor.u32 %v6063_v32, %v5230_v31  ;;  %v5070_v30 = vld [vmem:[%s9263_s1 + $0xa10] sm:$0xf] }
  0x9e   :  { %3213 = vmatpush.bf16.msra.mxu2 %v4943_v35  ;;  %v5103_v35 = vor.u32 %v6031_v27, %v5102_v25  ;;  %v5295_v41 = vor.u32 %v6079_v34, %v5294_v33  ;;  %v6057_v25 = vld [vmem:[%s9263_s1 + $0xb24] sm:$0xf0]  ;;  %v5270_v27 = vld [vmem:[%s9263_s1 + $0xba0] sm:$0xf]  ;;  %v6023_v34 = vld [vmem:[%s9263_s1 + $0xa14] sm:$0xf0] }
  0x9f   :  { %3226 = vmatpush.bf16.msra.mxu3 %v5007_v39  ;;  %v6029_v39 = vld [vmem:[%s9263_s1 + $0xa44] sm:$0xf0]  ;;  %v5198_v40 = vld [vmem:[%s9263_s1 + $0xb10] sm:$0xf] }
  0xa0   :  { %3188 = vmatpush.bf16.msra.mxu0 %v4807_v50  ;;  %v6077_v50 = vld [vmem:[%s9263_s1 + $0xbc4] sm:$0xf0]  ;;  %v5095_v51 = vor.u32 %v6029_v39, %v5094_v38  ;;  %v5271_v39 = vor.u32 %v6073_v28, %v5270_v27  ;;  %v5262_v42 = vld [vmem:[%s9263_s1 + $0xb90] sm:$0xf]  ;;  %v6131_v27 = vld [vmem:[%s9263_s1 + $0xd74] sm:$0xf0] }
  0xa1   :  { %3201 = vmatpush.bf16.msra.mxu1 %v4871_v54  ;;  %v5223_v54 = vor.u32 %v6061_v44, %v5222_v43  ;;  %v6071_v43 = vld [vmem:[%s9263_s1 + $0xb94] sm:$0xf0]  ;;  %v5062_v44 = vld [vmem:[%s9263_s1 + $0xa00] sm:$0xf] }
  0xa2   :  { %3214 = vmatpush.bf16.msra.mxu2 %v4935_v55  ;;  %v6027_v55 = vld [vmem:[%s9263_s1 + $0xa34] sm:$0xf0] }
  0xa3   :  { %3227 = vmatpush.bf16.msra.mxu3 %v4999_v58  ;;  %3189 = vmatmul.bf16.vlgmr.msra.gmra.mxu0 %v7294_v9  ;;  %v5287_v58 = vor.u32 %v6077_v50, %v5286_v45  ;;  %v5087_v4 = vor.u32 %v6027_v55, %v5086_v52  ;;  %v2982_v31 = vpop.f32.mrf.mxu0  ;;  %v6021_v45 = vld [vmem:[%s9263_s1 + $0xa04] sm:$0xf0]  ;;  %v5126_v52 = vld [vmem:[%s9263_s1 + $0xa80] sm:$0xf] }
  0xa4   :  { %3233 = vmatpush.bf16.msrb.mxu0 %v5119_v59  ;;  %3202 = vmatmul.bf16.vlgmr.msra.gmra.mxu1 %v7304_v14  ;;  %v5214_v59 = vld [vmem:[%s9263_s1 + $0xb30] sm:$0xf]  ;;  %v6053_v55 = vld [vmem:[%s9263_s1 + $0xb04] sm:$0xf0] }
  0xa5   :  { %3246 = vmatpush.bf16.msrb.mxu1 %v5183_v61  ;;  %3215 = vmatmul.bf16.vlgmr.msra.gmra.mxu2 %v7302_v13  ;;  %v6059_v61 = vld [vmem:[%s9263_s1 + $0xb34] sm:$0xf0] }
  0xa6   :  { %3259 = vmatpush.bf16.msrb.mxu2 %v5247_v62  ;;  %3228 = vmatmul.bf16.vlgmr.msra.gmra.mxu3 %v7306_v18  ;;  %v499_v62 = vld [vmem:[%s9264_s2] sm:$0x3]  ;;  %v5215_v7 = vor.u32 %v6059_v61, %v5214_v59  ;;  %v6069_v59 = vld [vmem:[%s9263_s1 + $0xb84] sm:$0xf0]  ;;  %v5374_v61 = vld [vmem:[%s9263_s1 + $0xc70] sm:$0xf] }
  0xa7   :  { %3272 = vmatpush.bf16.msrb.mxu3 %v5311_v5  ;;  %v5078_v5 = vld [vmem:[%s9263_s1 + $0xa20] sm:$0xf]  ;;  %v2969_v11 = vperm.slane %v499_v62, 0  ;;  %v2995_v38 = vpop.f32.mrf.mxu1  ;;  %v6099_v62 = vld [vmem:[%s9263_s1 + $0xc74] sm:$0xf0] }
  0xa8   :  { %3234 = vmatpush.bf16.msrb.mxu0 %v5111_v19  ;;  %v5279_v19 = vor.u32 %v6075_v3, %v5278_v63  ;;  %v5263_v3 = vor.u32 %v6071_v43, %v5262_v42  ;;  %v6113_v43 = vld [vmem:[%s9263_s1 + $0xce4] sm:$0xf0] }
  0xa9   :  { %3247 = vmatpush.bf16.msrb.mxu1 %v5175_v23  ;;  %v6041_v23 = vld [vmem:[%s9263_s1 + $0xaa4] sm:$0xf0] }
  0xaa   :  { %3260 = vmatpush.bf16.msrb.mxu2 %v5239_v24  ;;  %v5206_v24 = vld [vmem:[%s9263_s1 + $0xb20] sm:$0xf]  ;;  %v5143_v32 = vor.u32 %v6041_v23, %v5142_v10  ;;  %v3008_v63 = vpop.f32.mrf.mxu2  ;;  %v18_v23 = vld [vmem:[%s9262_s0 + $0x18] sm:$0x3f] }
  0xab   :  { %3273 = vmatpush.bf16.msrb.mxu3 %v5303_v29  ;;  %v5079_v29 = vor.u32 %v6025_v8, %v5078_v5  ;;  %v5207_v33 = vor.u32 %v6057_v25, %v5206_v24  ;;  %v6115_v5 = vld [vmem:[%s9263_s1 + $0xcf4] sm:$0xf0]  ;;  %v3021_v10 = vpop.f32.mrf.mxu3  ;;  %v5063_v24 = vor.u32 %v6021_v45, %v5062_v44  ;;  %v5502_v25 = vld [vmem:[%s9263_s1 + $0xd70] sm:$0xf]  ;;  %v5494_v44 = vld [vmem:[%s9263_s1 + $0xd60] sm:$0xf] }
  0xac   :  { %3235 = vmatpush.bf16.msrb.mxu0 %v5103_v35  ;;  %v5134_v35 = vld [vmem:[%s9263_s1 + $0xa90] sm:$0xf]  ;;  %v6129_v45 = vld [vmem:[%s9263_s1 + $0xd64] sm:$0xf0] }
  0xad   :  { %3248 = vmatpush.bf16.msrb.mxu1 %v5167_v36  ;;  %v6039_v36 = vld [vmem:[%s9263_s1 + $0xa94] sm:$0xf0] }
  0xae   :  { %3261 = vmatpush.bf16.msrb.mxu2 %v5231_v37  ;;  %v2983_v37 = vadd.f32 %v2982_v31, %v2969_v11  ;;  %v5135_v56 = vor.u32 %v6039_v36, %v5134_v35  ;;  %v7475_v11 = vld [vmem:[#allocation1 + $0x2d] sm:$0xff]  ;;  %v5375_v36 = vor.u32 %v6099_v62, %v5374_v61  ;;  %v6111_v62 = vld [vmem:[%s9263_s1 + $0xcd4] sm:$0xf0] }
  0xaf   :  { %3274 = vmatpush.bf16.msrb.mxu3 %v5295_v41  ;;  %v6055_v41 = vld [vmem:[%s9263_s1 + $0xb14] sm:$0xf0] }
  0xb0   :  { %3236 = vmatpush.bf16.msrb.mxu0 %v5095_v51  ;;  %v2996_v50 = vadd.f32 %v2995_v38, %v2983_v37  ;;  %v5071_v51 = vor.u32 %v6023_v34, %v5070_v30  ;;  %v5199_v57 = vor.u32 %v6055_v41, %v5198_v40  ;;  %v2997_v34 = vpop.f32.mrf.mxu1  ;;  %v5503_v38 = vor.u32 %v6131_v27, %v5502_v25  ;;  %v6097_v40 = vld [vmem:[%s9263_s1 + $0xc64] sm:$0xf0]  ;;  %v5430_v41 = vld [vmem:[%s9263_s1 + $0xce0] sm:$0xf] }
  0xb1   :  { %3249 = vmatpush.bf16.msrb.mxu1 %v5159_v53  ;;  %v6037_v53 = vld [vmem:[%s9263_s1 + $0xa84] sm:$0xf0]  ;;  %v5414_v27 = vld [vmem:[%s9263_s1 + $0xcc0] sm:$0xf] }
  0xb2   :  { %3262 = vmatpush.bf16.msrb.mxu2 %v5223_v54  ;;  %v5190_v54 = vld [vmem:[%s9263_s1 + $0xb00] sm:$0xf]  ;;  %v3009_v8 = vadd.f32 %v3008_v63, %v2996_v50  ;;  %v5127_v30 = vor.u32 %v6037_v53, %v5126_v52  ;;  %v3010_v52 = vpop.f32.mrf.mxu2  ;;  %v5486_v63 = vld [vmem:[%s9263_s1 + $0xd50] sm:$0xf]  ;;  %v6093_v25 = vld [vmem:[%s9263_s1 + $0xc44] sm:$0xf0] }
  0xb3   :  { %3275 = vmatpush.bf16.msrb.mxu3 %v5287_v58  ;;  %v5254_v58 = vld [vmem:[%s9263_s1 + $0xb80] sm:$0xf]  ;;  %v5191_v31 = vor.u32 %v6053_v55, %v5190_v54  ;;  %v3023_v54 = vpop.f32.mrf.mxu3  ;;  %v5431_v55 = vor.u32 %v6113_v43, %v5430_v41  ;;  %v6141_v34 = vld [vmem:[%s9263_s1 + $0xdc4] sm:$0xf0]  ;;  %v5406_v41 = vld [vmem:[%s9263_s1 + $0xcb0] sm:$0xf] }
  0xb4   :  { %3237 = vmatpush.bf16.msrb.mxu0 %v5087_v4  ;;  %v5438_v4 = vld [vmem:[%s9263_s1 + $0xcf0] sm:$0xf]  ;;  %v7488_v28 = vadd.f32 %v3021_v10, %v3009_v8  ;;  %v5255_v35 = vor.u32 %v6069_v59, %v5254_v58  ;;  %v5558_v50 = vld [vmem:[%s9263_s1 + $0xde0] sm:$0xf]  ;;  %v6095_v58 = vld [vmem:[%s9263_s1 + $0xc54] sm:$0xf0] }
  0xb5   :  { %3250 = vmatpush.bf16.msrb.mxu1 %v5151_v6  ;;  %v7471_v6 = vld [vmem:[#allocation1 + $0x24] sm:$0xff]  ;;  %v5439_v37 = vor.u32 %v6115_v5, %v5438_v4  ;;  %v5422_v59 = vld [vmem:[%s9263_s1 + $0xcd0] sm:$0xf]  ;;  %v6143_v5 = vld [vmem:[%s9263_s1 + $0xdd4] sm:$0xf0] }
  0xb6   :  { %3263 = vmatpush.bf16.msrb.mxu2 %v5215_v7  ;;  %v7473_v7 = vld [vmem:[#allocation1 + $0x36] sm:$0xff]  ;;  %v5550_v4 = vld [vmem:[%s9263_s1 + $0xdd0] sm:$0xf]  ;;  %v5423_v10 = vor.u32 %v6111_v62, %v5422_v59  ;;  %v5398_v59 = vld [vmem:[%s9263_s1 + $0xca0] sm:$0xf] }
  0xb7   :  { %3276 = vmatpush.bf16.msrb.mxu3 %v5279_v19  ;;  %v7477_v19 = vld [vmem:[#allocation1 + $0x3f] sm:$0xff]  ;;  %v5534_v52 = vld [vmem:[%s9263_s1 + $0xdb0] sm:$0xf] }
  0xb8   :  { %3238 = vmatpush.bf16.msrb.mxu0 %v5079_v29  ;;  %v2984_v29 = vpop.f32.mrf.mxu0  ;;  %531 = vst [vmem:[#allocation1] ss:$9 sm:$0xff] %v18_v23 }
  0xb9   :  { %3251 = vmatpush.bf16.msrb.mxu1 %v5143_v32  ;;  %v5566_v32 = vld [vmem:[%s9263_s1 + $0xdf0] sm:$0xf]  ;;  %v5551_v29 = vor.u32 %v6143_v5, %v5550_v4  ;;  %v6121_v4 = vld [vmem:[%s9263_s1 + $0xd24] sm:$0xf0] }
  0xba   :  { %3264 = vmatpush.bf16.msrb.mxu2 %v5207_v33  ;;  %v6147_v33 = vld [vmem:[%s9263_s1 + $0xdf4] sm:$0xf0] }
  0xbb   :  { %3277 = vmatpush.bf16.msrb.mxu3 %v5271_v39  ;;  %v5366_v39 = vld [vmem:[%s9263_s1 + $0xc60] sm:$0xf]  ;;  %v5567_v42 = vor.u32 %v6147_v33, %v5566_v32  ;;  %v6125_v32 = vld [vmem:[%s9263_s1 + $0xd44] sm:$0xf0] }
  0xbc   :  { %3239 = vmatpush.bf16.msrb.mxu0 %v5071_v51  ;;  %v6145_v51 = vld [vmem:[%s9263_s1 + $0xde4] sm:$0xf0]  ;;  %v5367_v53 = vor.u32 %v6097_v40, %v5366_v39  ;;  %v5542_v33 = vld [vmem:[%s9263_s1 + $0xdc0] sm:$0xf]  ;;  %v5342_v39 = vld [vmem:[%s9263_s1 + $0xc30] sm:$0xf] }
  0xbd   :  { %3252 = vmatpush.bf16.msrb.mxu1 %v5135_v56  ;;  %v5495_v56 = vor.u32 %v6129_v45, %v5494_v44  ;;  %v5559_v61 = vor.u32 %v6145_v51, %v5558_v50  ;;  %v6091_v40 = vld [vmem:[%s9263_s1 + $0xc34] sm:$0xf0]  ;;  %v5543_v44 = vor.u32 %v6141_v34, %v5542_v33  ;;  %v5470_v50 = vld [vmem:[%s9263_s1 + $0xd30] sm:$0xf] }
  0xbe   :  { %3265 = vmatpush.bf16.msrb.mxu2 %v5199_v57  ;;  %v5358_v57 = vld [vmem:[%s9263_s1 + $0xc50] sm:$0xf]  ;;  %v6107_v45 = vld [vmem:[%s9263_s1 + $0xcb4] sm:$0xf0]  ;;  %v5343_v54 = vor.u32 %v6091_v40, %v5342_v39 }
  0xbf   :  { %3278 = vmatpush.bf16.msrb.mxu3 %v5263_v3  ;;  %v6127_v3 = vld [vmem:[%s9263_s1 + $0xd54] sm:$0xf0]  ;;  %v5359_v8 = vor.u32 %v6095_v58, %v5358_v57  ;;  %v5334_v57 = vld [vmem:[%s9263_s1 + $0xc20] sm:$0xf]  ;;  %v6089_v58 = vld [vmem:[%s9263_s1 + $0xc24] sm:$0xf0] }
  0xc0   :  { %3240 = vmatpush.bf16.msrb.mxu0 %v5063_v24  ;;  %v5487_v23 = vor.u32 %v6127_v3, %v5486_v63  ;;  %v5350_v24 = vld [vmem:[%s9263_s1 + $0xc40] sm:$0xf]  ;;  %v6123_v51 = vld [vmem:[%s9263_s1 + $0xd34] sm:$0xf0]  ;;  %v6105_v63 = vld [vmem:[%s9263_s1 + $0xca4] sm:$0xf0] }
  0xc1   :  { %3253 = vmatpush.bf16.msrb.mxu1 %v5127_v30  ;;  %v6109_v30 = vld [vmem:[%s9263_s1 + $0xcc4] sm:$0xf0]  ;;  %v3047_v43 = vpop.f32.mrf.mxu1  ;;  %v5462_v3 = vld [vmem:[%s9263_s1 + $0xd20] sm:$0xf]  ;;  %v5390_v33 = vld [vmem:[%s9263_s1 + $0xc90] sm:$0xf] }
  0xc2   :  { %3266 = vmatpush.bf16.msrb.mxu2 %v5191_v31  ;;  %v5478_v31 = vld [vmem:[%s9263_s1 + $0xd40] sm:$0xf]  ;;  %v5518_v39 = vld [vmem:[%s9263_s1 + $0xd90] sm:$0xf]  ;;  %v6135_v40 = vld [vmem:[%s9263_s1 + $0xd94] sm:$0xf0] }
  0xc3   :  { %3279 = vmatpush.bf16.msrb.mxu3 %v5255_v35  ;;  %3241 = vmatmul.bf16.vlgmr.msrb.gmra.mxu0 %v7471_v6  ;;  %v5351_v35 = vor.u32 %v6093_v25, %v5350_v24  ;;  %v5335_v24 = vor.u32 %v6089_v58, %v5334_v57  ;;  %v5630_v58 = vld [vmem:[%s9263_s1 + $0xe70] sm:$0xf] }
  0xc4   :  { %3285 = vmatpush.bf16.msra.mxu0 %v5375_v36  ;;  %3254 = vmatmul.bf16.vlgmr.msrb.gmra.mxu1 %v7475_v11  ;;  %v3034_v36 = vpop.f32.mrf.mxu0 }
  0xc5   :  { %3298 = vmatpush.bf16.msra.mxu1 %v5439_v37  ;;  %3267 = vmatmul.bf16.vlgmr.msrb.gmra.mxu2 %v7473_v7  ;;  %v5415_v37 = vor.u32 %v6109_v30, %v5414_v27  ;;  %v5463_v30 = vor.u32 %v6121_v4, %v5462_v3  ;;  %v5714_v3 = vld [vmem:[%s9263_s1 + $0x74] sm:$0xf]  ;;  %v3840_v4 = vld [vmem:[%s9263_s1 + $0x78] sm:$0xf0] }
  0xc6   :  { %3311 = vmatpush.bf16.msra.mxu2 %v5503_v38  ;;  %3280 = vmatmul.bf16.vlgmr.msrb.gmra.mxu3 %v7477_v19  ;;  %v5479_v38 = vor.u32 %v6125_v32, %v5478_v31  ;;  %v5326_v31 = vld [vmem:[%s9263_s1 + $0xc10] sm:$0xf]  ;;  %v6087_v32 = vld [vmem:[%s9263_s1 + $0xc14] sm:$0xf0] }
  0xc7   :  { %3324 = vmatpush.bf16.msra.mxu3 %v5567_v42  ;;  %v3035_v42 = vadd.f32 %v3034_v36, %v7488_v28  ;;  %v6139_v28 = vld [vmem:[%s9263_s1 + $0xdb4] sm:$0xf0] }
  0xc8   :  { %3286 = vmatpush.bf16.msra.mxu0 %v5367_v53  ;;  %v5535_v62 = vor.u32 %v6139_v28, %v5534_v52  ;;  %v6103_v36 = vld [vmem:[%s9263_s1 + $0xc94] sm:$0xf0]  ;;  %v5446_v52 = vld [vmem:[%s9263_s1 + $0xd00] sm:$0xf] }
  0xc9   :  { %3299 = vmatpush.bf16.msra.mxu1 %v5431_v55  ;;  %v3048_v53 = vadd.f32 %v3047_v43, %v3035_v42  ;;  %v5407_v55 = vor.u32 %v6107_v45, %v5406_v41  ;;  %v3049_v34 = vpop.f32.mrf.mxu1  ;;  %v5327_v41 = vor.u32 %v6087_v32, %v5326_v31  ;;  %v5318_v42 = vld [vmem:[%s9263_s1 + $0xc00] sm:$0xf]  ;;  %v6085_v43 = vld [vmem:[%s9263_s1 + $0xc04] sm:$0xf0] }
  0xca   :  { %3312 = vmatpush.bf16.msra.mxu2 %v5495_v56  ;;  %v5471_v56 = vor.u32 %v6123_v51, %v5470_v50  ;;  %v5382_v50 = vld [vmem:[%s9263_s1 + $0xc80] sm:$0xf]  ;;  %v6101_v51 = vld [vmem:[%s9263_s1 + $0xc84] sm:$0xf0] }
  0xcb   :  { %3325 = vmatpush.bf16.msra.mxu3 %v5559_v61  ;;  %v3060_v61 = vpop.f32.mrf.mxu2  ;;  %v5622_v31 = vld [vmem:[%s9263_s1 + $0xe60] sm:$0xf]  ;;  %v6161_v32 = vld [vmem:[%s9263_s1 + $0xe64] sm:$0xf0] }
  0xcc   :  { %3287 = vmatpush.bf16.msra.mxu0 %v5359_v8  ;;  %v3061_v5 = vadd.f32 %v3060_v61, %v3048_v53  ;;  %v3073_v8 = vpop.f32.mrf.mxu3  ;;  %v3036_v27 = vpop.f32.mrf.mxu0  ;;  %v5519_v53 = vor.u32 %v6135_v40, %v5518_v39  ;;  %v5694_v61 = vld [vmem:[%s9263_s1 + $0xef0] sm:$0xf]  ;;  %v5728_v39 = vld [vmem:[%s9263_s1 + $0xe4] sm:$0xf]  ;;  %v3896_v40 = vld [vmem:[%s9263_s1 + $0xe8] sm:$0xf0] }
  0xcd   :  { %3300 = vmatpush.bf16.msra.mxu1 %v5423_v10  ;;  %v5526_v10 = vld [vmem:[%s9263_s1 + $0xda0] sm:$0xf] }
  0xce   :  { %3313 = vmatpush.bf16.msra.mxu2 %v5487_v23  ;;  %v6137_v23 = vld [vmem:[%s9263_s1 + $0xda4] sm:$0xf0]  ;;  %v7621_v25 = vadd.f32 %v3073_v8, %v3061_v5  ;;  %v5383_v5 = vor.u32 %v6101_v51, %v5382_v50  ;;  %v5614_v51 = vld [vmem:[%s9263_s1 + $0xe50] sm:$0xf] }
  0xcf   :  { %3326 = vmatpush.bf16.msra.mxu3 %v5551_v29  ;;  %v5399_v29 = vor.u32 %v6105_v63, %v5398_v59  ;;  %v6163_v59 = vld [vmem:[%s9263_s1 + $0xe74] sm:$0xf0] }
  0xd0   :  { %3288 = vmatpush.bf16.msra.mxu0 %v5351_v35  ;;  %v5527_v35 = vor.u32 %v6137_v23, %v5526_v10  ;;  %v6179_v63 = vld [vmem:[%s9263_s1 + $0xef4] sm:$0xf0]  ;;  %v5730_v10 = vld [vmem:[%s9263_s1 + $0xf4] sm:$0xf]  ;;  %v3904_v23 = vld [vmem:[%s9263_s1 + $0xf8] sm:$0xf0]  ;;  %v5631_v27 = vor.u32 %v6163_v59, %v5630_v58 }
  0xd1   :  { %3301 = vmatpush.bf16.msra.mxu1 %v5415_v37  ;;  %v5454_v37 = vld [vmem:[%s9263_s1 + $0xd10] sm:$0xf]  ;;  %v3907_v34 = vor.u32 %v5730_v10, %v3904_v23  ;;  %v3888_v58 = vld [vmem:[%s9263_s1 + $0xd8] sm:$0xf0]  ;;  %v5708_v10 = vld [vmem:[%s9263_s1 + $0x44] sm:$0xf] }
  0xd2   :  { %3314 = vmatpush.bf16.msra.mxu2 %v5479_v38  ;;  %v6119_v38 = vld [vmem:[%s9263_s1 + $0xd14] sm:$0xf0]  ;;  %v3816_v23 = vld [vmem:[%s9263_s1 + $0x48] sm:$0xf0] }
  0xd3   :  { %3327 = vmatpush.bf16.msra.mxu3 %v5543_v44  ;;  %v5391_v44 = vor.u32 %v6103_v36, %v5390_v33  ;;  %v5455_v45 = vor.u32 %v6119_v38, %v5454_v37  ;;  %v3062_v28 = vpop.f32.mrf.mxu2  ;;  %v5686_v33 = vld [vmem:[%s9263_s1 + $0xee0] sm:$0xf]  ;;  %v5712_v36 = vld [vmem:[%s9263_s1 + $0x64] sm:$0xf]  ;;  %v3832_v37 = vld [vmem:[%s9263_s1 + $0x68] sm:$0xf0] }
  0xd4   :  { %3289 = vmatpush.bf16.msra.mxu0 %v5343_v54  ;;  %v6117_v54 = vld [vmem:[%s9263_s1 + $0xd04] sm:$0xf0]  ;;  %v3075_v57 = vpop.f32.mrf.mxu3  ;;  %v532_v38 = vld [vmem:[#allocation1] sm:$0xff]  ;;  %v3835_v50 = vor.u32 %v5712_v36, %v3832_v37  ;;  %v5678_v28 = vld [vmem:[%s9263_s1 + $0xed0] sm:$0xf] }
  0xd5   :  { %3302 = vmatpush.bf16.msra.mxu1 %v5407_v55  ;;  %v5510_v55 = vld [vmem:[%s9263_s1 + $0xd80] sm:$0xf]  ;;  %v5447_v8 = vor.u32 %v6117_v54, %v5446_v52  ;;  %v6159_v52 = vld [vmem:[%s9263_s1 + $0xe54] sm:$0xf0]  ;;  %v5726_v57 = vld [vmem:[%s9263_s1 + $0xd4] sm:$0xf] }
  0xd6   :  { %3315 = vmatpush.bf16.msra.mxu2 %v5471_v56  ;;  %v6133_v56 = vld [vmem:[%s9263_s1 + $0xd84] sm:$0xf0]  ;;  %v6175_v54 = vld [vmem:[%s9263_s1 + $0xed4] sm:$0xf0]  ;;  %v5615_v59 = vor.u32 %v6159_v52, %v5614_v51  ;;  %v5662_v37 = vld [vmem:[%s9263_s1 + $0xeb0] sm:$0xf] }
  0xd7   :  { %3328 = vmatpush.bf16.msra.mxu3 %v5535_v62  ;;  %v5319_v62 = vor.u32 %v6085_v43, %v5318_v42  ;;  %v533_v42 = vld [vmem:[#allocation1 + $0x9] sm:$0xff]  ;;  %v535_v43 = vld [vmem:[#allocation1 + $0x1b] sm:$0xff] }
  0xd8   :  { %3290 = vmatpush.bf16.msra.mxu0 %v5335_v24  ;;  %v5511_v24 = vor.u32 %v6133_v56, %v5510_v55  ;;  %v5710_v55 = vld [vmem:[%s9263_s1 + $0x54] sm:$0xf]  ;;  %v3824_v56 = vld [vmem:[%s9263_s1 + $0x58] sm:$0xf0]  ;;  %v6155_v36 = vld [vmem:[%s9263_s1 + $0xe34] sm:$0xf0] }
  0xd9   :  { %3303 = vmatpush.bf16.msra.mxu1 %v5399_v29  ;;  %v5695_v29 = vor.u32 %v6179_v63, %v5694_v61  ;;  %v5679_v61 = vor.u32 %v6175_v54, %v5678_v28  ;;  %v5606_v63 = vld [vmem:[%s9263_s1 + $0xe40] sm:$0xf]  ;;  %v6153_v52 = vld [vmem:[%s9263_s1 + $0xe24] sm:$0xf0] }
  0xda   :  { %3316 = vmatpush.bf16.msra.mxu2 %v5463_v30  ;;  %v3843_v30 = vor.u32 %v5714_v3, %v3840_v4  ;;  %v6157_v3 = vld [vmem:[%s9263_s1 + $0xe44] sm:$0xf0]  ;;  %v5670_v4 = vld [vmem:[%s9263_s1 + $0xec0] sm:$0xf] }
  0xdb   :  { %3329 = vmatpush.bf16.msra.mxu3 %v5527_v35  ;;  %v6177_v35 = vld [vmem:[%s9263_s1 + $0xee4] sm:$0xf0]  ;;  %v5590_v51 = vld [vmem:[%s9263_s1 + $0xe20] sm:$0xf] }
  0xdc   :  { %3291 = vmatpush.bf16.msra.mxu0 %v5327_v41  ;;  %v534_v41 = vld [vmem:[#allocation1 + $0x12] sm:$0xff]  ;;  %v5654_v28 = vld [vmem:[%s9263_s1 + $0xea0] sm:$0xf] }
  0xdd   :  { %3304 = vmatpush.bf16.msra.mxu1 %v5391_v44  ;;  %v5623_v44 = vor.u32 %v6161_v32, %v5622_v31  ;;  %v5607_v31 = vor.u32 %v6157_v3, %v5606_v63  ;;  %v5591_v3 = vor.u32 %v6153_v52, %v5590_v51  ;;  %v5746_v51 = vld [vmem:[%s9263_s1 + $0x174] sm:$0xf]  ;;  %v3968_v52 = vld [vmem:[%s9263_s1 + $0x178] sm:$0xf0] }
  0xde   :  { %3317 = vmatpush.bf16.msra.mxu2 %v5455_v45  ;;  %v5687_v45 = vor.u32 %v6177_v35, %v5686_v33  ;;  %v5598_v35 = vld [vmem:[%s9263_s1 + $0xe30] sm:$0xf] }
  0xdf   :  { %3330 = vmatpush.bf16.msra.mxu3 %v5519_v53  ;;  %v3899_v53 = vor.u32 %v5728_v39, %v3896_v40  ;;  %v6171_v39 = vld [vmem:[%s9263_s1 + $0xeb4] sm:$0xf0]  ;;  %v5706_v40 = vld [vmem:[%s9263_s1 + $0x34] sm:$0xf] }
  0xe0   :  { %3292 = vmatpush.bf16.msra.mxu0 %v5319_v62  ;;  %v3827_v62 = vor.u32 %v5710_v55, %v3824_v56  ;;  %v6169_v55 = vld [vmem:[%s9263_s1 + $0xea4] sm:$0xf0]  ;;  %v5704_v56 = vld [vmem:[%s9263_s1 + $0x24] sm:$0xf] }
  0xe1   :  { %3305 = vmatpush.bf16.msra.mxu1 %v5383_v5  ;;  %v3891_v5 = vor.u32 %v5726_v57, %v3888_v58  ;;  %v3099_v32 = vpop.f32.mrf.mxu1  ;;  %v3800_v57 = vld [vmem:[%s9263_s1 + $0x28] sm:$0xf0] }
  0xe2   :  { %3318 = vmatpush.bf16.msra.mxu2 %v5447_v8  ;;  %v6173_v8 = vld [vmem:[%s9263_s1 + $0xec4] sm:$0xf0] }
  0xe3   :  { %3331 = vmatpush.bf16.msra.mxu3 %v5511_v24  ;;  %3293 = vmatmul.bf16.vlgmr.msra.gmra.mxu0 %v532_v38  ;;  %v3086_v24 = vpop.f32.mrf.mxu0  ;;  %v5671_v33 = vor.u32 %v6173_v8, %v5670_v4  ;;  %v5655_v8 = vor.u32 %v6169_v55, %v5654_v28  ;;  %v5762_v28 = vld [vmem:[%s9263_s1 + $0x1f4] sm:$0xf]  ;;  %v4032_v55 = vld [vmem:[%s9263_s1 + $0x1f8] sm:$0xf0] }
  0xe4   :  { %3337 = vmatpush.bf16.msrb.mxu0 %v5631_v27  ;;  %3306 = vmatmul.bf16.vlgmr.msra.gmra.mxu1 %v533_v42  ;;  %v5724_v27 = vld [vmem:[%s9263_s1 + $0xc4] sm:$0xf]  ;;  %v5722_v42 = vld [vmem:[%s9263_s1 + $0xb4] sm:$0xf] }
  0xe5   :  { %3350 = vmatpush.bf16.msrb.mxu1 %v5695_v29  ;;  %3319 = vmatmul.bf16.vlgmr.msra.gmra.mxu2 %v534_v41  ;;  %v3880_v29 = vld [vmem:[%s9263_s1 + $0xc8] sm:$0xf0]  ;;  %v3808_v41 = vld [vmem:[%s9263_s1 + $0x38] sm:$0xf0] }
  0xe6   :  { %3363 = vmatpush.bf16.msrb.mxu2 %v3843_v30  ;;  %3332 = vmatmul.bf16.vlgmr.msra.gmra.mxu3 %v535_v43  ;;  %v3087_v30 = vadd.f32 %v3086_v24, %v7621_v25  ;;  %v3883_v25 = vor.u32 %v5724_v27, %v3880_v29  ;;  %v3872_v43 = vld [vmem:[%s9263_s1 + $0xb8] sm:$0xf0]  ;;  %v6151_v24 = vld [vmem:[%s9263_s1 + $0xe14] sm:$0xf0]  ;;  %v5646_v27 = vld [vmem:[%s9263_s1 + $0xe90] sm:$0xf] }
  0xe7   :  { %3376 = vmatpush.bf16.msrb.mxu3 %v3907_v34  ;;  %v3819_v34 = vor.u32 %v5708_v10, %v3816_v23  ;;  %v3803_v10 = vor.u32 %v5704_v56, %v3800_v57  ;;  %v5582_v23 = vld [vmem:[%s9263_s1 + $0xe10] sm:$0xf]  ;;  %v5778_v56 = vld [vmem:[%s9263_s1 + $0x274] sm:$0xf]  ;;  %v4096_v57 = vld [vmem:[%s9263_s1 + $0x278] sm:$0xf0] }
  0xe8   :  { %3338 = vmatpush.bf16.msrb.mxu0 %v5623_v44  ;;  %v3100_v38 = vadd.f32 %v3099_v32, %v3087_v30  ;;  %v5599_v44 = vor.u32 %v6155_v36, %v5598_v35  ;;  %v3112_v54 = vpop.f32.mrf.mxu2  ;;  %v6167_v30 = vld [vmem:[%s9263_s1 + $0xe94] sm:$0xf0]  ;;  %v3792_v32 = vld [vmem:[%s9263_s1 + $0x18] sm:$0xf0]  ;;  %v5583_v35 = vor.u32 %v6151_v24, %v5582_v23  ;;  %v5574_v36 = vld [vmem:[%s9263_s1 + $0xe00] sm:$0xf] }
  0xe9   :  { %3351 = vmatpush.bf16.msrb.mxu1 %v5687_v45  ;;  %v5663_v45 = vor.u32 %v6171_v39, %v5662_v37  ;;  %v3101_v4 = vpop.f32.mrf.mxu1  ;;  %v6149_v37 = vld [vmem:[%s9263_s1 + $0xe04] sm:$0xf0]  ;;  %v5638_v39 = vld [vmem:[%s9263_s1 + $0xe80] sm:$0xf]  ;;  %v3960_v23 = vld [vmem:[%s9263_s1 + $0x168] sm:$0xf0] }
  0xea   :  { %3364 = vmatpush.bf16.msrb.mxu2 %v3835_v50  ;;  %v3811_v50 = vor.u32 %v5706_v40, %v3808_v41  ;;  %v3113_v58 = vadd.f32 %v3112_v54, %v3100_v38  ;;  %v6165_v40 = vld [vmem:[%s9263_s1 + $0xe84] sm:$0xf0]  ;;  %v5700_v41 = vld [vmem:[%s9263_s1 + $0x4] sm:$0xf]  ;;  %v5575_v54 = vor.u32 %v6149_v37, %v5574_v36  ;;  %v4035_v4 = vor.u32 %v5762_v28, %v4032_v55 }
  0xeb   :  { %3377 = vmatpush.bf16.msrb.mxu3 %v3899_v53  ;;  %v3875_v53 = vor.u32 %v5722_v42, %v3872_v43  ;;  %v3088_v63 = vpop.f32.mrf.mxu0  ;;  %v3784_v43 = vld [vmem:[%s9263_s1 + $0x8] sm:$0xf0]  ;;  %v5760_v24 = vld [vmem:[%s9263_s1 + $0x1e4] sm:$0xf] }
  0xec   :  { %3339 = vmatpush.bf16.msrb.mxu0 %v5615_v59  ;;  %v3125_v59 = vpop.f32.mrf.mxu3 }
  0xed   :  { %3352 = vmatpush.bf16.msrb.mxu1 %v5679_v61  ;;  %v5720_v61 = vld [vmem:[%s9263_s1 + $0xa4] sm:$0xf] }
  0xee   :  { %3365 = vmatpush.bf16.msrb.mxu2 %v3827_v62  ;;  %v3864_v62 = vld [vmem:[%s9263_s1 + $0xa8] sm:$0xf0] }
  0xef   :  { %3378 = vmatpush.bf16.msrb.mxu3 %v3891_v5  ;;  %v7816_v5 = vadd.f32 %v3125_v59, %v3113_v58  ;;  %v3867_v29 = vor.u32 %v5720_v61, %v3864_v62  ;;  %v5639_v58 = vor.u32 %v6165_v40, %v5638_v39  ;;  %v3787_v59 = vor.u32 %v5700_v41, %v3784_v43  ;;  %v5794_v61 = vld [vmem:[%s9263_s1 + $0x2f4] sm:$0xf]  ;;  %v4160_v62 = vld [vmem:[%s9263_s1 + $0x2f8] sm:$0xf0] }
  0xf0   :  { %3340 = vmatpush.bf16.msrb.mxu0 %v5607_v31  ;;  %v5702_v31 = vld [vmem:[%s9263_s1 + $0x14] sm:$0xf]  ;;  %v3952_v39 = vld [vmem:[%s9263_s1 + $0x158] sm:$0xf0] }
  0xf1   :  { %3353 = vmatpush.bf16.msrb.mxu1 %v5671_v33  ;;  %v5718_v33 = vld [vmem:[%s9263_s1 + $0x94] sm:$0xf]  ;;  %v3795_v38 = vor.u32 %v5702_v31, %v3792_v32  ;;  %v4088_v31 = vld [vmem:[%s9263_s1 + $0x268] sm:$0xf0]  ;;  %v536_v32 = vld [vmem:[#allocation1 + $0x24] sm:$0xff] }
  0xf2   :  { %3366 = vmatpush.bf16.msrb.mxu2 %v3819_v34  ;;  %v3856_v34 = vld [vmem:[%s9263_s1 + $0x98] sm:$0xf0]  ;;  %v5758_v40 = vld [vmem:[%s9263_s1 + $0x1d4] sm:$0xf] }
  0xf3   :  { %3379 = vmatpush.bf16.msrb.mxu3 %v3883_v25  ;;  %v5647_v25 = vor.u32 %v6167_v30, %v5646_v27  ;;  %v3859_v42 = vor.u32 %v5718_v33, %v3856_v34  ;;  %v4163_v27 = vor.u32 %v5794_v61, %v4160_v62  ;;  %v5776_v30 = vld [vmem:[%s9263_s1 + $0x264] sm:$0xf]  ;;  %v4152_v34 = vld [vmem:[%s9263_s1 + $0x2e8] sm:$0xf0]  ;;  %v5774_v43 = vld [vmem:[%s9263_s1 + $0x254] sm:$0xf] }
  0xf4   :  { %3341 = vmatpush.bf16.msrb.mxu0 %v5599_v44  ;;  %v5716_v44 = vld [vmem:[%s9263_s1 + $0x84] sm:$0xf]  ;;  %v4136_v61 = vld [vmem:[%s9263_s1 + $0x2c8] sm:$0xf0] }
  0xf5   :  { %3354 = vmatpush.bf16.msrb.mxu1 %v5663_v45  ;;  %v3848_v45 = vld [vmem:[%s9263_s1 + $0x88] sm:$0xf0]  ;;  %v5792_v33 = vld [vmem:[%s9263_s1 + $0x2e4] sm:$0xf] }
  0xf6   :  { %3367 = vmatpush.bf16.msrb.mxu2 %v3811_v50  ;;  %v3114_v50 = vpop.f32.mrf.mxu2  ;;  %v3851_v63 = vor.u32 %v5716_v44, %v3848_v45  ;;  %v4155_v41 = vor.u32 %v5792_v33, %v4152_v34  ;;  %v4080_v44 = vld [vmem:[%s9263_s1 + $0x258] sm:$0xf0]  ;;  %v5790_v45 = vld [vmem:[%s9263_s1 + $0x2d4] sm:$0xf] }
  0xf7   :  { %3380 = vmatpush.bf16.msrb.mxu3 %v3875_v53  ;;  %v3127_v53 = vpop.f32.mrf.mxu3  ;;  %v4144_v50 = vld [vmem:[%s9263_s1 + $0x2d8] sm:$0xf0]  ;;  %v4083_v28 = vor.u32 %v5774_v43, %v4080_v44  ;;  %v4056_v43 = vld [vmem:[%s9263_s1 + $0x228] sm:$0xf0] }
  0xf8   :  { %3342 = vmatpush.bf16.msrb.mxu0 %v5591_v3  ;;  %v3971_v3 = vor.u32 %v5746_v51, %v3968_v52  ;;  %v5740_v53 = vld [vmem:[%s9263_s1 + $0x144] sm:$0xf]  ;;  %v4147_v55 = vor.u32 %v5790_v45, %v4144_v50  ;;  %v4128_v33 = vld [vmem:[%s9263_s1 + $0x2b8] sm:$0xf0] }
  0xf9   :  { %3355 = vmatpush.bf16.msrb.mxu1 %v5655_v8  ;;  %v4099_v8 = vor.u32 %v5778_v56, %v4096_v57  ;;  %v5772_v56 = vld [vmem:[%s9263_s1 + $0x244] sm:$0xf]  ;;  %v4072_v57 = vld [vmem:[%s9263_s1 + $0x248] sm:$0xf0] }
  0xfa   :  { %3368 = vmatpush.bf16.msrb.mxu2 %v3803_v10  ;;  %v5744_v10 = vld [vmem:[%s9263_s1 + $0x164] sm:$0xf] }
  0xfb   :  { %3381 = vmatpush.bf16.msrb.mxu3 %v3867_v29  ;;  %v4024_v29 = vld [vmem:[%s9263_s1 + $0x1e8] sm:$0xf0]  ;;  %v3963_v36 = vor.u32 %v5744_v10, %v3960_v23  ;;  %v5738_v10 = vld [vmem:[%s9263_s1 + $0x134] sm:$0xf]  ;;  %v3936_v23 = vld [vmem:[%s9263_s1 + $0x138] sm:$0xf0] }
  0xfc   :  { %3343 = vmatpush.bf16.msrb.mxu0 %v5583_v35  ;;  %v537_v35 = vld [vmem:[#allocation1 + $0x2d] sm:$0xff]  ;;  %v4027_v37 = vor.u32 %v5760_v24, %v4024_v29  ;;  %v4000_v29 = vld [vmem:[%s9263_s1 + $0x1b8] sm:$0xf0]  ;;  %v3939_v34 = vor.u32 %v5738_v10, %v3936_v23  ;;  %v5784_v50 = vld [vmem:[%s9263_s1 + $0x2a4] sm:$0xf] }
  0xfd   :  { %3356 = vmatpush.bf16.msrb.mxu1 %v5647_v25  ;;  %v4091_v25 = vor.u32 %v5776_v30, %v4088_v31  ;;  %v5754_v24 = vld [vmem:[%s9263_s1 + $0x1b4] sm:$0xf]  ;;  %v4064_v31 = vld [vmem:[%s9263_s1 + $0x238] sm:$0xf0]  ;;  %v3912_v10 = vld [vmem:[%s9263_s1 + $0x108] sm:$0xf0] }
  0xfe   :  { %3369 = vmatpush.bf16.msrb.mxu2 %v3795_v38  ;;  %v5742_v38 = vld [vmem:[%s9263_s1 + $0x154] sm:$0xf] }
  0xff   :  { %3382 = vmatpush.bf16.msrb.mxu3 %v3859_v42  ;;  %v4016_v42 = vld [vmem:[%s9263_s1 + $0x1d8] sm:$0xf0]  ;;  %v3955_v51 = vor.u32 %v5742_v38, %v3952_v39  ;;  %v5770_v30 = vld [vmem:[%s9263_s1 + $0x234] sm:$0xf]  ;;  %v5752_v38 = vld [vmem:[%s9263_s1 + $0x1a4] sm:$0xf] }
 0x100   :  { %3344 = vmatpush.bf16.msrb.mxu0 %v5575_v54  ;;  %v4019_v52 = vor.u32 %v5758_v40, %v4016_v42  ;;  %v3944_v54 = vld [vmem:[%s9263_s1 + $0x148] sm:$0xf0]  ;;  %v5768_v42 = vld [vmem:[%s9263_s1 + $0x224] sm:$0xf] }
 0x101   :  { %3357 = vmatpush.bf16.msrb.mxu1 %v5639_v58  ;;  %v3138_v58 = vpop.f32.mrf.mxu0 }
 0x102   :  { %3370 = vmatpush.bf16.msrb.mxu2 %v3787_v59  ;;  %v5788_v59 = vld [vmem:[%s9263_s1 + $0x2c4] sm:$0xf]  ;;  %v3139_v62 = vadd.f32 %v3138_v58, %v7816_v5 }
 0x103   :  { %3383 = vmatpush.bf16.msrb.mxu3 %v3851_v63  ;;  %3345 = vmatmul.bf16.vlgmr.msrb.gmra.mxu0 %v536_v32  ;;  %v3947_v63 = vor.u32 %v5740_v53, %v3944_v54  ;;  %v4139_v5 = vor.u32 %v5788_v59, %v4136_v61  ;;  %v5786_v32 = vld [vmem:[%s9263_s1 + $0x2b4] sm:$0xf]  ;;  %v3984_v59 = vld [vmem:[%s9263_s1 + $0x198] sm:$0xf0] }
 0x104   :  { %3389 = vmatpush.bf16.msra.mxu0 %v3971_v3  ;;  %3358 = vmatmul.bf16.vlgmr.msrb.gmra.mxu1 %v537_v35  ;;  %v3151_v3 = vpop.f32.mrf.mxu1  ;;  %v4003_v35 = vor.u32 %v5754_v24, %v4000_v29  ;;  %v4131_v39 = vor.u32 %v5786_v32, %v4128_v33  ;;  %v5766_v61 = vld [vmem:[%s9263_s1 + $0x214] sm:$0xf]  ;;  %v5764_v29 = vld [vmem:[%s9263_s1 + $0x204] sm:$0xf]  ;;  %v4104_v33 = vld [vmem:[%s9263_s1 + $0x288] sm:$0xf0] }
 0x105   :  { %3402 = vmatpush.bf16.msra.mxu1 %v4035_v4  ;;  %3371 = vmatmul.bf16.vlgmr.msrb.gmra.mxu2 %v6540_v21  ;;  %v5756_v21 = vld [vmem:[%s9263_s1 + $0x1c4] sm:$0xf] }
 0x106   :  { %3415 = vmatpush.bf16.msra.mxu2 %v4099_v8  ;;  %3384 = vmatmul.bf16.vlgmr.msrb.gmra.mxu3 %v6551_v26  ;;  %v4008_v26 = vld [vmem:[%s9263_s1 + $0x1c8] sm:$0xf0]  ;;  %v4075_v8 = vor.u32 %v5772_v56, %v4072_v57  ;;  %v3920_v56 = vld [vmem:[%s9263_s1 + $0x118] sm:$0xf0]  ;;  %v5750_v57 = vld [vmem:[%s9263_s1 + $0x194] sm:$0xf] }
 0x107   :  { %3428 = vmatpush.bf16.msra.mxu3 %v4163_v27  ;;  %v4011_v4 = vor.u32 %v5756_v21, %v4008_v26  ;;  %v3152_v27 = vadd.f32 %v3151_v3, %v3139_v62  ;;  %v5734_v26 = vld [vmem:[%s9263_s1 + $0x114] sm:$0xf]  ;;  %v4048_v62 = vld [vmem:[%s9263_s1 + $0x218] sm:$0xf0]  ;;  %v3987_v23 = vor.u32 %v5750_v57, %v3984_v59  ;;  %v5780_v32 = vld [vmem:[%s9263_s1 + $0x284] sm:$0xf] }
 0x108   :  { %3390 = vmatpush.bf16.msra.mxu0 %v3963_v36  ;;  %v4067_v36 = vor.u32 %v5770_v30, %v4064_v31  ;;  %v3164_v40 = vpop.f32.mrf.mxu2  ;;  %v4112_v3 = vld [vmem:[%s9263_s1 + $0x298] sm:$0xf0]  ;;  %v4051_v24 = vor.u32 %v5766_v61, %v4048_v62  ;;  %v4040_v31 = vld [vmem:[%s9263_s1 + $0x208] sm:$0xf0]  ;;  %v5840_v57 = vld [vmem:[%s9263_s1 + $0x464] sm:$0xf] }
 0x109   :  { %3403 = vmatpush.bf16.msra.mxu1 %v4027_v37  ;;  %v5736_v37 = vld [vmem:[%s9263_s1 + $0x124] sm:$0xf]  ;;  %v3165_v44 = vadd.f32 %v3164_v40, %v3152_v27  ;;  %v3177_v45 = vpop.f32.mrf.mxu3  ;;  %v3976_v27 = vld [vmem:[%s9263_s1 + $0x188] sm:$0xf0]  ;;  %v5842_v40 = vld [vmem:[%s9263_s1 + $0x474] sm:$0xf] }
 0x10a   :  { %3416 = vmatpush.bf16.msra.mxu2 %v4091_v25  ;;  %v3928_v25 = vld [vmem:[%s9263_s1 + $0x128] sm:$0xf0]  ;;  %v5856_v59 = vld [vmem:[%s9263_s1 + $0x4e4] sm:$0xf] }
 0x10b   :  { %3429 = vmatpush.bf16.msra.mxu3 %v4155_v41  ;;  %v3992_v41 = vld [vmem:[%s9263_s1 + $0x1a8] sm:$0xf0]  ;;  %v8013_v54 = vadd.f32 %v3177_v45, %v3165_v44  ;;  %v5858_v44 = vld [vmem:[%s9263_s1 + $0x4f4] sm:$0xf]  ;;  %v4416_v45 = vld [vmem:[%s9263_s1 + $0x4f8] sm:$0xf0] }
 0x10c   :  { %3391 = vmatpush.bf16.msra.mxu0 %v3955_v51  ;;  %v4120_v51 = vld [vmem:[%s9263_s1 + $0x2a8] sm:$0xf0]  ;;  %v3153_v53 = vpop.f32.mrf.mxu1  ;;  %v3995_v21 = vor.u32 %v5752_v38, %v3992_v41  ;;  %v4352_v41 = vld [vmem:[%s9263_s1 + $0x478] sm:$0xf0] }
 0x10d   :  { %3404 = vmatpush.bf16.msra.mxu1 %v4019_v52  ;;  %v3140_v52 = vpop.f32.mrf.mxu0  ;;  %v4123_v58 = vor.u32 %v5784_v50, %v4120_v51  ;;  %v4107_v50 = vor.u32 %v5780_v32, %v4104_v33  ;;  %v5808_v53 = vld [vmem:[%s9263_s1 + $0x364] sm:$0xf]  ;;  %v4408_v61 = vld [vmem:[%s9263_s1 + $0x4e8] sm:$0xf0] }
 0x10e   :  { %3417 = vmatpush.bf16.msra.mxu2 %v4083_v28  ;;  %v3931_v28 = vor.u32 %v5736_v37, %v3928_v25  ;;  %v5826_v37 = vld [vmem:[%s9263_s1 + $0x3f4] sm:$0xf]  ;;  %v5804_v33 = vld [vmem:[%s9263_s1 + $0x344] sm:$0xf] }
 0x10f   :  { %3430 = vmatpush.bf16.msra.mxu3 %v4147_v55  ;;  %v4059_v55 = vor.u32 %v5768_v42, %v4056_v43  ;;  %v4043_v43 = vor.u32 %v5764_v29, %v4040_v31  ;;  %v5854_v29 = vld [vmem:[%s9263_s1 + $0x4d4] sm:$0xf] }
 0x110   :  { %3392 = vmatpush.bf16.msra.mxu0 %v3947_v63  ;;  %v5782_v63 = vld [vmem:[%s9263_s1 + $0x294] sm:$0xf] }
 0x111   :  { %3405 = vmatpush.bf16.msra.mxu1 %v4011_v4  ;;  %v3923_v4 = vor.u32 %v5734_v26, %v3920_v56  ;;  %v4115_v30 = vor.u32 %v5782_v63, %v4112_v3  ;;  %v3179_v25 = vpop.f32.mrf.mxu3  ;;  %v4419_v26 = vor.u32 %v5858_v44, %v4416_v45  ;;  %v4280_v56 = vld [vmem:[%s9263_s1 + $0x3e8] sm:$0xf0]  ;;  %v5802_v44 = vld [vmem:[%s9263_s1 + $0x334] sm:$0xf]  ;;  %v4192_v45 = vld [vmem:[%s9263_s1 + $0x338] sm:$0xf0] }
 0x112   :  { %3418 = vmatpush.bf16.msra.mxu2 %v4075_v8  ;;  %v5732_v8 = vld [vmem:[%s9263_s1 + $0x104] sm:$0xf] }
 0x113   :  { %3431 = vmatpush.bf16.msra.mxu3 %v4139_v5  ;;  %v5748_v5 = vld [vmem:[%s9263_s1 + $0x184] sm:$0xf]  ;;  %v3915_v38 = vor.u32 %v5732_v8, %v3912_v10  ;;  %v4208_v8 = vld [vmem:[%s9263_s1 + $0x358] sm:$0xf0]  ;;  %v5822_v10 = vld [vmem:[%s9263_s1 + $0x3d4] sm:$0xf] }
 0x114   :  { %3393 = vmatpush.bf16.msra.mxu0 %v3939_v34  ;;  %v3166_v34 = vpop.f32.mrf.mxu2  ;;  %v3979_v42 = vor.u32 %v5748_v5, %v3976_v27  ;;  %v5838_v5 = vld [vmem:[%s9263_s1 + $0x454] sm:$0xf]  ;;  %v4336_v27 = vld [vmem:[%s9263_s1 + $0x458] sm:$0xf0]  ;;  %v5852_v25 = vld [vmem:[%s9263_s1 + $0x4c4] sm:$0xf] }
 0x115   :  { %3406 = vmatpush.bf16.msra.mxu1 %v4003_v35  ;;  %v5810_v35 = vld [vmem:[%s9263_s1 + $0x374] sm:$0xf]  ;;  %v4339_v32 = vor.u32 %v5838_v5, %v4336_v27  ;;  %v4200_v34 = vld [vmem:[%s9263_s1 + $0x348] sm:$0xf0] }
 0x116   :  { %3419 = vmatpush.bf16.msra.mxu2 %v4067_v36  ;;  %v4224_v36 = vld [vmem:[%s9263_s1 + $0x378] sm:$0xf0]  ;;  %v4376_v5 = vld [vmem:[%s9263_s1 + $0x4a8] sm:$0xf0] }
 0x117   :  { %3432 = vmatpush.bf16.msra.mxu3 %v4131_v39  ;;  %v4288_v39 = vld [vmem:[%s9263_s1 + $0x3f8] sm:$0xf0]  ;;  %v4227_v51 = vor.u32 %v5810_v35, %v4224_v36  ;;  %v5836_v35 = vld [vmem:[%s9263_s1 + $0x444] sm:$0xf]  ;;  %v4328_v36 = vld [vmem:[%s9263_s1 + $0x448] sm:$0xf0] }
 0x118   :  { %3394 = vmatpush.bf16.msra.mxu0 %v3931_v28  ;;  %v4291_v52 = vor.u32 %v5826_v37, %v4288_v39  ;;  %v4355_v28 = vor.u32 %v5842_v40, %v4352_v41  ;;  %v4203_v40 = vor.u32 %v5804_v33, %v4200_v34  ;;  %v5798_v33 = vld [vmem:[%s9263_s1 + $0x314] sm:$0xf]  ;;  %v4176_v34 = vld [vmem:[%s9263_s1 + $0x318] sm:$0xf0] }
 0x119   :  { %3407 = vmatpush.bf16.msra.mxu1 %v3995_v21  ;;  %v4216_v21 = vld [vmem:[%s9263_s1 + $0x368] sm:$0xf0] }
 0x11a   :  { %3420 = vmatpush.bf16.msra.mxu2 %v4059_v55  ;;  %v5824_v55 = vld [vmem:[%s9263_s1 + $0x3e4] sm:$0xf]  ;;  %v4219_v62 = vor.u32 %v5808_v53, %v4216_v21  ;;  %v4320_v53 = vld [vmem:[%s9263_s1 + $0x438] sm:$0xf0]  ;;  %v5850_v21 = vld [vmem:[%s9263_s1 + $0x4b4] sm:$0xf] }
 0x11b   :  { %3433 = vmatpush.bf16.msra.mxu3 %v4123_v58  ;;  %v4344_v58 = vld [vmem:[%s9263_s1 + $0x468] sm:$0xf0]  ;;  %v4283_v63 = vor.u32 %v5824_v55, %v4280_v56  ;;  %v4384_v55 = vld [vmem:[%s9263_s1 + $0x4b8] sm:$0xf0] }
 0x11c   :  { %3395 = vmatpush.bf16.msra.mxu0 %v3923_v4  ;;  %v4347_v3 = vor.u32 %v5840_v57, %v4344_v58  ;;  %v5806_v4 = vld [vmem:[%s9263_s1 + $0x354] sm:$0xf]  ;;  %v5800_v58 = vld [vmem:[%s9263_s1 + $0x324] sm:$0xf] }
 0x11d   :  { %3408 = vmatpush.bf16.msra.mxu1 %v3987_v23  ;;  %v4411_v23 = vor.u32 %v5856_v59, %v4408_v61  ;;  %v4184_v59 = vld [vmem:[%s9263_s1 + $0x328] sm:$0xf0]  ;;  %v5816_v61 = vld [vmem:[%s9263_s1 + $0x3a4] sm:$0xf] }
 0x11e   :  { %3421 = vmatpush.bf16.msra.mxu2 %v4051_v24  ;;  %v4272_v24 = vld [vmem:[%s9263_s1 + $0x3d8] sm:$0xf0] }
 0x11f   :  { %3434 = vmatpush.bf16.msra.mxu3 %v4115_v30  ;;  %v4211_v30 = vor.u32 %v5806_v4, %v4208_v8  ;;  %v4275_v31 = vor.u32 %v5822_v10, %v4272_v24  ;;  %v5832_v4 = vld [vmem:[%s9263_s1 + $0x424] sm:$0xf]  ;;  %v4312_v8 = vld [vmem:[%s9263_s1 + $0x428] sm:$0xf0] }
 0x120   :  { %3396 = vmatpush.bf16.msra.mxu0 %v3915_v38  ;;  %v3190_v37 = vpop.f32.mrf.mxu0  ;;  %v4392_v38 = vld [vmem:[%s9263_s1 + $0x4c8] sm:$0xf0]  ;;  %v5848_v24 = vld [vmem:[%s9263_s1 + $0x4a4] sm:$0xf] }
 0x121   :  { %3409 = vmatpush.bf16.msra.mxu1 %v3979_v42  ;;  %v3191_v39 = vadd.f32 %v3190_v37, %v8013_v54  ;;  %v3203_v41 = vpop.f32.mrf.mxu1  ;;  %v4395_v54 = vor.u32 %v5852_v25, %v4392_v38  ;;  %v5846_v37 = vld [vmem:[%s9263_s1 + $0x494] sm:$0xf]  ;;  %v4368_v25 = vld [vmem:[%s9263_s1 + $0x498] sm:$0xf0]  ;;  %v4179_v38 = vor.u32 %v5798_v33, %v4176_v34  ;;  %v5920_v33 = vld [vmem:[%s9263_s1 + $0x6e4] sm:$0xf] }
 0x122   :  { %3422 = vmatpush.bf16.msra.mxu2 %v4043_v43  ;;  %v4331_v43 = vor.u32 %v5836_v35, %v4328_v36  ;;  %v5830_v35 = vld [vmem:[%s9263_s1 + $0x414] sm:$0xf]  ;;  %v4304_v36 = vld [vmem:[%s9263_s1 + $0x418] sm:$0xf0]  ;;  %v4664_v34 = vld [vmem:[%s9263_s1 + $0x6e8] sm:$0xf0] }
 0x123   :  { %3435 = vmatpush.bf16.msra.mxu3 %v4107_v50  ;;  %3397 = vmatmul.bf16.vlgmr.msra.gmra.mxu0 %v6538_v20  ;;  %v5820_v20 = vld [vmem:[%s9263_s1 + $0x3c4] sm:$0xf]  ;;  %v5818_v50 = vld [vmem:[%s9263_s1 + $0x3b4] sm:$0xf] }
 0x124   :  { %3441 = vmatpush.bf16.msrb.mxu0 %v4227_v51  ;;  %3410 = vmatmul.bf16.vlgmr.msra.gmra.mxu1 %v6542_v22  ;;  %v4264_v22 = vld [vmem:[%s9263_s1 + $0x3c8] sm:$0xf0]  ;;  %v3204_v51 = vadd.f32 %v3203_v41, %v3191_v39  ;;  %v5796_v39 = vld [vmem:[%s9263_s1 + $0x304] sm:$0xf] }
 0x125   :  { %3454 = vmatpush.bf16.msrb.mxu1 %v4291_v52  ;;  %3423 = vmatmul.bf16.vlgmr.msra.gmra.mxu2 %v6633_v0  ;;  %v4400_v0 = vld [vmem:[%s9263_s1 + $0x4d8] sm:$0xf0]  ;;  %v4267_v42 = vor.u32 %v5820_v20, %v4264_v22  ;;  %v5814_v20 = vld [vmem:[%s9263_s1 + $0x394] sm:$0xf] }
 0x126   :  { %3467 = vmatpush.bf16.msrb.mxu2 %v4355_v28  ;;  %3436 = vmatmul.bf16.vlgmr.msra.gmra.mxu3 %v6637_v2  ;;  %v4403_v2 = vor.u32 %v5854_v29, %v4400_v0  ;;  %v4256_v52 = vld [vmem:[%s9263_s1 + $0x3b8] sm:$0xf0]  ;;  %v5834_v28 = vld [vmem:[%s9263_s1 + $0x434] sm:$0xf]  ;;  %v4187_v29 = vor.u32 %v5800_v58, %v4184_v59 }
 0x127   :  { %3480 = vmatpush.bf16.msrb.mxu3 %v4419_v26  ;;  %v4195_v26 = vor.u32 %v5802_v44, %v4192_v45  ;;  %v4259_v56 = vor.u32 %v5818_v50, %v4256_v52  ;;  %v4323_v57 = vor.u32 %v5834_v28, %v4320_v53  ;;  %v4240_v22 = vld [vmem:[%s9263_s1 + $0x398] sm:$0xf0]  ;;  %v4232_v44 = vld [vmem:[%s9263_s1 + $0x388] sm:$0xf0]  ;;  %v5828_v45 = vld [vmem:[%s9263_s1 + $0x404] sm:$0xf]  ;;  %v4371_v50 = vor.u32 %v5846_v37, %v4368_v25 }
 0x128   :  { %3442 = vmatpush.bf16.msrb.mxu0 %v4219_v62  ;;  %v4387_v62 = vor.u32 %v5850_v21, %v4384_v55  ;;  %v3192_v27 = vpop.f32.mrf.mxu0  ;;  %v4243_v41 = vor.u32 %v5814_v20, %v4240_v22  ;;  %v4360_v52 = vld [vmem:[%s9263_s1 + $0x488] sm:$0xf0]  ;;  %v5874_v53 = vld [vmem:[%s9263_s1 + $0x574] sm:$0xf]  ;;  %v4480_v21 = vld [vmem:[%s9263_s1 + $0x578] sm:$0xf0]  ;;  %v4667_v25 = vor.u32 %v5920_v33, %v4664_v34 }
 0x129   :  { %3455 = vmatpush.bf16.msrb.mxu1 %v4283_v63  ;;  %v3216_v63 = vpop.f32.mrf.mxu2  ;;  %v3205_v0 = vpop.f32.mrf.mxu1  ;;  %v5890_v55 = vld [vmem:[%s9263_s1 + $0x5f4] sm:$0xf]  ;;  %v4608_v59 = vld [vmem:[%s9263_s1 + $0x678] sm:$0xf0]  ;;  %v5888_v27 = vld [vmem:[%s9263_s1 + $0x5e4] sm:$0xf] }
 0x12a   :  { %3468 = vmatpush.bf16.msrb.mxu2 %v4347_v3  ;;  %v4248_v3 = vld [vmem:[%s9263_s1 + $0x3a8] sm:$0xf0]  ;;  %v3217_v10 = vadd.f32 %v3216_v63, %v3204_v51  ;;  %v5844_v51 = vld [vmem:[%s9263_s1 + $0x484] sm:$0xf]  ;;  %v5906_v58 = vld [vmem:[%s9263_s1 + $0x674] sm:$0xf] }
 0x12b   :  { %3481 = vmatpush.bf16.msrb.mxu3 %v4411_v23  ;;  %v3229_v23 = vpop.f32.mrf.mxu3  ;;  %v5922_v63 = vld [vmem:[%s9263_s1 + $0x6f4] sm:$0xf]  ;;  %v4536_v0 = vld [vmem:[%s9263_s1 + $0x5e8] sm:$0xf0]  ;;  %v5896_v34 = vld [vmem:[%s9263_s1 + $0x624] sm:$0xf] }
 0x12c   :  { %3443 = vmatpush.bf16.msrb.mxu0 %v4211_v30  ;;  %v8212_v30 = vadd.f32 %v3229_v23, %v3217_v10  ;;  %v4611_v23 = vor.u32 %v5906_v58, %v4608_v59  ;;  %v5886_v37 = vld [vmem:[%s9263_s1 + $0x5d4] sm:$0xf]  ;;  %v4448_v59 = vld [vmem:[%s9263_s1 + $0x538] sm:$0xf0]  ;;  %v4504_v33 = vld [vmem:[%s9263_s1 + $0x5a8] sm:$0xf0] }
 0x12d   :  { %3456 = vmatpush.bf16.msrb.mxu1 %v4275_v31  ;;  %v4251_v31 = vor.u32 %v5816_v61, %v4248_v3  ;;  %v4672_v3 = vld [vmem:[%s9263_s1 + $0x6f8] sm:$0xf0]  ;;  %v5866_v58 = vld [vmem:[%s9263_s1 + $0x534] sm:$0xf] }
 0x12e   :  { %3469 = vmatpush.bf16.msrb.mxu2 %v4339_v32  ;;  %v4315_v32 = vor.u32 %v5832_v4, %v4312_v8  ;;  %v4363_v4 = vor.u32 %v5844_v51, %v4360_v52  ;;  %v4483_v8 = vor.u32 %v5874_v53, %v4480_v21  ;;  %v4584_v51 = vld [vmem:[%s9263_s1 + $0x648] sm:$0xf0] }
 0x12f   :  { %3482 = vmatpush.bf16.msrb.mxu3 %v4403_v2  ;;  %v4379_v2 = vor.u32 %v5848_v24, %v4376_v5  ;;  %v5872_v24 = vld [vmem:[%s9263_s1 + $0x564] sm:$0xf]  ;;  %v4472_v5 = vld [vmem:[%s9263_s1 + $0x568] sm:$0xf0] }
 0x130   :  { %3444 = vmatpush.bf16.msrb.mxu0 %v4203_v40  ;;  %v4168_v40 = vld [vmem:[%s9263_s1 + $0x308] sm:$0xf0]  ;;  %v4475_v20 = vor.u32 %v5872_v24, %v4472_v5 }
 0x131   :  { %3457 = vmatpush.bf16.msrb.mxu1 %v4267_v42  ;;  %v4307_v42 = vor.u32 %v5830_v35, %v4304_v36  ;;  %v3218_v28 = vpop.f32.mrf.mxu2  ;;  %v5870_v35 = vld [vmem:[%s9263_s1 + $0x554] sm:$0xf]  ;;  %v4464_v36 = vld [vmem:[%s9263_s1 + $0x558] sm:$0xf0]  ;;  %v4648_v53 = vld [vmem:[%s9263_s1 + $0x6c8] sm:$0xf0] }
 0x132   :  { %3470 = vmatpush.bf16.msrb.mxu2 %v4331_v43  ;;  %v5812_v43 = vld [vmem:[%s9263_s1 + $0x384] sm:$0xf] }
 0x133   :  { %3483 = vmatpush.bf16.msrb.mxu3 %v4395_v54  ;;  %v4296_v54 = vld [vmem:[%s9263_s1 + $0x408] sm:$0xf0]  ;;  %v4235_v61 = vor.u32 %v5812_v43, %v4232_v44  ;;  %v5916_v28 = vld [vmem:[%s9263_s1 + $0x6c4] sm:$0xf] }
 0x134   :  { %3445 = vmatpush.bf16.msrb.mxu0 %v4195_v26  ;;  %v3231_v26 = vpop.f32.mrf.mxu3 }
 0x135   :  { %3458 = vmatpush.bf16.msrb.mxu1 %v4259_v56  ;;  %v4171_v56 = vor.u32 %v5796_v39, %v4168_v40  ;;  %v5902_v39 = vld [vmem:[%s9263_s1 + $0x654] sm:$0xf]  ;;  %v4592_v40 = vld [vmem:[%s9263_s1 + $0x658] sm:$0xf0] }
 0x136   :  { %3471 = vmatpush.bf16.msrb.mxu2 %v4323_v57  ;;  %v4544_v57 = vld [vmem:[%s9263_s1 + $0x5f8] sm:$0xf0]  ;;  %v4595_v44 = vor.u32 %v5902_v39, %v4592_v40 }
 0x137   :  { %3484 = vmatpush.bf16.msrb.mxu3 %v4387_v62  ;;  %v4299_v62 = vor.u32 %v5828_v45, %v4296_v54  ;;  %v4547_v10 = vor.u32 %v5890_v55, %v4544_v57  ;;  %v5884_v45 = vld [vmem:[%s9263_s1 + $0x5c4] sm:$0xf] }
 0x138   :  { %3446 = vmatpush.bf16.msrb.mxu0 %v4187_v29  ;;  %v4675_v29 = vor.u32 %v5922_v63, %v4672_v3  ;;  %v5900_v54 = vld [vmem:[%s9263_s1 + $0x644] sm:$0xf]  ;;  %v4512_v63 = vld [vmem:[%s9263_s1 + $0x5b8] sm:$0xf0]  ;;  %v5898_v3 = vld [vmem:[%s9263_s1 + $0x634] sm:$0xf] }
 0x139   :  { %3459 = vmatpush.bf16.msrb.mxu1 %v4251_v31  ;;  %v5904_v31 = vld [vmem:[%s9263_s1 + $0x664] sm:$0xf]  ;;  %v4587_v57 = vor.u32 %v5900_v54, %v4584_v51 }
 0x13a   :  { %3472 = vmatpush.bf16.msrb.mxu2 %v4315_v32  ;;  %v4600_v32 = vld [vmem:[%s9263_s1 + $0x668] sm:$0xf0]  ;;  %v5860_v51 = vld [vmem:[%s9263_s1 + $0x504] sm:$0xf] }
 0x13b   :  { %3485 = vmatpush.bf16.msrb.mxu3 %v4379_v2  ;;  %v4539_v2 = vor.u32 %v5888_v27, %v4536_v0  ;;  %v4603_v22 = vor.u32 %v5904_v31, %v4600_v32  ;;  %v5864_v27 = vld [vmem:[%s9263_s1 + $0x524] sm:$0xf] }
 0x13c   :  { %3447 = vmatpush.bf16.msrb.mxu0 %v4179_v38  ;;  %v4528_v38 = vld [vmem:[%s9263_s1 + $0x5d8] sm:$0xf0]  ;;  %v5880_v0 = vld [vmem:[%s9263_s1 + $0x5a4] sm:$0xf] }
 0x13d   :  { %3460 = vmatpush.bf16.msrb.mxu1 %v4243_v41  ;;  %v4656_v41 = vld [vmem:[%s9263_s1 + $0x6d8] sm:$0xf0]  ;;  %v4531_v43 = vor.u32 %v5886_v37, %v4528_v38  ;;  %v4507_v40 = vor.u32 %v5880_v0, %v4504_v33 }
 0x13e   :  { %3473 = vmatpush.bf16.msrb.mxu2 %v4307_v42  ;;  %v4467_v42 = vor.u32 %v5870_v35, %v4464_v36  ;;  %v5912_v35 = vld [vmem:[%s9263_s1 + $0x6a4] sm:$0xf]  ;;  %v4632_v36 = vld [vmem:[%s9263_s1 + $0x6a8] sm:$0xf0] }
 0x13f   :  { %3486 = vmatpush.bf16.msrb.mxu3 %v4371_v50  ;;  %v4520_v50 = vld [vmem:[%s9263_s1 + $0x5c8] sm:$0xf0] }
 0x140   :  { %3448 = vmatpush.bf16.msrb.mxu0 %v4171_v56  ;;  %v3242_v52 = vpop.f32.mrf.mxu0  ;;  %v4523_v56 = vor.u32 %v5884_v45, %v4520_v50  ;;  %v4560_v45 = vld [vmem:[%s9263_s1 + $0x618] sm:$0xf0] }
 0x141   :  { %3461 = vmatpush.bf16.msrb.mxu1 %v4235_v61  ;;  %v3243_v21 = vadd.f32 %v3242_v52, %v8212_v30  ;;  %v3255_v26 = vpop.f32.mrf.mxu1  ;;  %v5882_v61 = vld [vmem:[%s9263_s1 + $0x5b4] sm:$0xf]  ;;  %v4651_v30 = vor.u32 %v5916_v28, %v4648_v53  ;;  %v4624_v50 = vld [vmem:[%s9263_s1 + $0x698] sm:$0xf0]  ;;  %v4424_v52 = vld [vmem:[%s9263_s1 + $0x508] sm:$0xf0] }
 0x142   :  { %3474 = vmatpush.bf16.msrb.mxu2 %v4299_v62  ;;  %v4515_v24 = vor.u32 %v5882_v61, %v4512_v63  ;;  %v5954_v63 = vld [vmem:[%s9263_s1 + $0x7f4] sm:$0xf] }
 0x143   :  { %3487 = vmatpush.bf16.msrb.mxu3 %v4363_v4  ;;  %3449 = vmatmul.bf16.vlgmr.msrb.gmra.mxu0 %v6628_v60  ;;  %v5918_v60 = vld [vmem:[%s9263_s1 + $0x6d4] sm:$0xf]  ;;  %v3256_v62 = vadd.f32 %v3255_v26, %v3243_v21  ;;  %v4576_v4 = vld [vmem:[%s9263_s1 + $0x638] sm:$0xf0]  ;;  %v5876_v21 = vld [vmem:[%s9263_s1 + $0x584] sm:$0xf] }
 0x144   :  { %3493 = vmatpush.bf16.msra.mxu0 %v4483_v8  ;;  %3462 = vmatmul.bf16.vlgmr.msrb.gmra.mxu1 %v6635_v1  ;;  %v5868_v1 = vld [vmem:[%s9263_s1 + $0x544] sm:$0xf]  ;;  %v5914_v8 = vld [vmem:[%s9263_s1 + $0x6b4] sm:$0xf]  ;;  %v4579_v5 = vor.u32 %v5898_v3, %v4576_v4  ;;  %v4427_v4 = vor.u32 %v5860_v51, %v4424_v52 }
 0x145   :  { %3506 = vmatpush.bf16.msra.mxu1 %v4547_v10  ;;  %3475 = vmatmul.bf16.vlgmr.msrb.gmra.mxu2 %v6883_v12  ;;  %v4456_v12 = vld [vmem:[%s9263_s1 + $0x548] sm:$0xf0]  ;;  %v4640_v10 = vld [vmem:[%s9263_s1 + $0x6b8] sm:$0xf0]  ;;  %v5892_v26 = vld [vmem:[%s9263_s1 + $0x604] sm:$0xf] }
 0x146   :  { %3519 = vmatpush.bf16.msra.mxu2 %v4611_v23  ;;  %3488 = vmatmul.bf16.vlgmr.msrb.gmra.mxu3 %v6893_v16  ;;  %v4659_v16 = vor.u32 %v5918_v60, %v4656_v41  ;;  %v4459_v55 = vor.u32 %v5868_v1, %v4456_v12  ;;  %v4451_v23 = vor.u32 %v5866_v58, %v4448_v59  ;;  %v5862_v41 = vld [vmem:[%s9263_s1 + $0x514] sm:$0xf]  ;;  %v4496_v1 = vld [vmem:[%s9263_s1 + $0x598] sm:$0xf0]  ;;  %v5908_v58 = vld [vmem:[%s9263_s1 + $0x684] sm:$0xf] }
 0x147   :  { %3532 = vmatpush.bf16.msra.mxu3 %v4675_v29  ;;  %v4440_v29 = vld [vmem:[%s9263_s1 + $0x528] sm:$0xf0]  ;;  %v4643_v31 = vor.u32 %v5914_v8, %v4640_v10  ;;  %v5894_v12 = vld [vmem:[%s9263_s1 + $0x614] sm:$0xf]  ;;  %v4800_v8 = vld [vmem:[%s9263_s1 + $0x7f8] sm:$0xf0] }
 0x148   :  { %3494 = vmatpush.bf16.msra.mxu0 %v4475_v20  ;;  %v3268_v32 = vpop.f32.mrf.mxu2  ;;  %v4568_v20 = vld [vmem:[%s9263_s1 + $0x628] sm:$0xf0]  ;;  %v3244_v37 = vpop.f32.mrf.mxu0  ;;  %v4563_v53 = vor.u32 %v5894_v12, %v4560_v45  ;;  %v5970_v10 = vld [vmem:[%s9263_s1 + $0x874] sm:$0xf]  ;;  %v4784_v12 = vld [vmem:[%s9263_s1 + $0x7d8] sm:$0xf0] }
 0x149   :  { %3507 = vmatpush.bf16.msra.mxu1 %v4539_v2  ;;  %v3269_v2 = vadd.f32 %v3268_v32, %v3256_v62  ;;  %v3257_v38 = vpop.f32.mrf.mxu1  ;;  %v4571_v60 = vor.u32 %v5896_v34, %v4568_v20  ;;  %v4616_v59 = vld [vmem:[%s9263_s1 + $0x688] sm:$0xf0]  ;;  %v4736_v62 = vld [vmem:[%s9263_s1 + $0x778] sm:$0xf0]  ;;  %v4803_v32 = vor.u32 %v5954_v63, %v4800_v8  ;;  %v5936_v34 = vld [vmem:[%s9263_s1 + $0x764] sm:$0xf] }
 0x14a   :  { %3520 = vmatpush.bf16.msra.mxu2 %v4603_v22  ;;  %v3281_v22 = vpop.f32.mrf.mxu3  ;;  %v4619_v0 = vor.u32 %v5908_v58, %v4616_v59  ;;  %v4728_v20 = vld [vmem:[%s9263_s1 + $0x768] sm:$0xf0]  ;;  %v5966_v45 = vld [vmem:[%s9263_s1 + $0x854] sm:$0xf] }
 0x14b   :  { %3533 = vmatpush.bf16.msra.mxu3 %v4667_v25  ;;  %v4443_v25 = vor.u32 %v5864_v27, %v4440_v29  ;;  %v8411_v39 = vadd.f32 %v3281_v22, %v3269_v2  ;;  %v5986_v27 = vld [vmem:[%s9263_s1 + $0x8f4] sm:$0xf]  ;;  %v4928_v29 = vld [vmem:[%s9263_s1 + $0x8f8] sm:$0xf0]  ;;  %v5952_v2 = vld [vmem:[%s9263_s1 + $0x7e4] sm:$0xf] }
 0x14c   :  { %3495 = vmatpush.bf16.msra.mxu0 %v4467_v42  ;;  %v4432_v42 = vld [vmem:[%s9263_s1 + $0x518] sm:$0xf0]  ;;  %v4931_v22 = vor.u32 %v5986_v27, %v4928_v29  ;;  %v4856_v37 = vld [vmem:[%s9263_s1 + $0x868] sm:$0xf0]  ;;  %v5930_v63 = vld [vmem:[%s9263_s1 + $0x734] sm:$0xf] }
 0x14d   :  { %3508 = vmatpush.bf16.msra.mxu1 %v4531_v43  ;;  %v5878_v43 = vld [vmem:[%s9263_s1 + $0x594] sm:$0xf]  ;;  %v4435_v54 = vor.u32 %v5862_v41, %v4432_v42  ;;  %v4920_v38 = vld [vmem:[%s9263_s1 + $0x8e8] sm:$0xf0]  ;;  %v4896_v27 = vld [vmem:[%s9263_s1 + $0x8b8] sm:$0xf0] }
 0x14e   :  { %3521 = vmatpush.bf16.msra.mxu2 %v4595_v44  ;;  %v4635_v44 = vor.u32 %v5912_v35, %v4632_v36  ;;  %v4499_v28 = vor.u32 %v5878_v43, %v4496_v1  ;;  %v4792_v35 = vld [vmem:[%s9263_s1 + $0x7e8] sm:$0xf0]  ;;  %v5968_v36 = vld [vmem:[%s9263_s1 + $0x864] sm:$0xf]  ;;  %v5934_v42 = vld [vmem:[%s9263_s1 + $0x754] sm:$0xf] }
 0x14f   :  { %3534 = vmatpush.bf16.msra.mxu3 %v4659_v16  ;;  %v5910_v16 = vld [vmem:[%s9263_s1 + $0x694] sm:$0xf]  ;;  %v4859_v41 = vor.u32 %v5968_v36, %v4856_v37  ;;  %v4720_v43 = vld [vmem:[%s9263_s1 + $0x758] sm:$0xf0]  ;;  %v4824_v36 = vld [vmem:[%s9263_s1 + $0x828] sm:$0xf0] }
 0x150   :  { %3496 = vmatpush.bf16.msra.mxu0 %v4459_v55  ;;  %v4488_v55 = vld [vmem:[%s9263_s1 + $0x588] sm:$0xf0]  ;;  %v3270_v61 = vpop.f32.mrf.mxu2 }
 0x151   :  { %3509 = vmatpush.bf16.msra.mxu1 %v4523_v56  ;;  %v4627_v56 = vor.u32 %v5910_v16, %v4624_v50  ;;  %v4848_v16 = vld [vmem:[%s9263_s1 + $0x858] sm:$0xf0] }
 0x152   :  { %3522 = vmatpush.bf16.msra.mxu2 %v4587_v57  ;;  %v4552_v57 = vld [vmem:[%s9263_s1 + $0x608] sm:$0xf0]  ;;  %v3283_v3 = vpop.f32.mrf.mxu3  ;;  %v4912_v50 = vld [vmem:[%s9263_s1 + $0x8d8] sm:$0xf0]  ;;  %v4851_v52 = vor.u32 %v5966_v45, %v4848_v16  ;;  %v5942_v16 = vld [vmem:[%s9263_s1 + $0x794] sm:$0xf] }
 0x153   :  { %3535 = vmatpush.bf16.msra.mxu3 %v4651_v30  ;;  %v5938_v30 = vld [vmem:[%s9263_s1 + $0x774] sm:$0xf]  ;;  %v4704_v3 = vld [vmem:[%s9263_s1 + $0x738] sm:$0xf0] }
 0x154   :  { %3497 = vmatpush.bf16.msra.mxu0 %v4451_v23  ;;  %v4864_v23 = vld [vmem:[%s9263_s1 + $0x878] sm:$0xf0]  ;;  %v4707_v29 = vor.u32 %v5930_v63, %v4704_v3  ;;  %v6018_v3 = vld [vmem:[%s9263_s1 + $0x9f4] sm:$0xf] }
 0x155   :  { %3510 = vmatpush.bf16.msra.mxu1 %v4515_v24  ;;  %v4491_v24 = vor.u32 %v5876_v21, %v4488_v55  ;;  %v4867_v33 = vor.u32 %v5970_v10, %v4864_v23  ;;  %v5964_v21 = vld [vmem:[%s9263_s1 + $0x844] sm:$0xf]  ;;  %v4840_v55 = vld [vmem:[%s9263_s1 + $0x848] sm:$0xf0]  ;;  %v4768_v10 = vld [vmem:[%s9263_s1 + $0x7b8] sm:$0xf0] }
 0x156   :  { %3523 = vmatpush.bf16.msra.mxu2 %v4579_v5  ;;  %v4555_v5 = vor.u32 %v5892_v26, %v4552_v57  ;;  %v4904_v57 = vld [vmem:[%s9263_s1 + $0x8c8] sm:$0xf0]  ;;  %v5962_v23 = vld [vmem:[%s9263_s1 + $0x834] sm:$0xf]  ;;  %v4688_v45 = vld [vmem:[%s9263_s1 + $0x718] sm:$0xf0] }
 0x157   :  { %3536 = vmatpush.bf16.msra.mxu3 %v4643_v31  ;;  %v4739_v31 = vor.u32 %v5938_v30, %v4736_v62  ;;  %v4843_v62 = vor.u32 %v5964_v21, %v4840_v55  ;;  %v5940_v55 = vld [vmem:[%s9263_s1 + $0x784] sm:$0xf]  ;;  %v4992_v63 = vld [vmem:[%s9263_s1 + $0x978] sm:$0xf0] }
 0x158   :  { %3498 = vmatpush.bf16.msra.mxu0 %v4443_v25  ;;  %v5984_v25 = vld [vmem:[%s9263_s1 + $0x8e4] sm:$0xf] }
 0x159   :  { %3511 = vmatpush.bf16.msra.mxu1 %v4507_v40  ;;  %v4731_v40 = vor.u32 %v5936_v34, %v4728_v20  ;;  %v4923_v1 = vor.u32 %v5984_v25, %v4920_v38  ;;  %v5944_v34 = vld [vmem:[%s9263_s1 + $0x7a4] sm:$0xf] }
 0x15a   :  { %3524 = vmatpush.bf16.msra.mxu2 %v4571_v60  ;;  %v4795_v60 = vor.u32 %v5952_v2, %v4792_v35  ;;  %v5960_v35 = vld [vmem:[%s9263_s1 + $0x824] sm:$0xf] }
 0x15b   :  { %3537 = vmatpush.bf16.msra.mxu3 %v4635_v44  ;;  %v5950_v44 = vld [vmem:[%s9263_s1 + $0x7d4] sm:$0xf]  ;;  %v5976_v38 = vld [vmem:[%s9263_s1 + $0x8a4] sm:$0xf] }
 0x15c   :  { %3499 = vmatpush.bf16.msra.mxu0 %v4435_v54  ;;  %v4723_v54 = vor.u32 %v5934_v42, %v4720_v43  ;;  %v4787_v51 = vor.u32 %v5950_v44, %v4784_v12  ;;  %v5926_v12 = vld [vmem:[%s9263_s1 + $0x714] sm:$0xf] }
 0x15d   :  { %3512 = vmatpush.bf16.msra.mxu1 %v4499_v28  ;;  %v5948_v28 = vld [vmem:[%s9263_s1 + $0x7c4] sm:$0xf] }
 0x15e   :  { %3525 = vmatpush.bf16.msra.mxu2 %v4563_v53  ;;  %v4776_v53 = vld [vmem:[%s9263_s1 + $0x7c8] sm:$0xf0] }
 0x15f   :  { %3538 = vmatpush.bf16.msra.mxu3 %v4627_v56  ;;  %v5980_v56 = vld [vmem:[%s9263_s1 + $0x8c4] sm:$0xf]  ;;  %v4779_v30 = vor.u32 %v5948_v28, %v4776_v53 }
 0x160   :  { %3500 = vmatpush.bf16.msra.mxu0 %v4427_v4  ;;  %v3294_v26 = vpop.f32.mrf.mxu0  ;;  %v5946_v4 = vld [vmem:[%s9263_s1 + $0x7b4] sm:$0xf]  ;;  %v5924_v28 = vld [vmem:[%s9263_s1 + $0x704] sm:$0xf] }
 0x161   :  { %3513 = vmatpush.bf16.msra.mxu1 %v4491_v24  ;;  %v3295_v58 = vadd.f32 %v3294_v26, %v8411_v39  ;;  %v3307_v61 = vpop.f32.mrf.mxu1  ;;  %v4907_v39 = vor.u32 %v5980_v56, %v4904_v57  ;;  %v4832_v24 = vld [vmem:[%s9263_s1 + $0x838] sm:$0xf0]  ;;  %v4744_v26 = vld [vmem:[%s9263_s1 + $0x788] sm:$0xf0]  ;;  %v5956_v56 = vld [vmem:[%s9263_s1 + $0x804] sm:$0xf] }
 0x162   :  { %3526 = vmatpush.bf16.msra.mxu2 %v4555_v5  ;;  %v5978_v5 = vld [vmem:[%s9263_s1 + $0x8b4] sm:$0xf] }
 0x163   :  { %3539 = vmatpush.bf16.msra.mxu3 %v4619_v0  ;;  %3501 = vmatmul.bf16.vlgmr.msra.gmra.mxu0 %v6891_v15  ;;  %v5982_v15 = vld [vmem:[%s9263_s1 + $0x8d4] sm:$0xf]  ;;  %v3308_v8 = vadd.f32 %v3307_v61, %v3295_v58  ;;  %v4771_v0 = vor.u32 %v5946_v4, %v4768_v10  ;;  %v4899_v20 = vor.u32 %v5978_v5, %v4896_v27  ;;  %v4808_v58 = vld [vmem:[%s9263_s1 + $0x808] sm:$0xf0] }
 0x164   :  { %3545 = vmatpush.bf16.msrb.mxu0 %v4739_v31  ;;  %3514 = vmatmul.bf16.vlgmr.msra.gmra.mxu1 %v6895_v17  ;;  %v5932_v17 = vld [vmem:[%s9263_s1 + $0x744] sm:$0xf]  ;;  %v4835_v31 = vor.u32 %v5962_v23, %v4832_v24  ;;  %v4872_v61 = vld [vmem:[%s9263_s1 + $0x888] sm:$0xf0]  ;;  %v6034_v10 = vld [vmem:[%s9263_s1 + $0xa74] sm:$0xf]  ;;  %v4747_v24 = vor.u32 %v5940_v55, %v4744_v26  ;;  %v4811_v5 = vor.u32 %v5956_v56, %v4808_v58 }
 0x165   :  { %3558 = vmatpush.bf16.msrb.mxu1 %v4803_v32  ;;  %3527 = vmatmul.bf16.vlgmr.msra.gmra.mxu2 %v7057_v46  ;;  %v4712_v46 = vld [vmem:[%s9263_s1 + $0x748] sm:$0xf0]  ;;  %v5928_v32 = vld [vmem:[%s9263_s1 + $0x724] sm:$0xf]  ;;  %v5120_v23 = vld [vmem:[%s9263_s1 + $0xa78] sm:$0xf0] }
 0x166   :  { %3571 = vmatpush.bf16.msrb.mxu2 %v4867_v33  ;;  %3540 = vmatmul.bf16.vlgmr.msra.gmra.mxu3 %v7061_v48  ;;  %v4915_v48 = vor.u32 %v5982_v15, %v4912_v50  ;;  %v4715_v59 = vor.u32 %v5932_v17, %v4712_v46  ;;  %v4696_v33 = vld [vmem:[%s9263_s1 + $0x728] sm:$0xf0]  ;;  %v4752_v50 = vld [vmem:[%s9263_s1 + $0x798] sm:$0xf0]  ;;  %v4691_v46 = vor.u32 %v5926_v12, %v4688_v45  ;;  %v6050_v27 = vld [vmem:[%s9263_s1 + $0xaf4] sm:$0xf] }
 0x167   :  { %3584 = vmatpush.bf16.msrb.mxu3 %v4931_v22  ;;  %v4760_v22 = vld [vmem:[%s9263_s1 + $0x7a8] sm:$0xf0]  ;;  %v4880_v17 = vld [vmem:[%s9263_s1 + $0x898] sm:$0xf0]  ;;  %v4755_v53 = vor.u32 %v5942_v16, %v4752_v50  ;;  %v6030_v16 = vld [vmem:[%s9263_s1 + $0xa54] sm:$0xf] }
 0x168   :  { %3546 = vmatpush.bf16.msrb.mxu0 %v4731_v40  ;;  %v3320_v2 = vpop.f32.mrf.mxu2  ;;  %v4888_v40 = vld [vmem:[%s9263_s1 + $0x8a8] sm:$0xf0]  ;;  %v4763_v44 = vor.u32 %v5944_v34, %v4760_v22  ;;  %v6000_v34 = vld [vmem:[%s9263_s1 + $0x964] sm:$0xf]  ;;  %v5040_v45 = vld [vmem:[%s9263_s1 + $0x9d8] sm:$0xf0] }
 0x169   :  { %3559 = vmatpush.bf16.msrb.mxu1 %v4795_v60  ;;  %v3321_v37 = vadd.f32 %v3320_v2, %v3308_v8  ;;  %v3333_v25 = vpop.f32.mrf.mxu3  ;;  %v3296_v60 = vpop.f32.mrf.mxu0  ;;  %v4891_v15 = vor.u32 %v5976_v38, %v4888_v40  ;;  %v5056_v8 = vld [vmem:[%s9263_s1 + $0x9f8] sm:$0xf0]  ;;  %v6016_v2 = vld [vmem:[%s9263_s1 + $0x9e4] sm:$0xf]  ;;  %v5176_v38 = vld [vmem:[%s9263_s1 + $0xae8] sm:$0xf0] }
 0x16a   :  { %3572 = vmatpush.bf16.msrb.mxu2 %v4859_v41  ;;  %v4699_v41 = vor.u32 %v5928_v32, %v4696_v33  ;;  %v3309_v42 = vpop.f32.mrf.mxu1  ;;  %v5059_v32 = vor.u32 %v6018_v3, %v5056_v8  ;;  %v5123_v33 = vor.u32 %v6034_v10, %v5120_v23  ;;  %v5168_v50 = vld [vmem:[%s9263_s1 + $0xad8] sm:$0xf0]  ;;  %v5160_v55 = vld [vmem:[%s9263_s1 + $0xac8] sm:$0xf0]  ;;  %v6042_v8 = vld [vmem:[%s9263_s1 + $0xab4] sm:$0xf] }
 0x16b   :  { %3585 = vmatpush.bf16.msrb.mxu3 %v4923_v1  ;;  %v8610_v43 = vadd.f32 %v3333_v25, %v3321_v37  ;;  %v4827_v1 = vor.u32 %v5960_v35, %v4824_v36  ;;  %v5048_v35 = vld [vmem:[%s9263_s1 + $0x9e8] sm:$0xf0]  ;;  %v6032_v36 = vld [vmem:[%s9263_s1 + $0xa64] sm:$0xf]  ;;  %v5998_v42 = vld [vmem:[%s9263_s1 + $0x954] sm:$0xf] }
 0x16c   :  { %3547 = vmatpush.bf16.msrb.mxu0 %v4723_v54  ;;  %v5958_v54 = vld [vmem:[%s9263_s1 + $0x814] sm:$0xf]  ;;  %v5112_v37 = vld [vmem:[%s9263_s1 + $0xa68] sm:$0xf0]  ;;  %v6048_v25 = vld [vmem:[%s9263_s1 + $0xae4] sm:$0xf]  ;;  %v5051_v60 = vor.u32 %v6016_v2, %v5048_v35 }
 0x16d   :  { %3560 = vmatpush.bf16.msrb.mxu1 %v4787_v51  ;;  %v4816_v51 = vld [vmem:[%s9263_s1 + $0x818] sm:$0xf0]  ;;  %v5179_v12 = vor.u32 %v6048_v25, %v5176_v38  ;;  %v6181_v23 = vld [vmem:[%s9264_s2] sm:$0x3]  ;;  %v5080_v2 = vld [vmem:[%s9263_s1 + $0xa28] sm:$0xf0] }
 0x16e   :  { %3573 = vmatpush.bf16.msrb.mxu2 %v4851_v52  ;;  %v5974_v52 = vld [vmem:[%s9263_s1 + $0x894] sm:$0xf]  ;;  %v4819_v21 = vor.u32 %v5958_v54, %v4816_v51  ;;  %v5024_v3 = vld [vmem:[%s9263_s1 + $0x9b8] sm:$0xf0]  ;;  %v6040_v35 = vld [vmem:[%s9263_s1 + $0xaa4] sm:$0xf] }
 0x16f   :  { %3586 = vmatpush.bf16.msrb.mxu3 %v4915_v48  ;;  %v4680_v48 = vld [vmem:[%s9263_s1 + $0x708] sm:$0xf0]  ;;  %v4883_v57 = vor.u32 %v5974_v52, %v4880_v17  ;;  %v6012_v17 = vld [vmem:[%s9263_s1 + $0x9c4] sm:$0xf]  ;;  %v5152_v10 = vld [vmem:[%s9263_s1 + $0xab8] sm:$0xf0] }
 0x170   :  { %3548 = vmatpush.bf16.msrb.mxu0 %v4715_v59  ;;  %v5972_v59 = vld [vmem:[%s9263_s1 + $0x884] sm:$0xf] }
 0x171   :  { %3561 = vmatpush.bf16.msrb.mxu1 %v4779_v30  ;;  %v3322_v30 = vpop.f32.mrf.mxu2  ;;  %v3335_v4 = vpop.f32.mrf.mxu3 }
 0x172   :  { %3574 = vmatpush.bf16.msrb.mxu2 %v4843_v62  ;;  %v6002_v62 = vld [vmem:[%s9263_s1 + $0x974] sm:$0xf]  ;;  %v4960_v30 = vld [vmem:[%s9263_s1 + $0x938] sm:$0xf0] }
 0x173   :  { %3587 = vmatpush.bf16.msrb.mxu3 %v4907_v39  ;;  %v4683_v39 = vor.u32 %v5924_v28, %v4680_v48  ;;  %v6028_v28 = vld [vmem:[%s9263_s1 + $0xa44] sm:$0xf]  ;;  %v5096_v48 = vld [vmem:[%s9263_s1 + $0xa48] sm:$0xf0]  ;;  %v6026_v4 = vld [vmem:[%s9263_s1 + $0xa34] sm:$0xf] }
 0x174   :  { %3549 = vmatpush.bf16.msrb.mxu0 %v4707_v29  ;;  %v5184_v29 = vld [vmem:[%s9263_s1 + $0xaf8] sm:$0xf0] }
 0x175   :  { %3562 = vmatpush.bf16.msrb.mxu1 %v4771_v0  ;;  %v4875_v0 = vor.u32 %v5972_v59, %v4872_v61  ;;  %v5187_v22 = vor.u32 %v6050_v27, %v5184_v29  ;;  %v5099_v59 = vor.u32 %v6028_v28, %v5096_v48  ;;  %v5994_v61 = vld [vmem:[%s9263_s1 + $0x934] sm:$0xf]  ;;  %v5000_v28 = vld [vmem:[%s9263_s1 + $0x988] sm:$0xf0]  ;;  %v6020_v48 = vld [vmem:[%s9263_s1 + $0xa04] sm:$0xf] }
 0x176   :  { %3575 = vmatpush.bf16.msrb.mxu2 %v4835_v31  ;;  %v4995_v31 = vor.u32 %v6002_v62, %v4992_v63  ;;  %v6010_v62 = vld [vmem:[%s9263_s1 + $0x9b4] sm:$0xf] }
 0x177   :  { %3588 = vmatpush.bf16.msrb.mxu3 %v4899_v20  ;;  %v4984_v20 = vld [vmem:[%s9263_s1 + $0x968] sm:$0xf0]  ;;  %v5027_v27 = vor.u32 %v6010_v62, %v5024_v3  ;;  %v5312_v62 = vld [vmem:[%s9263_s1 + $0xbf8] sm:$0xf0] }
 0x178   :  { %3550 = vmatpush.bf16.msrb.mxu0 %v4699_v41  ;;  %v4987_v40 = vor.u32 %v6000_v34, %v4984_v20  ;;  %v5115_v41 = vor.u32 %v6032_v36, %v5112_v37  ;;  %v5016_v34 = vld [vmem:[%s9263_s1 + $0x9a8] sm:$0xf0]  ;;  %v6024_v20 = vld [vmem:[%s9263_s1 + $0xa24] sm:$0xf]  ;;  %v5376_v3 = vld [vmem:[%s9263_s1 + $0xc78] sm:$0xf0] }
 0x179   :  { %3563 = vmatpush.bf16.msrb.mxu1 %v4763_v44  ;;  %v4976_v44 = vld [vmem:[%s9263_s1 + $0x958] sm:$0xf0]  ;;  %v5144_v36 = vld [vmem:[%s9263_s1 + $0xaa8] sm:$0xf0] }
 0x17a   :  { %3576 = vmatpush.bf16.msrb.mxu2 %v4827_v1  ;;  %v6014_v1 = vld [vmem:[%s9263_s1 + $0x9d4] sm:$0xf]  ;;  %v4979_v54 = vor.u32 %v5998_v42, %v4976_v44  ;;  %v5083_v42 = vor.u32 %v6024_v20, %v5080_v2  ;;  %v5368_v20 = vld [vmem:[%s9263_s1 + $0xc68] sm:$0xf0]  ;;  %v6112_v2 = vld [vmem:[%s9263_s1 + $0xce4] sm:$0xf] }
 0x17b   :  { %3589 = vmatpush.bf16.msrb.mxu3 %v4891_v15  ;;  %v5104_v15 = vld [vmem:[%s9263_s1 + $0xa58] sm:$0xf0]  ;;  %v5043_v51 = vor.u32 %v6014_v1, %v5040_v45  ;;  %v5990_v44 = vld [vmem:[%s9263_s1 + $0x914] sm:$0xf] }
 0x17c   :  { %3551 = vmatpush.bf16.msrb.mxu0 %v4691_v46  ;;  %v5107_v52 = vor.u32 %v6030_v16, %v5104_v15  ;;  %v5032_v46 = vld [vmem:[%s9263_s1 + $0x9c8] sm:$0xf0]  ;;  %v4944_v1 = vld [vmem:[%s9263_s1 + $0x918] sm:$0xf0]  ;;  %v5147_v16 = vor.u32 %v6040_v35, %v5144_v36 }
 0x17d   :  { %3564 = vmatpush.bf16.msrb.mxu1 %v4755_v53  ;;  %v5035_v58 = vor.u32 %v6012_v17, %v5032_v46  ;;  %v5008_v15 = vld [vmem:[%s9263_s1 + $0x998] sm:$0xf0]  ;;  %v6004_v46 = vld [vmem:[%s9263_s1 + $0x984] sm:$0xf] }
 0x17e   :  { %3577 = vmatpush.bf16.msrb.mxu2 %v4819_v21  ;;  %v6044_v21 = vld [vmem:[%s9263_s1 + $0xac4] sm:$0xf] }
 0x17f   :  { %3590 = vmatpush.bf16.msrb.mxu3 %v4883_v57 }
 0x180   :  { %3552 = vmatpush.bf16.msrb.mxu0 %v4683_v39  ;;  %v3346_v53 = vpop.f32.mrf.mxu0  ;;  %v5088_v39 = vld [vmem:[%s9263_s1 + $0xa38] sm:$0xf0] }
 0x181   :  { %3565 = vmatpush.bf16.msrb.mxu1 %v4747_v24  ;;  %v3347_v26 = vadd.f32 %v3346_v53, %v8610_v43  ;;  %v3359_v57 = vpop.f32.mrf.mxu1  ;;  %v5163_v43 = vor.u32 %v6044_v21, %v5160_v55  ;;  %v2970_v24 = vperm.slane %v6181_v23, 1  ;;  %v5091_v29 = vor.u32 %v6026_v4, %v5088_v39  ;;  %v5064_v21 = vld [vmem:[%s9263_s1 + $0xa08] sm:$0xf0]  ;;  %v6036_v55 = vld [vmem:[%s9263_s1 + $0xa84] sm:$0xf] }
 0x182   :  { %3578 = vmatpush.bf16.msrb.mxu2 %v4811_v5  ;;  %v4963_v5 = vor.u32 %v5994_v61, %v4960_v30  ;;  %v5003_v4 = vor.u32 %v6004_v46, %v5000_v28  ;;  %v5067_v39 = vor.u32 %v6020_v48, %v5064_v21  ;;  %v6058_v28 = vld [vmem:[%s9263_s1 + $0xb34] sm:$0xf]  ;;  %v5216_v48 = vld [vmem:[%s9263_s1 + $0xb38] sm:$0xf0] }
 0x183   :  { %3591 = vmatpush.bf16.msrb.mxu3 %v4875_v0  ;;  %3553 = vmatmul.bf16.vlgmr.msrb.gmra.mxu0 %v7059_v47  ;;  %v6046_v47 = vld [vmem:[%s9263_s1 + $0xad4] sm:$0xf]  ;;  %v8770_v63 = vadd.f32 %v3359_v57, %v3347_v26  ;;  %v5992_v0 = vld [vmem:[%s9263_s1 + $0x924] sm:$0xf]  ;;  %v5128_v26 = vld [vmem:[%s9263_s1 + $0xa88] sm:$0xf0] }
 0x184   :  { %3597 = vmatpush.bf16.msra.mxu0 %v4995_v31  ;;  %3566 = vmatmul.bf16.vlgmr.msrb.gmra.mxu1 %v7063_v49  ;;  %v5996_v49 = vld [vmem:[%s9263_s1 + $0x944] sm:$0xf]  ;;  %v4952_v31 = vld [vmem:[%s9263_s1 + $0x928] sm:$0xf0]  ;;  %v6066_v57 = vld [vmem:[%s9263_s1 + $0xb74] sm:$0xf]  ;;  %v5131_v23 = vor.u32 %v6036_v55, %v5128_v26 }
 0x185   :  { %3610 = vmatpush.bf16.msra.mxu1 %v5059_v32  ;;  %3579 = vmatmul.bf16.vlgmr.msrb.gmra.mxu2 %v7294_v9  ;;  %v4968_v9 = vld [vmem:[%s9263_s1 + $0x948] sm:$0xf0]  ;;  %v6008_v32 = vld [vmem:[%s9263_s1 + $0x9a4] sm:$0xf] }
 0x186   :  { %3623 = vmatpush.bf16.msra.mxu2 %v5123_v33  ;;  %3592 = vmatmul.bf16.vlgmr.msrb.gmra.mxu3 %v7304_v14  ;;  %v5171_v14 = vor.u32 %v6046_v47, %v5168_v50  ;;  %v4971_v56 = vor.u32 %v5996_v49, %v4968_v9  ;;  %v5155_v33 = vor.u32 %v6042_v8, %v5152_v10  ;;  %v6022_v47 = vld [vmem:[%s9263_s1 + $0xa14] sm:$0xf]  ;;  %v5072_v50 = vld [vmem:[%s9263_s1 + $0xa18] sm:$0xf0]  ;;  %v5988_v49 = vld [vmem:[%s9263_s1 + $0x904] sm:$0xf] }
 0x187   :  { %3636 = vmatpush.bf16.msra.mxu3 %v5187_v22  ;;  %v4936_v9 = vld [vmem:[%s9263_s1 + $0x908] sm:$0xf0]  ;;  %v6114_v8 = vld [vmem:[%s9263_s1 + $0xcf4] sm:$0xf]  ;;  %v5440_v10 = vld [vmem:[%s9263_s1 + $0xcf8] sm:$0xf0] }
 0x188   :  { %3598 = vmatpush.bf16.msra.mxu0 %v4987_v40  ;;  %v3372_v22 = vpop.f32.mrf.mxu2  ;;  %v3348_v38 = vpop.f32.mrf.mxu0  ;;  %v4955_v40 = vor.u32 %v5992_v0, %v4952_v31  ;;  %v4939_v30 = vor.u32 %v5988_v49, %v4936_v9  ;;  %v5240_v0 = vld [vmem:[%s9263_s1 + $0xb68] sm:$0xf0]  ;;  %v6080_v31 = vld [vmem:[%s9263_s1 + $0xbe4] sm:$0xf] }
 0x189   :  { %3611 = vmatpush.bf16.msra.mxu1 %v5051_v60  ;;  %v3373_v37 = vadd.f32 %v3372_v22, %v2970_v24  ;;  %v3385_v25 = vpop.f32.mrf.mxu3  ;;  %v3361_v60 = vpop.f32.mrf.mxu1  ;;  %v5432_v22 = vld [vmem:[%s9263_s1 + $0xce8] sm:$0xf0]  ;;  %v5232_v38 = vld [vmem:[%s9263_s1 + $0xb58] sm:$0xf0] }
 0x18a   :  { %3624 = vmatpush.bf16.msra.mxu2 %v5115_v41  ;;  %v5019_v41 = vor.u32 %v6008_v32, %v5016_v34  ;;  %v5443_v32 = vor.u32 %v6114_v8, %v5440_v10  ;;  %v6096_v34 = vld [vmem:[%s9263_s1 + $0xc64] sm:$0xf]  ;;  %v5435_v60 = vor.u32 %v6112_v2, %v5432_v22  ;;  %v5416_v49 = vld [vmem:[%s9263_s1 + $0xcc8] sm:$0xf0]  ;;  %v6054_v22 = vld [vmem:[%s9263_s1 + $0xb14] sm:$0xf] }
 0x18b   :  { %3637 = vmatpush.bf16.msra.mxu3 %v5179_v12  ;;  %v6006_v12 = vld [vmem:[%s9263_s1 + $0x994] sm:$0xf]  ;;  %v8823_v45 = vadd.f32 %v3385_v25, %v3373_v37  ;;  %v5371_v37 = vor.u32 %v6096_v34, %v5368_v20 }
 0x18c   :  { %3599 = vmatpush.bf16.msra.mxu0 %v4979_v54  ;;  %v6038_v54 = vld [vmem:[%s9263_s1 + $0xa94] sm:$0xf]  ;;  %v5011_v17 = vor.u32 %v6006_v12, %v5008_v15 }
 0x18d   :  { %3612 = vmatpush.bf16.msra.mxu1 %v5043_v51  ;;  %v5136_v51 = vld [vmem:[%s9263_s1 + $0xa98] sm:$0xf0]  ;;  %v6062_v25 = vld [vmem:[%s9263_s1 + $0xb54] sm:$0xf] }
 0x18e   :  { %3625 = vmatpush.bf16.msra.mxu2 %v5107_v52  ;;  %v4947_v52 = vor.u32 %v5990_v44, %v4944_v1  ;;  %v5139_v53 = vor.u32 %v6038_v54, %v5136_v51  ;;  %v5360_v44 = vld [vmem:[%s9263_s1 + $0xc58] sm:$0xf0]  ;;  %v5235_v12 = vor.u32 %v6062_v25, %v5232_v38  ;;  %v6092_v54 = vld [vmem:[%s9263_s1 + $0xc44] sm:$0xf]  ;;  %v5352_v51 = vld [vmem:[%s9263_s1 + $0xc48] sm:$0xf0] }
 0x18f   :  { %3638 = vmatpush.bf16.msra.mxu3 %v5171_v14  ;;  %v5075_v14 = vor.u32 %v6022_v47, %v5072_v50  ;;  %v5424_v1 = vld [vmem:[%s9263_s1 + $0xcd8] sm:$0xf0]  ;;  %v6076_v47 = vld [vmem:[%s9263_s1 + $0xbc4] sm:$0xf]  ;;  %v5288_v50 = vld [vmem:[%s9263_s1 + $0xbc8] sm:$0xf0]  ;;  %v5355_v46 = vor.u32 %v6092_v54, %v5352_v51 }
 0x190   :  { %3600 = vmatpush.bf16.msra.mxu0 %v4971_v56  ;;  %v3374_v56 = vpop.f32.mrf.mxu2  ;;  %v5264_v38 = vld [vmem:[%s9263_s1 + $0xb98] sm:$0xf0]  ;;  %v6100_v54 = vld [vmem:[%s9263_s1 + $0xc84] sm:$0xf]  ;;  %v5384_v51 = vld [vmem:[%s9263_s1 + $0xc88] sm:$0xf0] }
 0x191   :  { %3613 = vmatpush.bf16.msra.mxu1 %v5035_v58  ;;  %v5248_v58 = vld [vmem:[%s9263_s1 + $0xb78] sm:$0xf0]  ;;  %v3387_v61 = vpop.f32.mrf.mxu3 }
 0x192   :  { %3626 = vmatpush.bf16.msra.mxu2 %v5099_v59  ;;  %v6082_v59 = vld [vmem:[%s9263_s1 + $0xbf4] sm:$0xf]  ;;  %v5251_v24 = vor.u32 %v6066_v57, %v5248_v58  ;;  %v5280_v56 = vld [vmem:[%s9263_s1 + $0xbb8] sm:$0xf0] }
 0x193   :  { %3639 = vmatpush.bf16.msra.mxu3 %v5163_v43  ;;  %v6098_v43 = vld [vmem:[%s9263_s1 + $0xc74] sm:$0xf]  ;;  %v5344_v58 = vld [vmem:[%s9263_s1 + $0xc38] sm:$0xf0] }
 0x194   :  { %3601 = vmatpush.bf16.msra.mxu0 %v4963_v5  ;;  %v5315_v5 = vor.u32 %v6082_v59, %v5312_v62  ;;  %v6090_v57 = vld [vmem:[%s9263_s1 + $0xc34] sm:$0xf] }
 0x195   :  { %3614 = vmatpush.bf16.msra.mxu1 %v5027_v27  ;;  %v5379_v27 = vor.u32 %v6098_v43, %v5376_v3  ;;  %v6106_v59 = vld [vmem:[%s9263_s1 + $0xcb4] sm:$0xf]  ;;  %v5347_v43 = vor.u32 %v6090_v57, %v5344_v58  ;;  %v6056_v3 = vld [vmem:[%s9263_s1 + $0xb24] sm:$0xf] }
 0x196   :  { %3627 = vmatpush.bf16.msra.mxu2 %v5091_v29  ;;  %v6064_v29 = vld [vmem:[%s9263_s1 + $0xb64] sm:$0xf] }
 0x197   :  { %3640 = vmatpush.bf16.msra.mxu3 %v5155_v33  ;;  %v5304_v33 = vld [vmem:[%s9263_s1 + $0xbe8] sm:$0xf0]  ;;  %v5243_v35 = vor.u32 %v6064_v29, %v5240_v0  ;;  %v6104_v0 = vld [vmem:[%s9263_s1 + $0xca4] sm:$0xf] }
 0x198   :  { %3602 = vmatpush.bf16.msra.mxu0 %v4955_v40  ;;  %v5307_v36 = vor.u32 %v6080_v31, %v5304_v33  ;;  %v6078_v40 = vld [vmem:[%s9263_s1 + $0xbd4] sm:$0xf]  ;;  %v5400_v31 = vld [vmem:[%s9263_s1 + $0xca8] sm:$0xf0] }
 0x199   :  { %3615 = vmatpush.bf16.msra.mxu1 %v5019_v41  ;;  %v5296_v41 = vld [vmem:[%s9263_s1 + $0xbd8] sm:$0xf0]  ;;  %v5403_v25 = vor.u32 %v6104_v0, %v5400_v31 }
 0x19a   :  { %3628 = vmatpush.bf16.msra.mxu2 %v5083_v42  ;;  %v6094_v42 = vld [vmem:[%s9263_s1 + $0xc54] sm:$0xf]  ;;  %v5552_v31 = vld [vmem:[%s9263_s1 + $0xdd8] sm:$0xf0] }
 0x19b   :  { %3641 = vmatpush.bf16.msra.mxu3 %v5147_v16  ;;  %v5299_v16 = vor.u32 %v6078_v40, %v5296_v41  ;;  %v5363_v15 = vor.u32 %v6094_v42, %v5360_v44  ;;  %v6086_v40 = vld [vmem:[%s9263_s1 + $0xc14] sm:$0xf]  ;;  %v5392_v42 = vld [vmem:[%s9263_s1 + $0xc98] sm:$0xf0] }
 0x19c   :  { %3603 = vmatpush.bf16.msra.mxu0 %v4947_v52  ;;  %v6108_v52 = vld [vmem:[%s9263_s1 + $0xcc4] sm:$0xf]  ;;  %v6102_v41 = vld [vmem:[%s9263_s1 + $0xc94] sm:$0xf] }
 0x19d   :  { %3616 = vmatpush.bf16.msra.mxu1 %v5011_v17  ;;  %v5419_v26 = vor.u32 %v6108_v52, %v5416_v49  ;;  %v6130_v49 = vld [vmem:[%s9263_s1 + $0xd74] sm:$0xf] }
 0x19e   :  { %3629 = vmatpush.bf16.msra.mxu2 %v5075_v14  ;;  %v5291_v14 = vor.u32 %v6076_v47, %v5288_v50  ;;  %v5320_v50 = vld [vmem:[%s9263_s1 + $0xc08] sm:$0xf0] }
 0x19f   :  { %3642 = vmatpush.bf16.msra.mxu3 %v5139_v53  ;;  %v6074_v53 = vld [vmem:[%s9263_s1 + $0xbb4] sm:$0xf] }
 0x1a0   :  { %3604 = vmatpush.bf16.msra.mxu0 %v4939_v30  ;;  %v3398_v17 = vpop.f32.mrf.mxu0  ;;  %v5219_v30 = vor.u32 %v6058_v28, %v5216_v48  ;;  %v5283_v62 = vor.u32 %v6074_v53, %v5280_v56  ;;  %v6162_v28 = vld [vmem:[%s9263_s1 + $0xe74] sm:$0xf]  ;;  %v5632_v48 = vld [vmem:[%s9263_s1 + $0xe78] sm:$0xf0]  ;;  %v5387_v56 = vor.u32 %v6100_v54, %v5384_v51 }
 0x1a1   :  { %3617 = vmatpush.bf16.msra.mxu1 %v5003_v4  ;;  %v3399_v21 = vadd.f32 %v3398_v17, %v8823_v45  ;;  %v3411_v55 = vpop.f32.mrf.mxu1  ;;  %v5408_v45 = vld [vmem:[%s9263_s1 + $0xcb8] sm:$0xf0]  ;;  %v5208_v4 = vld [vmem:[%s9263_s1 + $0xb28] sm:$0xf0]  ;;  %v6146_v17 = vld [vmem:[%s9263_s1 + $0xdf4] sm:$0xf] }
 0x1a2   :  { %3630 = vmatpush.bf16.msra.mxu2 %v5067_v39  ;;  %v6072_v39 = vld [vmem:[%s9263_s1 + $0xba4] sm:$0xf]  ;;  %v5411_v10 = vor.u32 %v6106_v59, %v5408_v45  ;;  %v5635_v59 = vor.u32 %v6162_v28, %v5632_v48  ;;  %v5536_v51 = vld [vmem:[%s9263_s1 + $0xdb8] sm:$0xf0] }
 0x1a3   :  { %3643 = vmatpush.bf16.msra.mxu3 %v5131_v23  ;;  %3605 = vmatmul.bf16.vlgmr.msra.gmra.mxu0 %v7302_v13  ;;  %v6110_v13 = vld [vmem:[%s9263_s1 + $0xcd4] sm:$0xf]  ;;  %v3412_v61 = vadd.f32 %v3411_v55, %v3399_v21  ;;  %v5272_v23 = vld [vmem:[%s9263_s1 + $0xba8] sm:$0xf0]  ;;  %v6128_v45 = vld [vmem:[%s9263_s1 + $0xd64] sm:$0xf] }
 0x1a4   :  { %3649 = vmatpush.bf16.msrb.mxu0 %v5251_v24  ;;  %3618 = vmatmul.bf16.vlgmr.msra.gmra.mxu1 %v7306_v18  ;;  %v6060_v18 = vld [vmem:[%s9263_s1 + $0xb44] sm:$0xf]  ;;  %v5275_v20 = vor.u32 %v6072_v39, %v5272_v23  ;;  %v6178_v55 = vld [vmem:[%s9263_s1 + $0xef4] sm:$0xf] }
 0x1a5   :  { %3662 = vmatpush.bf16.msrb.mxu1 %v5315_v5  ;;  %3631 = vmatmul.bf16.vlgmr.msra.gmra.mxu2 %v7471_v6  ;;  %v5224_v6 = vld [vmem:[%s9263_s1 + $0xb48] sm:$0xf0]  ;;  %v6088_v24 = vld [vmem:[%s9263_s1 + $0xc24] sm:$0xf] }
 0x1a6   :  { %3675 = vmatpush.bf16.msrb.mxu2 %v5379_v27  ;;  %3644 = vmatmul.bf16.vlgmr.msra.gmra.mxu3 %v7475_v11  ;;  %v5427_v11 = vor.u32 %v6110_v13, %v5424_v1  ;;  %v5227_v9 = vor.u32 %v6060_v18, %v5224_v6  ;;  %v5336_v5 = vld [vmem:[%s9263_s1 + $0xc28] sm:$0xf0]  ;;  %v6052_v13 = vld [vmem:[%s9263_s1 + $0xb04] sm:$0xf] }
 0x1a7   :  { %3688 = vmatpush.bf16.msrb.mxu3 %v5443_v32  ;;  %v5211_v32 = vor.u32 %v6056_v3, %v5208_v4  ;;  %v5339_v2 = vor.u32 %v6088_v24, %v5336_v5  ;;  %v5192_v1 = vld [vmem:[%s9263_s1 + $0xb08] sm:$0xf0]  ;;  %v6084_v6 = vld [vmem:[%s9263_s1 + $0xc04] sm:$0xf]  ;;  %v6126_v5 = vld [vmem:[%s9263_s1 + $0xd54] sm:$0xf] }
 0x1a8   :  { %3650 = vmatpush.bf16.msrb.mxu0 %v5243_v35  ;;  %v3424_v8 = vpop.f32.mrf.mxu2  ;;  %v3400_v34 = vpop.f32.mrf.mxu0  ;;  %v5200_v35 = vld [vmem:[%s9263_s1 + $0xb18] sm:$0xf0]  ;;  %v5256_v18 = vld [vmem:[%s9263_s1 + $0xb88] sm:$0xf0]  ;;  %v5323_v21 = vor.u32 %v6084_v6, %v5320_v50  ;;  %v6160_v3 = vld [vmem:[%s9263_s1 + $0xe64] sm:$0xf] }
 0x1a9   :  { %3663 = vmatpush.bf16.msrb.mxu1 %v5307_v36  ;;  %v3425_v27 = vadd.f32 %v3424_v8, %v3412_v61  ;;  %v3437_v29 = vpop.f32.mrf.mxu3  ;;  %v6070_v36 = vld [vmem:[%s9263_s1 + $0xb94] sm:$0xf]  ;;  %v5203_v44 = vor.u32 %v6054_v22, %v5200_v35  ;;  %v5496_v61 = vld [vmem:[%s9263_s1 + $0xd68] sm:$0xf0]  ;;  %v6176_v39 = vld [vmem:[%s9263_s1 + $0xee4] sm:$0xf] }
 0x1aa   :  { %3676 = vmatpush.bf16.msrb.mxu2 %v5371_v37  ;;  %v3413_v37 = vpop.f32.mrf.mxu1  ;;  %v5624_v4 = vld [vmem:[%s9263_s1 + $0xe68] sm:$0xf0]  ;;  %v5616_v34 = vld [vmem:[%s9263_s1 + $0xe58] sm:$0xf0]  ;;  %v6138_v50 = vld [vmem:[%s9263_s1 + $0xdb4] sm:$0xf] }
 0x1ab   :  { %3689 = vmatpush.bf16.msrb.mxu3 %v5435_v60  ;;  %v9013_v33 = vadd.f32 %v3437_v29, %v3425_v27  ;;  %v5328_v60 = vld [vmem:[%s9263_s1 + $0xc18] sm:$0xf0]  ;;  %v5688_v8 = vld [vmem:[%s9263_s1 + $0xee8] sm:$0xf0]  ;;  %v5627_v24 = vor.u32 %v6160_v3, %v5624_v4  ;;  %v6142_v29 = vld [vmem:[%s9263_s1 + $0xdd4] sm:$0xf] }
 0x1ac   :  { %3651 = vmatpush.bf16.msrb.mxu0 %v5235_v12  ;;  %v5267_v12 = vor.u32 %v6070_v36, %v5264_v38  ;;  %v5488_v27 = vld [vmem:[%s9263_s1 + $0xd58] sm:$0xf0]  ;;  %v5691_v0 = vor.u32 %v6176_v39, %v5688_v8  ;;  %v6183_v22 = vld [vmem:[#allocation1 + $0x9] sm:$0xff]  ;;  %v5555_v36 = vor.u32 %v6142_v29, %v5552_v31  ;;  %v6140_v38 = vld [vmem:[%s9263_s1 + $0xdc4] sm:$0xf] }
 0x1ad   :  { %3664 = vmatpush.bf16.msrb.mxu1 %v5299_v16  ;;  %v5331_v16 = vor.u32 %v6086_v40, %v5328_v60  ;;  %v5491_v35 = vor.u32 %v6126_v5, %v5488_v27  ;;  %v5544_v60 = vld [vmem:[%s9263_s1 + $0xdc8] sm:$0xf0]  ;;  %v6120_v48 = vld [vmem:[%s9263_s1 + $0xd24] sm:$0xf]  ;;  %v5520_v27 = vld [vmem:[%s9263_s1 + $0xd98] sm:$0xf0] }
 0x1ae   :  { %3677 = vmatpush.bf16.msrb.mxu2 %v5363_v15  ;;  %v6068_v15 = vld [vmem:[%s9263_s1 + $0xb84] sm:$0xf]  ;;  %v6150_v29 = vld [vmem:[%s9263_s1 + $0xe14] sm:$0xf] }
 0x1af   :  { %3690 = vmatpush.bf16.msrb.mxu3 %v5427_v11  ;;  %v5395_v11 = vor.u32 %v6102_v41, %v5392_v42  ;;  %v5259_v53 = vor.u32 %v6068_v15, %v5256_v18  ;;  %v6156_v41 = vld [vmem:[%s9263_s1 + $0xe44] sm:$0xf]  ;;  %v5608_v42 = vld [vmem:[%s9263_s1 + $0xe48] sm:$0xf0]  ;;  %v5547_v18 = vor.u32 %v6140_v38, %v5544_v60  ;;  %v6166_v31 = vld [vmem:[%s9263_s1 + $0xe94] sm:$0xf] }
 0x1b0   :  { %3652 = vmatpush.bf16.msrb.mxu0 %v5227_v9  ;;  %v3426_v47 = vpop.f32.mrf.mxu2  ;;  %v5504_v9 = vld [vmem:[%s9263_s1 + $0xd78] sm:$0xf0]  ;;  %v5611_v6 = vor.u32 %v6156_v41, %v5608_v42  ;;  %v5640_v60 = vld [vmem:[%s9263_s1 + $0xe88] sm:$0xf0] }
 0x1b1   :  { %3665 = vmatpush.bf16.msrb.mxu1 %v5291_v14  ;;  %v3439_v52 = vpop.f32.mrf.mxu3  ;;  %v5195_v14 = vor.u32 %v6052_v13, %v5192_v1  ;;  %v5507_v57 = vor.u32 %v6130_v49, %v5504_v9  ;;  %v6172_v13 = vld [vmem:[%s9263_s1 + $0xec4] sm:$0xf]  ;;  %v5672_v1 = vld [vmem:[%s9263_s1 + $0xec8] sm:$0xf0]  ;;  %v6122_v47 = vld [vmem:[%s9263_s1 + $0xd34] sm:$0xf] }
 0x1b2   :  { %3678 = vmatpush.bf16.msrb.mxu2 %v5355_v46  ;;  %v5568_v46 = vld [vmem:[%s9263_s1 + $0xdf8] sm:$0xf0]  ;;  %v6154_v52 = vld [vmem:[%s9263_s1 + $0xe34] sm:$0xf] }
 0x1b3   :  { %3691 = vmatpush.bf16.msrb.mxu3 %v5419_v26  ;;  %v5696_v26 = vld [vmem:[%s9263_s1 + $0xef8] sm:$0xf0]  ;;  %v5571_v58 = vor.u32 %v6146_v17, %v5568_v46  ;;  %v6170_v9 = vld [vmem:[%s9263_s1 + $0xeb4] sm:$0xf]  ;;  %v5539_v46 = vor.u32 %v6138_v50, %v5536_v51 }
 0x1b4   :  { %3653 = vmatpush.bf16.msrb.mxu0 %v5219_v30  ;;  %v6144_v30 = vld [vmem:[%s9263_s1 + $0xde4] sm:$0xf]  ;;  %v5600_v49 = vld [vmem:[%s9263_s1 + $0xe38] sm:$0xf0] }
 0x1b5   :  { %3666 = vmatpush.bf16.msrb.mxu1 %v5283_v62  ;;  %v5699_v62 = vor.u32 %v6178_v55, %v5696_v26  ;;  %v5664_v17 = vld [vmem:[%s9263_s1 + $0xeb8] sm:$0xf0]  ;;  %v5603_v28 = vor.u32 %v6154_v52, %v5600_v49 }
 0x1b6   :  { %3679 = vmatpush.bf16.msrb.mxu2 %v5347_v43  ;;  %v5560_v43 = vld [vmem:[%s9263_s1 + $0xde8] sm:$0xf0]  ;;  %v5667_v55 = vor.u32 %v6170_v9, %v5664_v17 }
 0x1b7   :  { %3692 = vmatpush.bf16.msrb.mxu3 %v5411_v10  ;;  %v5499_v10 = vor.u32 %v6128_v45, %v5496_v61  ;;  %v5563_v23 = vor.u32 %v6144_v30, %v5560_v43  ;;  %v6168_v61 = vld [vmem:[%s9263_s1 + $0xea4] sm:$0xf]  ;;  %v5656_v30 = vld [vmem:[%s9263_s1 + $0xea8] sm:$0xf0] }
 0x1b8   :  { %3654 = vmatpush.bf16.msrb.mxu0 %v5211_v32  ;;  %v6158_v32 = vld [vmem:[%s9263_s1 + $0xe54] sm:$0xf]  ;;  %v5659_v5 = vor.u32 %v6168_v61, %v5656_v30 }
 0x1b9   :  { %3667 = vmatpush.bf16.msrb.mxu1 %v5275_v20  ;;  %v6182_v20 = vld [vmem:[#allocation1] sm:$0xff]  ;;  %v5619_v37 = vor.u32 %v6158_v32, %v5616_v34  ;;  %v5648_v32 = vld [vmem:[%s9263_s1 + $0xe98] sm:$0xf0] }
 0x1ba   :  { %3680 = vmatpush.bf16.msrb.mxu2 %v5339_v2  ;;  %v5680_v2 = vld [vmem:[%s9263_s1 + $0xed8] sm:$0xf0] }
 0x1bb   :  { %3693 = vmatpush.bf16.msrb.mxu3 %v5403_v25  ;;  %v5480_v25 = vld [vmem:[%s9263_s1 + $0xd48] sm:$0xf0] }
 0x1bc   :  { %3655 = vmatpush.bf16.msrb.mxu0 %v5203_v44 }
 0x1bd   :  { %3668 = vmatpush.bf16.msrb.mxu1 %v5267_v12 }
 0x1be   :  { %3681 = vmatpush.bf16.msrb.mxu2 %v5331_v16 }
 0x1bf   :  { %3694 = vmatpush.bf16.msrb.mxu3 %v5395_v11  ;;  %v5472_v11 = vld [vmem:[%s9263_s1 + $0xd38] sm:$0xf0] }
 0x1c0   :  { %3656 = vmatpush.bf16.msrb.mxu0 %v5195_v14  ;;  %v3450_v44 = vpop.f32.mrf.mxu0  ;;  %v5475_v14 = vor.u32 %v6122_v47, %v5472_v11 }
 0x1c1   :  { %3669 = vmatpush.bf16.msrb.mxu1 %v5259_v53  ;;  %v3451_v12 = vadd.f32 %v3450_v44, %v9013_v33  ;;  %v3463_v15 = vpop.f32.mrf.mxu1  ;;  %v5675_v33 = vor.u32 %v6172_v13, %v5672_v1  ;;  %v5464_v53 = vld [vmem:[%s9263_s1 + $0xd28] sm:$0xf0] }
 0x1c2   :  { %3682 = vmatpush.bf16.msrb.mxu2 %v5323_v21  ;;  %v6136_v21 = vld [vmem:[%s9263_s1 + $0xda4] sm:$0xf]  ;;  %v5467_v43 = vor.u32 %v6120_v48, %v5464_v53 }
 0x1c3   :  { %3695 = vmatpush.bf16.msrb.mxu3 %v5387_v56  ;;  %3657 = vmatmul.bf16.vlgmr.msrb.gmra.mxu0 %v7473_v7  ;;  %v6174_v7 = vld [vmem:[%s9263_s1 + $0xed4] sm:$0xf]  ;;  %v3464_v54 = vadd.f32 %v3463_v15, %v3451_v12  ;;  %v5528_v56 = vld [vmem:[%s9263_s1 + $0xda8] sm:$0xf0]  ;;  %v6186_v15 = vld [vmem:[#allocation1 + $0x24] sm:$0xff] }
 0x1c4   :  { %3701 = vmatpush.bf16.msra.mxu0 %v5507_v57  ;;  %3670 = vmatmul.bf16.vlgmr.msrb.gmra.mxu1 %v7477_v19  ;;  %v6124_v19 = vld [vmem:[%s9263_s1 + $0xd44] sm:$0xf]  ;;  %v5683_v40 = vor.u32 %v6174_v7, %v5680_v2  ;;  %v5531_v39 = vor.u32 %v6136_v21, %v5528_v56  ;;  %v6184_v12 = vld [vmem:[#allocation1 + $0x12] sm:$0xff] }
 0x1c5   :  { %3714 = vmatpush.bf16.msra.mxu1 %v5571_v58  ;;  %3683 = vmatmul.bf16.vlgmr.msrb.gmra.mxu2 %v6182_v20  ;;  %v5483_v16 = vor.u32 %v6124_v19, %v5480_v25  ;;  %v6152_v57 = vld [vmem:[%s9263_s1 + $0xe24] sm:$0xf]  ;;  %v5592_v58 = vld [vmem:[%s9263_s1 + $0xe28] sm:$0xf0] }
 0x1c6   :  { %3727 = vmatpush.bf16.msra.mxu2 %v5635_v59  ;;  %3696 = vmatmul.bf16.vlgmr.msrb.gmra.mxu3 %v6183_v22  ;;  %v5595_v8 = vor.u32 %v6152_v57, %v5592_v58  ;;  %v6116_v2 = vld [vmem:[%s9263_s1 + $0xd04] sm:$0xf]  ;;  %v5448_v22 = vld [vmem:[%s9263_s1 + $0xd08] sm:$0xf0] }
 0x1c7   :  { %3740 = vmatpush.bf16.msra.mxu3 %v5699_v62  ;;  %v6148_v19 = vld [vmem:[%s9263_s1 + $0xe04] sm:$0xf]  ;;  %v5576_v25 = vld [vmem:[%s9263_s1 + $0xe08] sm:$0xf0]  ;;  %v5451_v42 = vor.u32 %v6116_v2, %v5448_v22 }
 0x1c8   :  { %3702 = vmatpush.bf16.msra.mxu0 %v5499_v10  ;;  %v3476_v26 = vpop.f32.mrf.mxu2  ;;  %v3452_v62 = vpop.f32.mrf.mxu0  ;;  %v6118_v10 = vld [vmem:[%s9263_s1 + $0xd14] sm:$0xf]  ;;  %v5579_v13 = vor.u32 %v6148_v19, %v5576_v25 }
 0x1c9   :  { %3715 = vmatpush.bf16.msra.mxu1 %v5563_v23  ;;  %v3477_v59 = vadd.f32 %v3476_v26, %v3464_v54  ;;  %v3489_v45 = vpop.f32.mrf.mxu3  ;;  %v3465_v3 = vpop.f32.mrf.mxu1  ;;  %v5456_v23 = vld [vmem:[%s9263_s1 + $0xd18] sm:$0xf0] }
 0x1ca   :  { %3728 = vmatpush.bf16.msra.mxu2 %v5627_v24  ;;  %v6134_v24 = vld [vmem:[%s9263_s1 + $0xd94] sm:$0xf]  ;;  %v5459_v34 = vor.u32 %v6118_v10, %v5456_v23 }
 0x1cb   :  { %3741 = vmatpush.bf16.msra.mxu3 %v5691_v0  ;;  %v3490_v4 = vadd.f32 %v3489_v45, %v3477_v59  ;;  %v5584_v0 = vld [vmem:[%s9263_s1 + $0xe18] sm:$0xf0]  ;;  %v5523_v20 = vor.u32 %v6134_v24, %v5520_v27 }
 0x1cc   :  { %3703 = vmatpush.bf16.msra.mxu0 %v5491_v35  ;;  %v5587_v7 = vor.u32 %v6150_v29, %v5584_v0  ;;  %v6132_v35 = vld [vmem:[%s9263_s1 + $0xd84] sm:$0xf] }
 0x1cd   :  { %3716 = vmatpush.bf16.msra.mxu1 %v5555_v36  ;;  %v5651_v36 = vor.u32 %v6166_v31, %v5648_v32 }
 0x1ce   :  { %3729 = vmatpush.bf16.msra.mxu2 %v5619_v37  ;;  %v5512_v37 = vld [vmem:[%s9263_s1 + $0xd88] sm:$0xf0] }
 0x1cf   :  { %3742 = vmatpush.bf16.msra.mxu3 %v5683_v40  ;;  %v6164_v40 = vld [vmem:[%s9263_s1 + $0xe84] sm:$0xf]  ;;  %v5515_v44 = vor.u32 %v6132_v35, %v5512_v37  ;;  %s6214_s1 = smov [#allocation2]  }
 0x1d0   :  { %3704 = vmatpush.bf16.msra.mxu0 %v5483_v16  ;;  %v3478_v38 = vpop.f32.mrf.mxu2  ;;  %v5643_v1 = vor.u32 %v6164_v40, %v5640_v60  ;;  %v6185_v16 = vld [vmem:[#allocation1 + $0x1b] sm:$0xff]  ;;  %s3769_s29 = sshll.u32 %s6214_s1, 4  ;;  %s3770_s29 = int_to_ptr.vmem [resolvable:$true] %s3769_s29 }
 0x1d1   :  { %3717 = vmatpush.bf16.msra.mxu1 %v5547_v18  ;;  %v3491_v41 = vpop.f32.mrf.mxu3  ;;  %v6187_v18 = vld [vmem:[#allocation1 + $0x2d] sm:$0xff] }
 0x1d2   :  { %3730 = vmatpush.bf16.msra.mxu2 %v5611_v6 }
 0x1d3   :  { %3743 = vmatpush.bf16.msra.mxu3 %v5675_v33 }
 0x1d4   :  { %3705 = vmatpush.bf16.msra.mxu0 %v5475_v14 }
 0x1d5   :  { %3718 = vmatpush.bf16.msra.mxu1 %v5539_v46 }
 0x1d6   :  { %3731 = vmatpush.bf16.msra.mxu2 %v5603_v28 }
 0x1d7   :  { %3744 = vmatpush.bf16.msra.mxu3 %v5667_v55 }
 0x1d8   :  { %3706 = vmatpush.bf16.msra.mxu0 %v5467_v43 }
 0x1d9   :  { %3719 = vmatpush.bf16.msra.mxu1 %v5531_v39 }
 0x1da   :  { %3732 = vmatpush.bf16.msra.mxu2 %v5595_v8 }
 0x1db   :  { %3745 = vmatpush.bf16.msra.mxu3 %v5659_v5 }
 0x1dc   :  { %3707 = vmatpush.bf16.msra.mxu0 %v5459_v34 }
 0x1dd   :  { %3720 = vmatpush.bf16.msra.mxu1 %v5523_v20 }
 0x1de   :  { %3733 = vmatpush.bf16.msra.mxu2 %v5587_v7 }
 0x1df   :  { %3746 = vmatpush.bf16.msra.mxu3 %v5651_v36 }
 0x1e0   :  { %3708 = vmatpush.bf16.msra.mxu0 %v5451_v42  ;;  %v3502_v6 = vpop.f32.mrf.mxu0 }
 0x1e1   :  { %3721 = vmatpush.bf16.msra.mxu1 %v5515_v44  ;;  %v3503_v47 = vadd.f32 %v3502_v6, %v3490_v4  ;;  %v3515_v11 = vpop.f32.mrf.mxu1  ;;  %v3759_v44 = vlaneseq }
 0x1e2   :  { %3734 = vmatpush.bf16.msra.mxu2 %v5579_v13 }
 0x1e3   :  { %3747 = vmatpush.bf16.msra.mxu3 %v5643_v1  ;;  %3709 = vmatmul.bf16.vlgmr.msra.gmra.mxu0 %v6184_v12  ;;  %v3516_v50 = vadd.f32 %v3515_v11, %v3503_v47  ;;  %vm3761_vm1 = vcmp.lt.s32.totalorder %v3759_v44, 160 }
 0x1e4   :  { %3722 = vmatmul.bf16.vlgmr.msra.gmra.mxu1 %v6185_v16 }
 0x1e5   :  { %3735 = vmatmul.bf16.vlgmr.msra.gmra.mxu2 %v6186_v15 }
 0x1e6   :  { %3748 = vmatmul.bf16.vlgmr.msra.gmra.mxu3 %v6187_v18 }
 0x1e8   :  { %v3528_v33 = vpop.f32.mrf.mxu2  ;;  %v3504_v52 = vpop.f32.mrf.mxu0 }
 0x1e9   :  { %v3529_v54 = vadd.f32 %v3528_v33, %v3516_v50  ;;  %v3541_v51 = vpop.f32.mrf.mxu3  ;;  %v3517_v49 = vpop.f32.mrf.mxu1 }
 0x1eb   :  { %v3542_v9 = vadd.f32 %v3541_v51, %v3529_v54 }
 0x1f0   :  { %v3530_v17 = vpop.f32.mrf.mxu2 }
 0x1f1   :  { %v3543_v14 = vpop.f32.mrf.mxu3 }
 0x200   :  { %v3554_v46 = vpop.f32.mrf.mxu0 }
 0x201   :  { %v3555_v28 = vadd.f32 %v3554_v46, %v3542_v9  ;;  %v3567_v48 = vpop.f32.mrf.mxu1 }
 0x203   :  { %v3568_v53 = vadd.f32 %v3567_v48, %v3555_v28 }
 0x208   :  { %v3580_v21 = vpop.f32.mrf.mxu2  ;;  %v3556_v56 = vpop.f32.mrf.mxu0 }
 0x209   :  { %v3581_v55 = vadd.f32 %v3580_v21, %v3568_v53  ;;  %v3593_v26 = vpop.f32.mrf.mxu3  ;;  %v3569_v57 = vpop.f32.mrf.mxu1 }
 0x20b   :  { %v3594_v58 = vadd.f32 %v3593_v26, %v3581_v55 }
 0x210   :  { %v3582_v59 = vpop.f32.mrf.mxu2 }
 0x211   :  { %v3595_v45 = vpop.f32.mrf.mxu3 }
 0x220   :  { %v3606_v61 = vpop.f32.mrf.mxu0 }
 0x221   :  { %v3619_v30 = vpop.f32.mrf.mxu1  ;;  %v3607_v24 = vadd.f32 %v3606_v61, %v3594_v58 }
 0x223   :  { %v3620_v31 = vadd.f32 %v3619_v30, %v3607_v24 }
 0x228   :  { %v3632_v62 = vpop.f32.mrf.mxu2  ;;  %v3608_v3 = vpop.f32.mrf.mxu0 }
 0x229   :  { %v3645_v43 = vpop.f32.mrf.mxu3  ;;  %v3621_v4 = vpop.f32.mrf.mxu1  ;;  %v3633_v32 = vadd.f32 %v3632_v62, %v3620_v31 }
 0x22b   :  { %v3646_v7 = vadd.f32 %v3645_v43, %v3633_v32 }
 0x230   :  { %v3634_v39 = vpop.f32.mrf.mxu2 }
 0x231   :  { %v3647_v8 = vpop.f32.mrf.mxu3 }
 0x240   :  { %v3658_v10 = vpop.f32.mrf.mxu0 }
 0x241   :  { %v3671_v23 = vpop.f32.mrf.mxu1  ;;  %v3659_v2 = vadd.f32 %v3658_v10, %v3646_v7 }
 0x243   :  { %v3672_v22 = vadd.f32 %v3671_v23, %v3659_v2 }
 0x248   :  { %v3684_v5 = vpop.f32.mrf.mxu2  ;;  %v3660_v29 = vpop.f32.mrf.mxu0 }
 0x249   :  { %v3697_v27 = vpop.f32.mrf.mxu3  ;;  %v3673_v0 = vpop.f32.mrf.mxu1  ;;  %v3685_v35 = vadd.f32 %v3684_v5, %v3672_v22 }
 0x24b   :  { %v3698_v36 = vadd.f32 %v3697_v27, %v3685_v35 }
 0x250   :  { %v3686_v34 = vpop.f32.mrf.mxu2 }
 0x251   :  { %v3699_v20 = vpop.f32.mrf.mxu3 }
 0x260   :  { %v3710_v37 = vpop.f32.mrf.mxu0 }
 0x261   :  { %v3723_v19 = vpop.f32.mrf.mxu1  ;;  %v3711_v25 = vadd.f32 %v3710_v37, %v3698_v36 }
 0x263   :  { %v3724_v38 = vadd.f32 %v3723_v19, %v3711_v25 }
 0x268   :  { %v3736_v40 = vpop.f32.mrf.mxu2  ;;  %v3712_v42 = vpop.f32.mrf.mxu0 }
 0x269   :  { %v3737_v60 = vadd.f32 %v3736_v40, %v3724_v38  ;;  %v3749_v41 = vpop.f32.mrf.mxu3  ;;  %v3725_v13 = vpop.f32.mrf.mxu1 }
 0x26b   :  { %v3750_v1 = vadd.f32 %v3749_v41, %v3737_v60 }
 0x26d   :  { %v3755_v12 = vrot.slane %v3750_v1, 7 }
 0x26f   :  { %v3757_v16 = vsel %vm3756_vm0, %v8770_v63, %v3755_v12 }
 0x270   :  { %v3738_v15 = vpop.f32.mrf.mxu2  ;;  %3763 = vst.msk [vmem:[#allocation2] sm:$0x3] %vm3761_vm1, %v3757_v16 }
 0x271   :  { %v3751_v18 = vpop.f32.mrf.mxu3  ;;  %3774 = dma.vmem_to_hbm [thread:$0]  %s3770_s29, 32, %s3772_s5, [#allocation3]  }
 0x272   :  { %6212 = dma.done.wait [#allocation3], 32  }
 0x273   :  { %6213 = vsyncadd [#allocation3], 4294967264 }
 0x274   :  { %3779 = vsyncpa [#allocation3], 1 }

</bundles_post_ra>
